<compile_context>
chip_gen: v5e
topology: v5e:2x2
jax: 0.10.0
libtpu: 0.0.40
codegen_flags: <defaults>
</compile_context>

<pallas_src>
import math
import jax
import jax.numpy as jnp
from jax.experimental import pallas as pl
from jax.experimental.pallas import tpu as pltpu  # noqa: F401

# ---------------- scaled-down BERT config ----------------
VOCAB = 32          # vocab_size
MAX_POS = 16        # max_position_embeddings
TYPE_VOCAB = 2      # type_vocab_size
HIDDEN = 128        # hidden_size (768 in bert-base)
N_LAYERS = 2        # num_hidden_layers (12 in bert-base)
N_HEADS = 4         # num_attention_heads (12 in bert-base)
HEAD_DIM = HIDDEN // N_HEADS
INTERMEDIATE = 256  # intermediate_size (3072 in bert-base)
MLP_HIDDEN = 64     # MLP channel_list=[hidden, 256, num_class] scaled down
NUM_CLASS = 5
LOGITS_PAD = 128    # pad logits to a full 128-lane vreg for a lane-dense store
LN_EPS = 1e-12


# ---------------- in-kernel helpers ----------------
def _layer_norm(x, gamma, beta, eps=LN_EPS):
    mean = jnp.mean(x, axis=-1, keepdims=True)
    var = jnp.mean((x - mean) ** 2, axis=-1, keepdims=True)
    return (x - mean) * jax.lax.rsqrt(var + eps) * gamma + beta


def _gelu(x):
    # TODO(synk): HF BERT default is exact erf-GELU; using the tanh approximation
    # (HF "gelu_new") for Mosaic-safe lowering.
    return 0.5 * x * (1.0 + jnp.tanh(0.7978845608028654 * (x + 0.044715 * x * x * x)))


def _dot(a, b):
    # MXU matmul: bf16 inputs, f32 accumulation.
    return jnp.dot(a.astype(jnp.bfloat16), b, preferred_element_type=jnp.float32)


# ---------------- fused Pallas kernel ----------------
def bertc_fused_kernel(x_ref, lens_ref, embg_ref, embb_ref,
                       wqkv_ref, bqkv_ref, wo_ref, bo_ref, ln1g_ref, ln1b_ref,
                       w1_ref, b1_ref, w2_ref, b2_ref, ln2g_ref, ln2b_ref,
                       poolw_ref, poolb_ref, mw1_ref, mb1_ref, mw2_ref, mb2_ref,
                       emb_ref, logits_ref):
    B = lens_ref.shape[0]
    BS, H = x_ref.shape
    S = BS // B

    # Additive attention bias built in-kernel from seq_len:
    # key positions >= seq_len[b] get -10000 (same as (1-mask)*-10000 in the reference).
    kpos = jax.lax.broadcasted_iota(jnp.int32, (B, S, S), 2)          # key index on lane axis
    mask_bias = jnp.where(kpos < lens_ref[...], 0.0, -10000.0)        # [B, S, S] f32

    # BertEmbeddings LayerNorm on the flattened [B*S, H] activation.
    x2 = _layer_norm(x_ref[...], embg_ref[...], embb_ref[...])        # [B*S, H] f32

    # BertEncoder: two layers, fully unrolled; all weights resident in VMEM.
    # NOTE: the 1/sqrt(head_dim) scale is pre-folded into the Q weight/bias.
    for l in range(N_LAYERS):
        # Fused QKV projection, M = B*S.
        qkv = _dot(x2, wqkv_ref[l]) + bqkv_ref[l]                     # [B*S, 3H] f32
        q = qkv[:, 0 * H:1 * H].reshape(B, S, H)
        k = qkv[:, 1 * H:2 * H].reshape(B, S, H)
        v = qkv[:, 2 * H:3 * H].reshape(B, S, H)

        head_outs = []
        for h in range(N_HEADS):
            sl = slice(h * HEAD_DIM, (h + 1) * HEAD_DIM)
            qh = q[:, :, sl].astype(jnp.bfloat16)
            kh = k[:, :, sl].astype(jnp.bfloat16)
            vh = v[:, :, sl].astype(jnp.bfloat16)
            s = jnp.einsum('bqd,bkd->bqk', qh, kh,
                           preferred_element_type=jnp.float32) + mask_bias
            s = s - jnp.max(s, axis=-1, keepdims=True)
            e = jnp.exp(s)
            p = e * pl.reciprocal(jnp.sum(e, axis=-1, keepdims=True), approx=True)
            head_outs.append(jnp.einsum('bqk,bkd->bqd', p.astype(jnp.bfloat16), vh,
                                        preferred_element_type=jnp.float32))
        ctx = jnp.concatenate(head_outs, axis=-1).reshape(BS, H)      # [B*S, H] f32

        attn = _dot(ctx, wo_ref[l]) + bo_ref[l]
        h1 = _layer_norm(attn + x2, ln1g_ref[l], ln1b_ref[l])

        ff = _gelu(_dot(h1, w1_ref[l]) + b1_ref[l])
        ff = _dot(ff, w2_ref[l]) + b2_ref[l]
        x2 = _layer_norm(ff + h1, ln2g_ref[l], ln2b_ref[l])

    # Sequence output (out['embedding'] in the reference).
    emb_ref[...] = x2

    # BertPooler (CLS token -> tanh(Linear)) + MLP head (Linear -> ReLU -> Linear).
    cls = jnp.concatenate([x2[b * S:b * S + 1, :] for b in range(B)], axis=0)   # [B, H]
    pooled = jnp.tanh(_dot(cls, poolw_ref[...]) + poolb_ref[...])
    hmid = jnp.maximum(_dot(pooled, mw1_ref[...]) + mb1_ref[...], 0.0)
    logits_ref[...] = _dot(hmid, mw2_ref[...]) + mb2_ref[...]                   # [B, 128] padded


# ---------------- wrappers ----------------
def _pack_params(params):
    """Fuse QKV (with the attention scale folded into Q), stack per-layer weights
    along a leading layer axis, cast matmul weights to bf16 (biases / LayerNorm
    stay f32), and pad the classifier output to 128 lanes."""
    L = params["layers"]
    bf16 = jnp.bfloat16
    scale = 1.0 / math.sqrt(HEAD_DIM)
    wqkv = jnp.stack([jnp.concatenate([lp["wq"] * scale, lp["wk"], lp["wv"]], axis=1)
                      for lp in L]).astype(bf16)                       # [L, H, 3H]
    bqkv = jnp.stack([jnp.concatenate([lp["bq"] * scale, lp["bk"], lp["bv"]], axis=1)
                      for lp in L])                                    # [L, 1, 3H]
    wo = jnp.stack([lp["wo"] for lp in L]).astype(bf16)
    bo = jnp.stack([lp["bo"] for lp in L])
    ln1g = jnp.stack([lp["ln1_g"] for lp in L])
    ln1b = jnp.stack([lp["ln1_b"] for lp in L])
    w1 = jnp.stack([lp["w1"] for lp in L]).astype(bf16)
    b1 = jnp.stack([lp["b1"] for lp in L])
    w2 = jnp.stack([lp["w2"] for lp in L]).astype(bf16)
    b2 = jnp.stack([lp["b2"] for lp in L])
    ln2g = jnp.stack([lp["ln2_g"] for lp in L])
    ln2b = jnp.stack([lp["ln2_b"] for lp in L])
    # Pad final classifier to a full 128-lane output (extra columns are exactly zero).
    mw2 = jnp.zeros((MLP_HIDDEN, LOGITS_PAD), jnp.float32).at[:, :NUM_CLASS].set(
        params["mlp_w2"]).astype(bf16)
    mb2 = jnp.zeros((1, LOGITS_PAD), jnp.float32).at[:, :NUM_CLASS].set(params["mlp_b2"])
    return (params["emb_ln_g"], params["emb_ln_b"],
            wqkv, bqkv, wo, bo, ln1g, ln1b, w1, b1, w2, b2, ln2g, ln2b,
            params["pool_w"].astype(bf16), params["pool_b"],
            params["mlp_w1"].astype(bf16), params["mlp_b1"], mw2, mb2)


def bertc_forward(params, src, seq_len, gold=None, perturbed=None):
    B, S = src.shape

    # Embedding table gathers are glue; everything else runs inside the fused kernel.
    pos_ids = jnp.arange(S)
    tok_type = jnp.zeros_like(src)
    words = jnp.take(params["word_emb"], src, axis=0)                 # [B, S, H]
    pos = jnp.take(params["pos_emb"], pos_ids, axis=0)[None]          # [1, S, H]
    typ = jnp.take(params["type_emb"], tok_type, axis=0)              # [B, S, H]
    summed = (perturbed if perturbed is not None else words) + pos + typ

    lens = seq_len.astype(jnp.int32).reshape(B, 1, 1)
    packed = _pack_params(params)

    emb2d, logits_pad = pl.pallas_call(
        bertc_fused_kernel,
        out_shape=(jax.ShapeDtypeStruct((B * S, HIDDEN), jnp.float32),
                   jax.ShapeDtypeStruct((B, LOGITS_PAD), jnp.float32)),
    )(summed.reshape(B * S, HIDDEN), lens, *packed)

    logits = logits_pad[:, :NUM_CLASS]
    ret = {"pred": logits, "embedding": emb2d.reshape(B, S, HIDDEN)}
    if gold is not None:  # nn.CrossEntropyLoss (glue, scalar reduction)
        logp = jax.nn.log_softmax(logits, axis=-1)
        ret["loss"] = -jnp.mean(jnp.take_along_axis(logp, gold[:, None], axis=1))
    return ret


# ---------------- deterministic parameter init ----------------
def init_params(key):
    keys = iter(jax.random.split(key, 64))

    def nrm(shape, scale=0.02):
        return scale * jax.random.normal(next(keys), shape, jnp.float32)

    def ones(shape):
        return jnp.ones(shape, jnp.float32)

    def zeros(shape):
        return jnp.zeros(shape, jnp.float32)

    params = {
        "word_emb": nrm((VOCAB, HIDDEN)).at[0].set(0.0),  # padding_idx=0
        "pos_emb": nrm((MAX_POS, HIDDEN)),
        "type_emb": nrm((TYPE_VOCAB, HIDDEN)),
        "emb_ln_g": ones((1, HIDDEN)), "emb_ln_b": zeros((1, HIDDEN)),
        "pool_w": nrm((HIDDEN, HIDDEN)), "pool_b": zeros((1, HIDDEN)),
        "mlp_w1": nrm((HIDDEN, MLP_HIDDEN)), "mlp_b1": zeros((1, MLP_HIDDEN)),
        "mlp_w2": nrm((MLP_HIDDEN, NUM_CLASS)), "mlp_b2": zeros((1, NUM_CLASS)),
        "layers": [],
    }
    for _ in range(N_LAYERS):
        params["layers"].append({
            "wq": nrm((HIDDEN, HIDDEN)), "bq": zeros((1, HIDDEN)),
            "wk": nrm((HIDDEN, HIDDEN)), "bk": zeros((1, HIDDEN)),
            "wv": nrm((HIDDEN, HIDDEN)), "bv": zeros((1, HIDDEN)),
            "wo": nrm((HIDDEN, HIDDEN)), "bo": zeros((1, HIDDEN)),
            "ln1_g": ones((1, HIDDEN)), "ln1_b": zeros((1, HIDDEN)),
            "w1": nrm((HIDDEN, INTERMEDIATE)), "b1": zeros((1, INTERMEDIATE)),
            "w2": nrm((INTERMEDIATE, HIDDEN)), "b2": zeros((1, HIDDEN)),
            "ln2_g": ones((1, HIDDEN)), "ln2_b": zeros((1, HIDDEN)),
        })
    return params


if __name__ == "__main__":
    key = jax.random.PRNGKey(0)
    pkey, dkey = jax.random.split(key)
    params = init_params(pkey)

    B, S = 2, 8
    src = jax.random.randint(dkey, (B, S), 1, VOCAB)        # token ids
    seq_len = jnp.array([8, 5], dtype=jnp.int32)            # valid lengths
    gold = jnp.array([1, 3], dtype=jnp.int32)               # labels

    fwd = jax.jit(bertc_forward)
    out = fwd(params, src, seq_len, gold=gold)
    jax.block_until_ready(out)

    assert out["pred"].shape == (B, NUM_CLASS)
    assert out["embedding"].shape == (B, S, HIDDEN)
    assert out["loss"].shape == ()
    assert bool(jnp.isfinite(out["loss"]))
    print("KERNEL_OK")
</pallas_src>

<mosaic_0001>
module attributes {stable_mosaic.version = 11 : i64} {
  func.func @bertc_fused_kernel(%arg0: memref<16x128xf32, #tpu.memory_space<vmem>>, %arg1: memref<2x1x1xi32, #tpu.memory_space<vmem>>, %arg2: memref<1x128xf32, #tpu.memory_space<vmem>>, %arg3: memref<1x128xf32, #tpu.memory_space<vmem>>, %arg4: memref<2x128x384xbf16, #tpu.memory_space<vmem>>, %arg5: memref<2x1x384xf32, #tpu.memory_space<vmem>>, %arg6: memref<2x128x128xbf16, #tpu.memory_space<vmem>>, %arg7: memref<2x1x128xf32, #tpu.memory_space<vmem>>, %arg8: memref<2x1x128xf32, #tpu.memory_space<vmem>>, %arg9: memref<2x1x128xf32, #tpu.memory_space<vmem>>, %arg10: memref<2x128x256xbf16, #tpu.memory_space<vmem>>, %arg11: memref<2x1x256xf32, #tpu.memory_space<vmem>>, %arg12: memref<2x256x128xbf16, #tpu.memory_space<vmem>>, %arg13: memref<2x1x128xf32, #tpu.memory_space<vmem>>, %arg14: memref<2x1x128xf32, #tpu.memory_space<vmem>>, %arg15: memref<2x1x128xf32, #tpu.memory_space<vmem>>, %arg16: memref<128x128xbf16, #tpu.memory_space<vmem>>, %arg17: memref<1x128xf32, #tpu.memory_space<vmem>>, %arg18: memref<128x64xbf16, #tpu.memory_space<vmem>>, %arg19: memref<1x64xf32, #tpu.memory_space<vmem>>, %arg20: memref<64x128xbf16, #tpu.memory_space<vmem>>, %arg21: memref<1x128xf32, #tpu.memory_space<vmem>>, %arg22: memref<16x128xf32, #tpu.memory_space<vmem>>, %arg23: memref<2x128xf32, #tpu.memory_space<vmem>>) attributes {dimension_semantics = [], scalar_prefetch = 0 : i64, scratch_operands = 0 : i64, tpu.core_type = #tpu.core_type<tc>} {
    %0 = tpu.iota {dimensions = array<i32: 2>} : vector<2x8x8xi32>
    %c0 = arith.constant 0 : index
    %c0_0 = arith.constant 0 : index
    %c0_1 = arith.constant 0 : index
    %1 = vector.load %arg1[%c0, %c0_0, %c0_1] : memref<2x1x1xi32, #tpu.memory_space<vmem>>, vector<2x1x1xi32>
    %2 = vector.broadcast %1 : vector<2x1x1xi32> to vector<2x8x8xi32>
    %3 = arith.cmpi slt, %0, %2 : vector<2x8x8xi32>
    %cst = arith.constant 0.000000e+00 : f32
    %cst_2 = arith.constant -1.000000e+04 : f32
    %4 = vector.broadcast %cst : f32 to vector<2x8x8xf32>
    %5 = vector.broadcast %cst_2 : f32 to vector<2x8x8xf32>
    %6 = arith.select %3, %4, %5 : vector<2x8x8xi1>, vector<2x8x8xf32>
    %c0_3 = arith.constant 0 : index
    %c0_4 = arith.constant 0 : index
    %7 = vector.load %arg0[%c0_3, %c0_4] : memref<16x128xf32, #tpu.memory_space<vmem>>, vector<16x128xf32>
    %c0_5 = arith.constant 0 : index
    %c0_6 = arith.constant 0 : index
    %8 = vector.load %arg2[%c0_5, %c0_6] : memref<1x128xf32, #tpu.memory_space<vmem>>, vector<1x128xf32>
    %c0_7 = arith.constant 0 : index
    %c0_8 = arith.constant 0 : index
    %9 = vector.load %arg3[%c0_7, %c0_8] : memref<1x128xf32, #tpu.memory_space<vmem>>, vector<1x128xf32>
    %cst_9 = arith.constant dense<0.000000e+00> : vector<16xf32>
    %10 = vector.multi_reduction <add>, %7, %cst_9 [1] : vector<16x128xf32> to vector<16xf32>
    %11 = vector.shape_cast %10 : vector<16xf32> to vector<16x1xf32>
    %cst_10 = arith.constant 1.280000e+02 : f32
    %12 = vector.broadcast %cst_10 : f32 to vector<16x1xf32>
    %13 = arith.divf %11, %12 : vector<16x1xf32>
    %14 = vector.broadcast %13 : vector<16x1xf32> to vector<16x128xf32>
    %15 = arith.subf %7, %14 : vector<16x128xf32>
    %16 = arith.mulf %15, %15 : vector<16x128xf32>
    %cst_11 = arith.constant dense<0.000000e+00> : vector<16xf32>
    %17 = vector.multi_reduction <add>, %16, %cst_11 [1] : vector<16x128xf32> to vector<16xf32>
    %18 = vector.shape_cast %17 : vector<16xf32> to vector<16x1xf32>
    %cst_12 = arith.constant 1.280000e+02 : f32
    %19 = vector.broadcast %cst_12 : f32 to vector<16x1xf32>
    %20 = arith.divf %18, %19 : vector<16x1xf32>
    %21 = vector.broadcast %13 : vector<16x1xf32> to vector<16x128xf32>
    %22 = arith.subf %7, %21 : vector<16x128xf32>
    %cst_13 = arith.constant 9.99999996E-13 : f32
    %23 = vector.broadcast %cst_13 : f32 to vector<16x1xf32>
    %24 = arith.addf %20, %23 : vector<16x1xf32>
    %25 = math.rsqrt %24 : vector<16x1xf32>
    %26 = vector.broadcast %25 : vector<16x1xf32> to vector<16x128xf32>
    %27 = arith.mulf %22, %26 : vector<16x128xf32>
    %28 = vector.broadcast %8 : vector<1x128xf32> to vector<16x128xf32>
    %29 = arith.mulf %27, %28 : vector<16x128xf32>
    %30 = vector.broadcast %9 : vector<1x128xf32> to vector<16x128xf32>
    %31 = arith.addf %29, %30 : vector<16x128xf32>
    %c0_14 = arith.constant 0 : index
    %c0_15 = arith.constant 0 : index
    %c0_16 = arith.constant 0 : index
    %32 = vector.load %arg4[%c0_14, %c0_15, %c0_16] : memref<2x128x384xbf16, #tpu.memory_space<vmem>>, vector<1x128x384xbf16>
    %33 = vector.shape_cast %32 : vector<1x128x384xbf16> to vector<128x384xbf16>
    %34 = arith.truncf %31 : vector<16x128xf32> to vector<16x128xbf16>
    %cst_17 = arith.constant dense<0.000000e+00> : vector<16x384xf32>
    %35 = tpu.matmul %34, %33, %cst_17 {dimension_numbers = #tpu.dot_dimension_numbers<[1], [0], [0], [1], [0, 0, 1, 1], [], []>} : vector<16x128xbf16>, vector<128x384xbf16>, vector<16x384xf32> -> vector<16x384xf32>
    %c0_18 = arith.constant 0 : index
    %c0_19 = arith.constant 0 : index
    %c0_20 = arith.constant 0 : index
    %36 = vector.load %arg5[%c0_18, %c0_19, %c0_20] : memref<2x1x384xf32, #tpu.memory_space<vmem>>, vector<1x1x384xf32>
    %37 = vector.shape_cast %36 : vector<1x1x384xf32> to vector<1x384xf32>
    %38 = vector.broadcast %37 : vector<1x384xf32> to vector<16x384xf32>
    %39 = arith.addf %35, %38 : vector<16x384xf32>
    %40 = vector.extract_strided_slice %39 {offsets = [0, 0], sizes = [16, 128], strides = [1, 1]} : vector<16x384xf32> to vector<16x128xf32>
    %41 = vector.shape_cast %40 : vector<16x128xf32> to vector<2x8x128xf32>
    %42 = vector.extract_strided_slice %39 {offsets = [0, 128], sizes = [16, 128], strides = [1, 1]} : vector<16x384xf32> to vector<16x128xf32>
    %43 = vector.shape_cast %42 : vector<16x128xf32> to vector<2x8x128xf32>
    %44 = vector.extract_strided_slice %39 {offsets = [0, 256], sizes = [16, 128], strides = [1, 1]} : vector<16x384xf32> to vector<16x128xf32>
    %45 = vector.shape_cast %44 : vector<16x128xf32> to vector<2x8x128xf32>
    %46 = vector.extract_strided_slice %41 {offsets = [0, 0, 0], sizes = [2, 8, 32], strides = [1, 1, 1]} : vector<2x8x128xf32> to vector<2x8x32xf32>
    %47 = arith.truncf %46 : vector<2x8x32xf32> to vector<2x8x32xbf16>
    %48 = vector.extract_strided_slice %43 {offsets = [0, 0, 0], sizes = [2, 8, 32], strides = [1, 1, 1]} : vector<2x8x128xf32> to vector<2x8x32xf32>
    %49 = arith.truncf %48 : vector<2x8x32xf32> to vector<2x8x32xbf16>
    %50 = vector.extract_strided_slice %45 {offsets = [0, 0, 0], sizes = [2, 8, 32], strides = [1, 1, 1]} : vector<2x8x128xf32> to vector<2x8x32xf32>
    %51 = arith.truncf %50 : vector<2x8x32xf32> to vector<2x8x32xbf16>
    "tpu.trace_start"() <{level = 10 : i32, message = "bqd,bkd->bqk"}> : () -> ()
    %cst_21 = arith.constant dense<0.000000e+00> : vector<2x8x8xf32>
    %52 = tpu.matmul %47, %49, %cst_21 {dimension_numbers = #tpu.dot_dimension_numbers<[2], [2], [1], [1], [0, 0, 0, 1, 1, 1], [0], [0]>} : vector<2x8x32xbf16>, vector<2x8x32xbf16>, vector<2x8x8xf32> -> vector<2x8x8xf32>
    "tpu.trace_stop"() : () -> ()
    %53 = arith.addf %52, %6 : vector<2x8x8xf32>
    %cst_22 = arith.constant dense<0xFF800000> : vector<2x8xf32>
    %54 = vector.multi_reduction <maximumf>, %53, %cst_22 [2] : vector<2x8x8xf32> to vector<2x8xf32>
    %55 = vector.shape_cast %54 : vector<2x8xf32> to vector<2x8x1xf32>
    %56 = vector.broadcast %55 : vector<2x8x1xf32> to vector<2x8x8xf32>
    %57 = arith.subf %53, %56 : vector<2x8x8xf32>
    %58 = math.exp %57 : vector<2x8x8xf32>
    %cst_23 = arith.constant dense<0.000000e+00> : vector<2x8xf32>
    %59 = vector.multi_reduction <add>, %58, %cst_23 [2] : vector<2x8x8xf32> to vector<2x8xf32>
    %60 = vector.shape_cast %59 : vector<2x8xf32> to vector<2x8x1xf32>
    %61 = tpu.reciprocal %60 {approx = true} : vector<2x8x1xf32> -> vector<2x8x1xf32>
    %62 = vector.broadcast %61 : vector<2x8x1xf32> to vector<2x8x8xf32>
    %63 = arith.mulf %58, %62 : vector<2x8x8xf32>
    %64 = arith.truncf %63 : vector<2x8x8xf32> to vector<2x8x8xbf16>
    "tpu.trace_start"() <{level = 10 : i32, message = "bqk,bkd->bqd"}> : () -> ()
    %cst_24 = arith.constant dense<0.000000e+00> : vector<2x8x32xf32>
    %65 = tpu.matmul %64, %51, %cst_24 {dimension_numbers = #tpu.dot_dimension_numbers<[2], [1], [1], [2], [0, 0, 0, 1, 1, 2], [0], [0]>} : vector<2x8x8xbf16>, vector<2x8x32xbf16>, vector<2x8x32xf32> -> vector<2x8x32xf32>
    "tpu.trace_stop"() : () -> ()
    %66 = vector.extract_strided_slice %41 {offsets = [0, 0, 32], sizes = [2, 8, 32], strides = [1, 1, 1]} : vector<2x8x128xf32> to vector<2x8x32xf32>
    %67 = arith.truncf %66 : vector<2x8x32xf32> to vector<2x8x32xbf16>
    %68 = vector.extract_strided_slice %43 {offsets = [0, 0, 32], sizes = [2, 8, 32], strides = [1, 1, 1]} : vector<2x8x128xf32> to vector<2x8x32xf32>
    %69 = arith.truncf %68 : vector<2x8x32xf32> to vector<2x8x32xbf16>
    %70 = vector.extract_strided_slice %45 {offsets = [0, 0, 32], sizes = [2, 8, 32], strides = [1, 1, 1]} : vector<2x8x128xf32> to vector<2x8x32xf32>
    %71 = arith.truncf %70 : vector<2x8x32xf32> to vector<2x8x32xbf16>
    "tpu.trace_start"() <{level = 10 : i32, message = "bqd,bkd->bqk"}> : () -> ()
    %cst_25 = arith.constant dense<0.000000e+00> : vector<2x8x8xf32>
    %72 = tpu.matmul %67, %69, %cst_25 {dimension_numbers = #tpu.dot_dimension_numbers<[2], [2], [1], [1], [0, 0, 0, 1, 1, 1], [0], [0]>} : vector<2x8x32xbf16>, vector<2x8x32xbf16>, vector<2x8x8xf32> -> vector<2x8x8xf32>
    "tpu.trace_stop"() : () -> ()
    %73 = arith.addf %72, %6 : vector<2x8x8xf32>
    %cst_26 = arith.constant dense<0xFF800000> : vector<2x8xf32>
    %74 = vector.multi_reduction <maximumf>, %73, %cst_26 [2] : vector<2x8x8xf32> to vector<2x8xf32>
    %75 = vector.shape_cast %74 : vector<2x8xf32> to vector<2x8x1xf32>
    %76 = vector.broadcast %75 : vector<2x8x1xf32> to vector<2x8x8xf32>
    %77 = arith.subf %73, %76 : vector<2x8x8xf32>
    %78 = math.exp %77 : vector<2x8x8xf32>
    %cst_27 = arith.constant dense<0.000000e+00> : vector<2x8xf32>
    %79 = vector.multi_reduction <add>, %78, %cst_27 [2] : vector<2x8x8xf32> to vector<2x8xf32>
    %80 = vector.shape_cast %79 : vector<2x8xf32> to vector<2x8x1xf32>
    %81 = tpu.reciprocal %80 {approx = true} : vector<2x8x1xf32> -> vector<2x8x1xf32>
    %82 = vector.broadcast %81 : vector<2x8x1xf32> to vector<2x8x8xf32>
    %83 = arith.mulf %78, %82 : vector<2x8x8xf32>
    %84 = arith.truncf %83 : vector<2x8x8xf32> to vector<2x8x8xbf16>
    "tpu.trace_start"() <{level = 10 : i32, message = "bqk,bkd->bqd"}> : () -> ()
    %cst_28 = arith.constant dense<0.000000e+00> : vector<2x8x32xf32>
    %85 = tpu.matmul %84, %71, %cst_28 {dimension_numbers = #tpu.dot_dimension_numbers<[2], [1], [1], [2], [0, 0, 0, 1, 1, 2], [0], [0]>} : vector<2x8x8xbf16>, vector<2x8x32xbf16>, vector<2x8x32xf32> -> vector<2x8x32xf32>
    "tpu.trace_stop"() : () -> ()
    %86 = vector.extract_strided_slice %41 {offsets = [0, 0, 64], sizes = [2, 8, 32], strides = [1, 1, 1]} : vector<2x8x128xf32> to vector<2x8x32xf32>
    %87 = arith.truncf %86 : vector<2x8x32xf32> to vector<2x8x32xbf16>
    %88 = vector.extract_strided_slice %43 {offsets = [0, 0, 64], sizes = [2, 8, 32], strides = [1, 1, 1]} : vector<2x8x128xf32> to vector<2x8x32xf32>
    %89 = arith.truncf %88 : vector<2x8x32xf32> to vector<2x8x32xbf16>
    %90 = vector.extract_strided_slice %45 {offsets = [0, 0, 64], sizes = [2, 8, 32], strides = [1, 1, 1]} : vector<2x8x128xf32> to vector<2x8x32xf32>
    %91 = arith.truncf %90 : vector<2x8x32xf32> to vector<2x8x32xbf16>
    "tpu.trace_start"() <{level = 10 : i32, message = "bqd,bkd->bqk"}> : () -> ()
    %cst_29 = arith.constant dense<0.000000e+00> : vector<2x8x8xf32>
    %92 = tpu.matmul %87, %89, %cst_29 {dimension_numbers = #tpu.dot_dimension_numbers<[2], [2], [1], [1], [0, 0, 0, 1, 1, 1], [0], [0]>} : vector<2x8x32xbf16>, vector<2x8x32xbf16>, vector<2x8x8xf32> -> vector<2x8x8xf32>
    "tpu.trace_stop"() : () -> ()
    %93 = arith.addf %92, %6 : vector<2x8x8xf32>
    %cst_30 = arith.constant dense<0xFF800000> : vector<2x8xf32>
    %94 = vector.multi_reduction <maximumf>, %93, %cst_30 [2] : vector<2x8x8xf32> to vector<2x8xf32>
    %95 = vector.shape_cast %94 : vector<2x8xf32> to vector<2x8x1xf32>
    %96 = vector.broadcast %95 : vector<2x8x1xf32> to vector<2x8x8xf32>
    %97 = arith.subf %93, %96 : vector<2x8x8xf32>
    %98 = math.exp %97 : vector<2x8x8xf32>
    %cst_31 = arith.constant dense<0.000000e+00> : vector<2x8xf32>
    %99 = vector.multi_reduction <add>, %98, %cst_31 [2] : vector<2x8x8xf32> to vector<2x8xf32>
    %100 = vector.shape_cast %99 : vector<2x8xf32> to vector<2x8x1xf32>
    %101 = tpu.reciprocal %100 {approx = true} : vector<2x8x1xf32> -> vector<2x8x1xf32>
    %102 = vector.broadcast %101 : vector<2x8x1xf32> to vector<2x8x8xf32>
    %103 = arith.mulf %98, %102 : vector<2x8x8xf32>
    %104 = arith.truncf %103 : vector<2x8x8xf32> to vector<2x8x8xbf16>
    "tpu.trace_start"() <{level = 10 : i32, message = "bqk,bkd->bqd"}> : () -> ()
    %cst_32 = arith.constant dense<0.000000e+00> : vector<2x8x32xf32>
    %105 = tpu.matmul %104, %91, %cst_32 {dimension_numbers = #tpu.dot_dimension_numbers<[2], [1], [1], [2], [0, 0, 0, 1, 1, 2], [0], [0]>} : vector<2x8x8xbf16>, vector<2x8x32xbf16>, vector<2x8x32xf32> -> vector<2x8x32xf32>
    "tpu.trace_stop"() : () -> ()
    %106 = vector.extract_strided_slice %41 {offsets = [0, 0, 96], sizes = [2, 8, 32], strides = [1, 1, 1]} : vector<2x8x128xf32> to vector<2x8x32xf32>
    %107 = arith.truncf %106 : vector<2x8x32xf32> to vector<2x8x32xbf16>
    %108 = vector.extract_strided_slice %43 {offsets = [0, 0, 96], sizes = [2, 8, 32], strides = [1, 1, 1]} : vector<2x8x128xf32> to vector<2x8x32xf32>
    %109 = arith.truncf %108 : vector<2x8x32xf32> to vector<2x8x32xbf16>
    %110 = vector.extract_strided_slice %45 {offsets = [0, 0, 96], sizes = [2, 8, 32], strides = [1, 1, 1]} : vector<2x8x128xf32> to vector<2x8x32xf32>
    %111 = arith.truncf %110 : vector<2x8x32xf32> to vector<2x8x32xbf16>
    "tpu.trace_start"() <{level = 10 : i32, message = "bqd,bkd->bqk"}> : () -> ()
    %cst_33 = arith.constant dense<0.000000e+00> : vector<2x8x8xf32>
    %112 = tpu.matmul %107, %109, %cst_33 {dimension_numbers = #tpu.dot_dimension_numbers<[2], [2], [1], [1], [0, 0, 0, 1, 1, 1], [0], [0]>} : vector<2x8x32xbf16>, vector<2x8x32xbf16>, vector<2x8x8xf32> -> vector<2x8x8xf32>
    "tpu.trace_stop"() : () -> ()
    %113 = arith.addf %112, %6 : vector<2x8x8xf32>
    %cst_34 = arith.constant dense<0xFF800000> : vector<2x8xf32>
    %114 = vector.multi_reduction <maximumf>, %113, %cst_34 [2] : vector<2x8x8xf32> to vector<2x8xf32>
    %115 = vector.shape_cast %114 : vector<2x8xf32> to vector<2x8x1xf32>
    %116 = vector.broadcast %115 : vector<2x8x1xf32> to vector<2x8x8xf32>
    %117 = arith.subf %113, %116 : vector<2x8x8xf32>
    %118 = math.exp %117 : vector<2x8x8xf32>
    %cst_35 = arith.constant dense<0.000000e+00> : vector<2x8xf32>
    %119 = vector.multi_reduction <add>, %118, %cst_35 [2] : vector<2x8x8xf32> to vector<2x8xf32>
    %120 = vector.shape_cast %119 : vector<2x8xf32> to vector<2x8x1xf32>
    %121 = tpu.reciprocal %120 {approx = true} : vector<2x8x1xf32> -> vector<2x8x1xf32>
    %122 = vector.broadcast %121 : vector<2x8x1xf32> to vector<2x8x8xf32>
    %123 = arith.mulf %118, %122 : vector<2x8x8xf32>
    %124 = arith.truncf %123 : vector<2x8x8xf32> to vector<2x8x8xbf16>
    "tpu.trace_start"() <{level = 10 : i32, message = "bqk,bkd->bqd"}> : () -> ()
    %cst_36 = arith.constant dense<0.000000e+00> : vector<2x8x32xf32>
    %125 = tpu.matmul %124, %111, %cst_36 {dimension_numbers = #tpu.dot_dimension_numbers<[2], [1], [1], [2], [0, 0, 0, 1, 1, 2], [0], [0]>} : vector<2x8x8xbf16>, vector<2x8x32xbf16>, vector<2x8x32xf32> -> vector<2x8x32xf32>
    "tpu.trace_stop"() : () -> ()
    %126 = tpu.concatenate %65, %85, %105, %125 in 2 : vector<2x8x32xf32>, vector<2x8x32xf32>, vector<2x8x32xf32>, vector<2x8x32xf32> -> vector<2x8x128xf32>
    %127 = vector.shape_cast %126 : vector<2x8x128xf32> to vector<16x128xf32>
    %c0_37 = arith.constant 0 : index
    %c0_38 = arith.constant 0 : index
    %c0_39 = arith.constant 0 : index
    %128 = vector.load %arg6[%c0_37, %c0_38, %c0_39] : memref<2x128x128xbf16, #tpu.memory_space<vmem>>, vector<1x128x128xbf16>
    %129 = vector.shape_cast %128 : vector<1x128x128xbf16> to vector<128x128xbf16>
    %130 = arith.truncf %127 : vector<16x128xf32> to vector<16x128xbf16>
    %cst_40 = arith.constant dense<0.000000e+00> : vector<16x128xf32>
    %131 = tpu.matmul %130, %129, %cst_40 {dimension_numbers = #tpu.dot_dimension_numbers<[1], [0], [0], [1], [0, 0, 1, 1], [], []>} : vector<16x128xbf16>, vector<128x128xbf16>, vector<16x128xf32> -> vector<16x128xf32>
    %c0_41 = arith.constant 0 : index
    %c0_42 = arith.constant 0 : index
    %c0_43 = arith.constant 0 : index
    %132 = vector.load %arg7[%c0_41, %c0_42, %c0_43] : memref<2x1x128xf32, #tpu.memory_space<vmem>>, vector<1x1x128xf32>
    %133 = vector.shape_cast %132 : vector<1x1x128xf32> to vector<1x128xf32>
    %134 = vector.broadcast %133 : vector<1x128xf32> to vector<16x128xf32>
    %135 = arith.addf %131, %134 : vector<16x128xf32>
    %136 = arith.addf %135, %31 : vector<16x128xf32>
    %c0_44 = arith.constant 0 : index
    %c0_45 = arith.constant 0 : index
    %c0_46 = arith.constant 0 : index
    %137 = vector.load %arg8[%c0_44, %c0_45, %c0_46] : memref<2x1x128xf32, #tpu.memory_space<vmem>>, vector<1x1x128xf32>
    %138 = vector.shape_cast %137 : vector<1x1x128xf32> to vector<1x128xf32>
    %c0_47 = arith.constant 0 : index
    %c0_48 = arith.constant 0 : index
    %c0_49 = arith.constant 0 : index
    %139 = vector.load %arg9[%c0_47, %c0_48, %c0_49] : memref<2x1x128xf32, #tpu.memory_space<vmem>>, vector<1x1x128xf32>
    %140 = vector.shape_cast %139 : vector<1x1x128xf32> to vector<1x128xf32>
    %cst_50 = arith.constant dense<0.000000e+00> : vector<16xf32>
    %141 = vector.multi_reduction <add>, %136, %cst_50 [1] : vector<16x128xf32> to vector<16xf32>
    %142 = vector.shape_cast %141 : vector<16xf32> to vector<16x1xf32>
    %cst_51 = arith.constant 1.280000e+02 : f32
    %143 = vector.broadcast %cst_51 : f32 to vector<16x1xf32>
    %144 = arith.divf %142, %143 : vector<16x1xf32>
    %145 = vector.broadcast %144 : vector<16x1xf32> to vector<16x128xf32>
    %146 = arith.subf %136, %145 : vector<16x128xf32>
    %147 = arith.mulf %146, %146 : vector<16x128xf32>
    %cst_52 = arith.constant dense<0.000000e+00> : vector<16xf32>
    %148 = vector.multi_reduction <add>, %147, %cst_52 [1] : vector<16x128xf32> to vector<16xf32>
    %149 = vector.shape_cast %148 : vector<16xf32> to vector<16x1xf32>
    %cst_53 = arith.constant 1.280000e+02 : f32
    %150 = vector.broadcast %cst_53 : f32 to vector<16x1xf32>
    %151 = arith.divf %149, %150 : vector<16x1xf32>
    %152 = vector.broadcast %144 : vector<16x1xf32> to vector<16x128xf32>
    %153 = arith.subf %136, %152 : vector<16x128xf32>
    %cst_54 = arith.constant 9.99999996E-13 : f32
    %154 = vector.broadcast %cst_54 : f32 to vector<16x1xf32>
    %155 = arith.addf %151, %154 : vector<16x1xf32>
    %156 = math.rsqrt %155 : vector<16x1xf32>
    %157 = vector.broadcast %156 : vector<16x1xf32> to vector<16x128xf32>
    %158 = arith.mulf %153, %157 : vector<16x128xf32>
    %159 = vector.broadcast %138 : vector<1x128xf32> to vector<16x128xf32>
    %160 = arith.mulf %158, %159 : vector<16x128xf32>
    %161 = vector.broadcast %140 : vector<1x128xf32> to vector<16x128xf32>
    %162 = arith.addf %160, %161 : vector<16x128xf32>
    %c0_55 = arith.constant 0 : index
    %c0_56 = arith.constant 0 : index
    %c0_57 = arith.constant 0 : index
    %163 = vector.load %arg10[%c0_55, %c0_56, %c0_57] : memref<2x128x256xbf16, #tpu.memory_space<vmem>>, vector<1x128x256xbf16>
    %164 = vector.shape_cast %163 : vector<1x128x256xbf16> to vector<128x256xbf16>
    %165 = arith.truncf %162 : vector<16x128xf32> to vector<16x128xbf16>
    %cst_58 = arith.constant dense<0.000000e+00> : vector<16x256xf32>
    %166 = tpu.matmul %165, %164, %cst_58 {dimension_numbers = #tpu.dot_dimension_numbers<[1], [0], [0], [1], [0, 0, 1, 1], [], []>} : vector<16x128xbf16>, vector<128x256xbf16>, vector<16x256xf32> -> vector<16x256xf32>
    %c0_59 = arith.constant 0 : index
    %c0_60 = arith.constant 0 : index
    %c0_61 = arith.constant 0 : index
    %167 = vector.load %arg11[%c0_59, %c0_60, %c0_61] : memref<2x1x256xf32, #tpu.memory_space<vmem>>, vector<1x1x256xf32>
    %168 = vector.shape_cast %167 : vector<1x1x256xf32> to vector<1x256xf32>
    %169 = vector.broadcast %168 : vector<1x256xf32> to vector<16x256xf32>
    %170 = arith.addf %166, %169 : vector<16x256xf32>
    %cst_62 = arith.constant 5.000000e-01 : f32
    %171 = vector.broadcast %cst_62 : f32 to vector<16x256xf32>
    %172 = arith.mulf %171, %170 : vector<16x256xf32>
    %cst_63 = arith.constant 4.471500e-02 : f32
    %173 = vector.broadcast %cst_63 : f32 to vector<16x256xf32>
    %174 = arith.mulf %173, %170 : vector<16x256xf32>
    %175 = arith.mulf %174, %170 : vector<16x256xf32>
    %176 = arith.mulf %175, %170 : vector<16x256xf32>
    %177 = arith.addf %170, %176 : vector<16x256xf32>
    %cst_64 = arith.constant 0.797884583 : f32
    %178 = vector.broadcast %cst_64 : f32 to vector<16x256xf32>
    %179 = arith.mulf %178, %177 : vector<16x256xf32>
    %180 = math.tanh %179 : vector<16x256xf32>
    %cst_65 = arith.constant 1.000000e+00 : f32
    %181 = vector.broadcast %cst_65 : f32 to vector<16x256xf32>
    %182 = arith.addf %181, %180 : vector<16x256xf32>
    %183 = arith.mulf %172, %182 : vector<16x256xf32>
    %c0_66 = arith.constant 0 : index
    %c0_67 = arith.constant 0 : index
    %c0_68 = arith.constant 0 : index
    %184 = vector.load %arg12[%c0_66, %c0_67, %c0_68] : memref<2x256x128xbf16, #tpu.memory_space<vmem>>, vector<1x256x128xbf16>
    %185 = vector.shape_cast %184 : vector<1x256x128xbf16> to vector<256x128xbf16>
    %186 = arith.truncf %183 : vector<16x256xf32> to vector<16x256xbf16>
    %cst_69 = arith.constant dense<0.000000e+00> : vector<16x128xf32>
    %187 = tpu.matmul %186, %185, %cst_69 {dimension_numbers = #tpu.dot_dimension_numbers<[1], [0], [0], [1], [0, 0, 1, 1], [], []>} : vector<16x256xbf16>, vector<256x128xbf16>, vector<16x128xf32> -> vector<16x128xf32>
    %c0_70 = arith.constant 0 : index
    %c0_71 = arith.constant 0 : index
    %c0_72 = arith.constant 0 : index
    %188 = vector.load %arg13[%c0_70, %c0_71, %c0_72] : memref<2x1x128xf32, #tpu.memory_space<vmem>>, vector<1x1x128xf32>
    %189 = vector.shape_cast %188 : vector<1x1x128xf32> to vector<1x128xf32>
    %190 = vector.broadcast %189 : vector<1x128xf32> to vector<16x128xf32>
    %191 = arith.addf %187, %190 : vector<16x128xf32>
    %192 = arith.addf %191, %162 : vector<16x128xf32>
    %c0_73 = arith.constant 0 : index
    %c0_74 = arith.constant 0 : index
    %c0_75 = arith.constant 0 : index
    %193 = vector.load %arg14[%c0_73, %c0_74, %c0_75] : memref<2x1x128xf32, #tpu.memory_space<vmem>>, vector<1x1x128xf32>
    %194 = vector.shape_cast %193 : vector<1x1x128xf32> to vector<1x128xf32>
    %c0_76 = arith.constant 0 : index
    %c0_77 = arith.constant 0 : index
    %c0_78 = arith.constant 0 : index
    %195 = vector.load %arg15[%c0_76, %c0_77, %c0_78] : memref<2x1x128xf32, #tpu.memory_space<vmem>>, vector<1x1x128xf32>
    %196 = vector.shape_cast %195 : vector<1x1x128xf32> to vector<1x128xf32>
    %cst_79 = arith.constant dense<0.000000e+00> : vector<16xf32>
    %197 = vector.multi_reduction <add>, %192, %cst_79 [1] : vector<16x128xf32> to vector<16xf32>
    %198 = vector.shape_cast %197 : vector<16xf32> to vector<16x1xf32>
    %cst_80 = arith.constant 1.280000e+02 : f32
    %199 = vector.broadcast %cst_80 : f32 to vector<16x1xf32>
    %200 = arith.divf %198, %199 : vector<16x1xf32>
    %201 = vector.broadcast %200 : vector<16x1xf32> to vector<16x128xf32>
    %202 = arith.subf %192, %201 : vector<16x128xf32>
    %203 = arith.mulf %202, %202 : vector<16x128xf32>
    %cst_81 = arith.constant dense<0.000000e+00> : vector<16xf32>
    %204 = vector.multi_reduction <add>, %203, %cst_81 [1] : vector<16x128xf32> to vector<16xf32>
    %205 = vector.shape_cast %204 : vector<16xf32> to vector<16x1xf32>
    %cst_82 = arith.constant 1.280000e+02 : f32
    %206 = vector.broadcast %cst_82 : f32 to vector<16x1xf32>
    %207 = arith.divf %205, %206 : vector<16x1xf32>
    %208 = vector.broadcast %200 : vector<16x1xf32> to vector<16x128xf32>
    %209 = arith.subf %192, %208 : vector<16x128xf32>
    %cst_83 = arith.constant 9.99999996E-13 : f32
    %210 = vector.broadcast %cst_83 : f32 to vector<16x1xf32>
    %211 = arith.addf %207, %210 : vector<16x1xf32>
    %212 = math.rsqrt %211 : vector<16x1xf32>
    %213 = vector.broadcast %212 : vector<16x1xf32> to vector<16x128xf32>
    %214 = arith.mulf %209, %213 : vector<16x128xf32>
    %215 = vector.broadcast %194 : vector<1x128xf32> to vector<16x128xf32>
    %216 = arith.mulf %214, %215 : vector<16x128xf32>
    %217 = vector.broadcast %196 : vector<1x128xf32> to vector<16x128xf32>
    %218 = arith.addf %216, %217 : vector<16x128xf32>
    %c1 = arith.constant 1 : index
    %c0_84 = arith.constant 0 : index
    %c0_85 = arith.constant 0 : index
    %219 = vector.load %arg4[%c1, %c0_84, %c0_85] : memref<2x128x384xbf16, #tpu.memory_space<vmem>>, vector<1x128x384xbf16>
    %220 = vector.shape_cast %219 : vector<1x128x384xbf16> to vector<128x384xbf16>
    %221 = arith.truncf %218 : vector<16x128xf32> to vector<16x128xbf16>
    %cst_86 = arith.constant dense<0.000000e+00> : vector<16x384xf32>
    %222 = tpu.matmul %221, %220, %cst_86 {dimension_numbers = #tpu.dot_dimension_numbers<[1], [0], [0], [1], [0, 0, 1, 1], [], []>} : vector<16x128xbf16>, vector<128x384xbf16>, vector<16x384xf32> -> vector<16x384xf32>
    %c1_87 = arith.constant 1 : index
    %c0_88 = arith.constant 0 : index
    %c0_89 = arith.constant 0 : index
    %223 = vector.load %arg5[%c1_87, %c0_88, %c0_89] : memref<2x1x384xf32, #tpu.memory_space<vmem>>, vector<1x1x384xf32>
    %224 = vector.shape_cast %223 : vector<1x1x384xf32> to vector<1x384xf32>
    %225 = vector.broadcast %224 : vector<1x384xf32> to vector<16x384xf32>
    %226 = arith.addf %222, %225 : vector<16x384xf32>
    %227 = vector.extract_strided_slice %226 {offsets = [0, 0], sizes = [16, 128], strides = [1, 1]} : vector<16x384xf32> to vector<16x128xf32>
    %228 = vector.shape_cast %227 : vector<16x128xf32> to vector<2x8x128xf32>
    %229 = vector.extract_strided_slice %226 {offsets = [0, 128], sizes = [16, 128], strides = [1, 1]} : vector<16x384xf32> to vector<16x128xf32>
    %230 = vector.shape_cast %229 : vector<16x128xf32> to vector<2x8x128xf32>
    %231 = vector.extract_strided_slice %226 {offsets = [0, 256], sizes = [16, 128], strides = [1, 1]} : vector<16x384xf32> to vector<16x128xf32>
    %232 = vector.shape_cast %231 : vector<16x128xf32> to vector<2x8x128xf32>
    %233 = vector.extract_strided_slice %228 {offsets = [0, 0, 0], sizes = [2, 8, 32], strides = [1, 1, 1]} : vector<2x8x128xf32> to vector<2x8x32xf32>
    %234 = arith.truncf %233 : vector<2x8x32xf32> to vector<2x8x32xbf16>
    %235 = vector.extract_strided_slice %230 {offsets = [0, 0, 0], sizes = [2, 8, 32], strides = [1, 1, 1]} : vector<2x8x128xf32> to vector<2x8x32xf32>
    %236 = arith.truncf %235 : vector<2x8x32xf32> to vector<2x8x32xbf16>
    %237 = vector.extract_strided_slice %232 {offsets = [0, 0, 0], sizes = [2, 8, 32], strides = [1, 1, 1]} : vector<2x8x128xf32> to vector<2x8x32xf32>
    %238 = arith.truncf %237 : vector<2x8x32xf32> to vector<2x8x32xbf16>
    "tpu.trace_start"() <{level = 10 : i32, message = "bqd,bkd->bqk"}> : () -> ()
    %cst_90 = arith.constant dense<0.000000e+00> : vector<2x8x8xf32>
    %239 = tpu.matmul %234, %236, %cst_90 {dimension_numbers = #tpu.dot_dimension_numbers<[2], [2], [1], [1], [0, 0, 0, 1, 1, 1], [0], [0]>} : vector<2x8x32xbf16>, vector<2x8x32xbf16>, vector<2x8x8xf32> -> vector<2x8x8xf32>
    "tpu.trace_stop"() : () -> ()
    %240 = arith.addf %239, %6 : vector<2x8x8xf32>
    %cst_91 = arith.constant dense<0xFF800000> : vector<2x8xf32>
    %241 = vector.multi_reduction <maximumf>, %240, %cst_91 [2] : vector<2x8x8xf32> to vector<2x8xf32>
    %242 = vector.shape_cast %241 : vector<2x8xf32> to vector<2x8x1xf32>
    %243 = vector.broadcast %242 : vector<2x8x1xf32> to vector<2x8x8xf32>
    %244 = arith.subf %240, %243 : vector<2x8x8xf32>
    %245 = math.exp %244 : vector<2x8x8xf32>
    %cst_92 = arith.constant dense<0.000000e+00> : vector<2x8xf32>
    %246 = vector.multi_reduction <add>, %245, %cst_92 [2] : vector<2x8x8xf32> to vector<2x8xf32>
    %247 = vector.shape_cast %246 : vector<2x8xf32> to vector<2x8x1xf32>
    %248 = tpu.reciprocal %247 {approx = true} : vector<2x8x1xf32> -> vector<2x8x1xf32>
    %249 = vector.broadcast %248 : vector<2x8x1xf32> to vector<2x8x8xf32>
    %250 = arith.mulf %245, %249 : vector<2x8x8xf32>
    %251 = arith.truncf %250 : vector<2x8x8xf32> to vector<2x8x8xbf16>
    "tpu.trace_start"() <{level = 10 : i32, message = "bqk,bkd->bqd"}> : () -> ()
    %cst_93 = arith.constant dense<0.000000e+00> : vector<2x8x32xf32>
    %252 = tpu.matmul %251, %238, %cst_93 {dimension_numbers = #tpu.dot_dimension_numbers<[2], [1], [1], [2], [0, 0, 0, 1, 1, 2], [0], [0]>} : vector<2x8x8xbf16>, vector<2x8x32xbf16>, vector<2x8x32xf32> -> vector<2x8x32xf32>
    "tpu.trace_stop"() : () -> ()
    %253 = vector.extract_strided_slice %228 {offsets = [0, 0, 32], sizes = [2, 8, 32], strides = [1, 1, 1]} : vector<2x8x128xf32> to vector<2x8x32xf32>
    %254 = arith.truncf %253 : vector<2x8x32xf32> to vector<2x8x32xbf16>
    %255 = vector.extract_strided_slice %230 {offsets = [0, 0, 32], sizes = [2, 8, 32], strides = [1, 1, 1]} : vector<2x8x128xf32> to vector<2x8x32xf32>
    %256 = arith.truncf %255 : vector<2x8x32xf32> to vector<2x8x32xbf16>
    %257 = vector.extract_strided_slice %232 {offsets = [0, 0, 32], sizes = [2, 8, 32], strides = [1, 1, 1]} : vector<2x8x128xf32> to vector<2x8x32xf32>
    %258 = arith.truncf %257 : vector<2x8x32xf32> to vector<2x8x32xbf16>
    "tpu.trace_start"() <{level = 10 : i32, message = "bqd,bkd->bqk"}> : () -> ()
    %cst_94 = arith.constant dense<0.000000e+00> : vector<2x8x8xf32>
    %259 = tpu.matmul %254, %256, %cst_94 {dimension_numbers = #tpu.dot_dimension_numbers<[2], [2], [1], [1], [0, 0, 0, 1, 1, 1], [0], [0]>} : vector<2x8x32xbf16>, vector<2x8x32xbf16>, vector<2x8x8xf32> -> vector<2x8x8xf32>
    "tpu.trace_stop"() : () -> ()
    %260 = arith.addf %259, %6 : vector<2x8x8xf32>
    %cst_95 = arith.constant dense<0xFF800000> : vector<2x8xf32>
    %261 = vector.multi_reduction <maximumf>, %260, %cst_95 [2] : vector<2x8x8xf32> to vector<2x8xf32>
    %262 = vector.shape_cast %261 : vector<2x8xf32> to vector<2x8x1xf32>
    %263 = vector.broadcast %262 : vector<2x8x1xf32> to vector<2x8x8xf32>
    %264 = arith.subf %260, %263 : vector<2x8x8xf32>
    %265 = math.exp %264 : vector<2x8x8xf32>
    %cst_96 = arith.constant dense<0.000000e+00> : vector<2x8xf32>
    %266 = vector.multi_reduction <add>, %265, %cst_96 [2] : vector<2x8x8xf32> to vector<2x8xf32>
    %267 = vector.shape_cast %266 : vector<2x8xf32> to vector<2x8x1xf32>
    %268 = tpu.reciprocal %267 {approx = true} : vector<2x8x1xf32> -> vector<2x8x1xf32>
    %269 = vector.broadcast %268 : vector<2x8x1xf32> to vector<2x8x8xf32>
    %270 = arith.mulf %265, %269 : vector<2x8x8xf32>
    %271 = arith.truncf %270 : vector<2x8x8xf32> to vector<2x8x8xbf16>
    "tpu.trace_start"() <{level = 10 : i32, message = "bqk,bkd->bqd"}> : () -> ()
    %cst_97 = arith.constant dense<0.000000e+00> : vector<2x8x32xf32>
    %272 = tpu.matmul %271, %258, %cst_97 {dimension_numbers = #tpu.dot_dimension_numbers<[2], [1], [1], [2], [0, 0, 0, 1, 1, 2], [0], [0]>} : vector<2x8x8xbf16>, vector<2x8x32xbf16>, vector<2x8x32xf32> -> vector<2x8x32xf32>
    "tpu.trace_stop"() : () -> ()
    %273 = vector.extract_strided_slice %228 {offsets = [0, 0, 64], sizes = [2, 8, 32], strides = [1, 1, 1]} : vector<2x8x128xf32> to vector<2x8x32xf32>
    %274 = arith.truncf %273 : vector<2x8x32xf32> to vector<2x8x32xbf16>
    %275 = vector.extract_strided_slice %230 {offsets = [0, 0, 64], sizes = [2, 8, 32], strides = [1, 1, 1]} : vector<2x8x128xf32> to vector<2x8x32xf32>
    %276 = arith.truncf %275 : vector<2x8x32xf32> to vector<2x8x32xbf16>
    %277 = vector.extract_strided_slice %232 {offsets = [0, 0, 64], sizes = [2, 8, 32], strides = [1, 1, 1]} : vector<2x8x128xf32> to vector<2x8x32xf32>
    %278 = arith.truncf %277 : vector<2x8x32xf32> to vector<2x8x32xbf16>
    "tpu.trace_start"() <{level = 10 : i32, message = "bqd,bkd->bqk"}> : () -> ()
    %cst_98 = arith.constant dense<0.000000e+00> : vector<2x8x8xf32>
    %279 = tpu.matmul %274, %276, %cst_98 {dimension_numbers = #tpu.dot_dimension_numbers<[2], [2], [1], [1], [0, 0, 0, 1, 1, 1], [0], [0]>} : vector<2x8x32xbf16>, vector<2x8x32xbf16>, vector<2x8x8xf32> -> vector<2x8x8xf32>
    "tpu.trace_stop"() : () -> ()
    %280 = arith.addf %279, %6 : vector<2x8x8xf32>
    %cst_99 = arith.constant dense<0xFF800000> : vector<2x8xf32>
    %281 = vector.multi_reduction <maximumf>, %280, %cst_99 [2] : vector<2x8x8xf32> to vector<2x8xf32>
    %282 = vector.shape_cast %281 : vector<2x8xf32> to vector<2x8x1xf32>
    %283 = vector.broadcast %282 : vector<2x8x1xf32> to vector<2x8x8xf32>
    %284 = arith.subf %280, %283 : vector<2x8x8xf32>
    %285 = math.exp %284 : vector<2x8x8xf32>
    %cst_100 = arith.constant dense<0.000000e+00> : vector<2x8xf32>
    %286 = vector.multi_reduction <add>, %285, %cst_100 [2] : vector<2x8x8xf32> to vector<2x8xf32>
    %287 = vector.shape_cast %286 : vector<2x8xf32> to vector<2x8x1xf32>
    %288 = tpu.reciprocal %287 {approx = true} : vector<2x8x1xf32> -> vector<2x8x1xf32>
    %289 = vector.broadcast %288 : vector<2x8x1xf32> to vector<2x8x8xf32>
    %290 = arith.mulf %285, %289 : vector<2x8x8xf32>
    %291 = arith.truncf %290 : vector<2x8x8xf32> to vector<2x8x8xbf16>
    "tpu.trace_start"() <{level = 10 : i32, message = "bqk,bkd->bqd"}> : () -> ()
    %cst_101 = arith.constant dense<0.000000e+00> : vector<2x8x32xf32>
    %292 = tpu.matmul %291, %278, %cst_101 {dimension_numbers = #tpu.dot_dimension_numbers<[2], [1], [1], [2], [0, 0, 0, 1, 1, 2], [0], [0]>} : vector<2x8x8xbf16>, vector<2x8x32xbf16>, vector<2x8x32xf32> -> vector<2x8x32xf32>
    "tpu.trace_stop"() : () -> ()
    %293 = vector.extract_strided_slice %228 {offsets = [0, 0, 96], sizes = [2, 8, 32], strides = [1, 1, 1]} : vector<2x8x128xf32> to vector<2x8x32xf32>
    %294 = arith.truncf %293 : vector<2x8x32xf32> to vector<2x8x32xbf16>
    %295 = vector.extract_strided_slice %230 {offsets = [0, 0, 96], sizes = [2, 8, 32], strides = [1, 1, 1]} : vector<2x8x128xf32> to vector<2x8x32xf32>
    %296 = arith.truncf %295 : vector<2x8x32xf32> to vector<2x8x32xbf16>
    %297 = vector.extract_strided_slice %232 {offsets = [0, 0, 96], sizes = [2, 8, 32], strides = [1, 1, 1]} : vector<2x8x128xf32> to vector<2x8x32xf32>
    %298 = arith.truncf %297 : vector<2x8x32xf32> to vector<2x8x32xbf16>
    "tpu.trace_start"() <{level = 10 : i32, message = "bqd,bkd->bqk"}> : () -> ()
    %cst_102 = arith.constant dense<0.000000e+00> : vector<2x8x8xf32>
    %299 = tpu.matmul %294, %296, %cst_102 {dimension_numbers = #tpu.dot_dimension_numbers<[2], [2], [1], [1], [0, 0, 0, 1, 1, 1], [0], [0]>} : vector<2x8x32xbf16>, vector<2x8x32xbf16>, vector<2x8x8xf32> -> vector<2x8x8xf32>
    "tpu.trace_stop"() : () -> ()
    %300 = arith.addf %299, %6 : vector<2x8x8xf32>
    %cst_103 = arith.constant dense<0xFF800000> : vector<2x8xf32>
    %301 = vector.multi_reduction <maximumf>, %300, %cst_103 [2] : vector<2x8x8xf32> to vector<2x8xf32>
    %302 = vector.shape_cast %301 : vector<2x8xf32> to vector<2x8x1xf32>
    %303 = vector.broadcast %302 : vector<2x8x1xf32> to vector<2x8x8xf32>
    %304 = arith.subf %300, %303 : vector<2x8x8xf32>
    %305 = math.exp %304 : vector<2x8x8xf32>
    %cst_104 = arith.constant dense<0.000000e+00> : vector<2x8xf32>
    %306 = vector.multi_reduction <add>, %305, %cst_104 [2] : vector<2x8x8xf32> to vector<2x8xf32>
    %307 = vector.shape_cast %306 : vector<2x8xf32> to vector<2x8x1xf32>
    %308 = tpu.reciprocal %307 {approx = true} : vector<2x8x1xf32> -> vector<2x8x1xf32>
    %309 = vector.broadcast %308 : vector<2x8x1xf32> to vector<2x8x8xf32>
    %310 = arith.mulf %305, %309 : vector<2x8x8xf32>
    %311 = arith.truncf %310 : vector<2x8x8xf32> to vector<2x8x8xbf16>
    "tpu.trace_start"() <{level = 10 : i32, message = "bqk,bkd->bqd"}> : () -> ()
    %cst_105 = arith.constant dense<0.000000e+00> : vector<2x8x32xf32>
    %312 = tpu.matmul %311, %298, %cst_105 {dimension_numbers = #tpu.dot_dimension_numbers<[2], [1], [1], [2], [0, 0, 0, 1, 1, 2], [0], [0]>} : vector<2x8x8xbf16>, vector<2x8x32xbf16>, vector<2x8x32xf32> -> vector<2x8x32xf32>
    "tpu.trace_stop"() : () -> ()
    %313 = tpu.concatenate %252, %272, %292, %312 in 2 : vector<2x8x32xf32>, vector<2x8x32xf32>, vector<2x8x32xf32>, vector<2x8x32xf32> -> vector<2x8x128xf32>
    %314 = vector.shape_cast %313 : vector<2x8x128xf32> to vector<16x128xf32>
    %c1_106 = arith.constant 1 : index
    %c0_107 = arith.constant 0 : index
    %c0_108 = arith.constant 0 : index
    %315 = vector.load %arg6[%c1_106, %c0_107, %c0_108] : memref<2x128x128xbf16, #tpu.memory_space<vmem>>, vector<1x128x128xbf16>
    %316 = vector.shape_cast %315 : vector<1x128x128xbf16> to vector<128x128xbf16>
    %317 = arith.truncf %314 : vector<16x128xf32> to vector<16x128xbf16>
    %cst_109 = arith.constant dense<0.000000e+00> : vector<16x128xf32>
    %318 = tpu.matmul %317, %316, %cst_109 {dimension_numbers = #tpu.dot_dimension_numbers<[1], [0], [0], [1], [0, 0, 1, 1], [], []>} : vector<16x128xbf16>, vector<128x128xbf16>, vector<16x128xf32> -> vector<16x128xf32>
    %c1_110 = arith.constant 1 : index
    %c0_111 = arith.constant 0 : index
    %c0_112 = arith.constant 0 : index
    %319 = vector.load %arg7[%c1_110, %c0_111, %c0_112] : memref<2x1x128xf32, #tpu.memory_space<vmem>>, vector<1x1x128xf32>
    %320 = vector.shape_cast %319 : vector<1x1x128xf32> to vector<1x128xf32>
    %321 = vector.broadcast %320 : vector<1x128xf32> to vector<16x128xf32>
    %322 = arith.addf %318, %321 : vector<16x128xf32>
    %323 = arith.addf %322, %218 : vector<16x128xf32>
    %c1_113 = arith.constant 1 : index
    %c0_114 = arith.constant 0 : index
    %c0_115 = arith.constant 0 : index
    %324 = vector.load %arg8[%c1_113, %c0_114, %c0_115] : memref<2x1x128xf32, #tpu.memory_space<vmem>>, vector<1x1x128xf32>
    %325 = vector.shape_cast %324 : vector<1x1x128xf32> to vector<1x128xf32>
    %c1_116 = arith.constant 1 : index
    %c0_117 = arith.constant 0 : index
    %c0_118 = arith.constant 0 : index
    %326 = vector.load %arg9[%c1_116, %c0_117, %c0_118] : memref<2x1x128xf32, #tpu.memory_space<vmem>>, vector<1x1x128xf32>
    %327 = vector.shape_cast %326 : vector<1x1x128xf32> to vector<1x128xf32>
    %cst_119 = arith.constant dense<0.000000e+00> : vector<16xf32>
    %328 = vector.multi_reduction <add>, %323, %cst_119 [1] : vector<16x128xf32> to vector<16xf32>
    %329 = vector.shape_cast %328 : vector<16xf32> to vector<16x1xf32>
    %cst_120 = arith.constant 1.280000e+02 : f32
    %330 = vector.broadcast %cst_120 : f32 to vector<16x1xf32>
    %331 = arith.divf %329, %330 : vector<16x1xf32>
    %332 = vector.broadcast %331 : vector<16x1xf32> to vector<16x128xf32>
    %333 = arith.subf %323, %332 : vector<16x128xf32>
    %334 = arith.mulf %333, %333 : vector<16x128xf32>
    %cst_121 = arith.constant dense<0.000000e+00> : vector<16xf32>
    %335 = vector.multi_reduction <add>, %334, %cst_121 [1] : vector<16x128xf32> to vector<16xf32>
    %336 = vector.shape_cast %335 : vector<16xf32> to vector<16x1xf32>
    %cst_122 = arith.constant 1.280000e+02 : f32
    %337 = vector.broadcast %cst_122 : f32 to vector<16x1xf32>
    %338 = arith.divf %336, %337 : vector<16x1xf32>
    %339 = vector.broadcast %331 : vector<16x1xf32> to vector<16x128xf32>
    %340 = arith.subf %323, %339 : vector<16x128xf32>
    %cst_123 = arith.constant 9.99999996E-13 : f32
    %341 = vector.broadcast %cst_123 : f32 to vector<16x1xf32>
    %342 = arith.addf %338, %341 : vector<16x1xf32>
    %343 = math.rsqrt %342 : vector<16x1xf32>
    %344 = vector.broadcast %343 : vector<16x1xf32> to vector<16x128xf32>
    %345 = arith.mulf %340, %344 : vector<16x128xf32>
    %346 = vector.broadcast %325 : vector<1x128xf32> to vector<16x128xf32>
    %347 = arith.mulf %345, %346 : vector<16x128xf32>
    %348 = vector.broadcast %327 : vector<1x128xf32> to vector<16x128xf32>
    %349 = arith.addf %347, %348 : vector<16x128xf32>
    %c1_124 = arith.constant 1 : index
    %c0_125 = arith.constant 0 : index
    %c0_126 = arith.constant 0 : index
    %350 = vector.load %arg10[%c1_124, %c0_125, %c0_126] : memref<2x128x256xbf16, #tpu.memory_space<vmem>>, vector<1x128x256xbf16>
    %351 = vector.shape_cast %350 : vector<1x128x256xbf16> to vector<128x256xbf16>
    %352 = arith.truncf %349 : vector<16x128xf32> to vector<16x128xbf16>
    %cst_127 = arith.constant dense<0.000000e+00> : vector<16x256xf32>
    %353 = tpu.matmul %352, %351, %cst_127 {dimension_numbers = #tpu.dot_dimension_numbers<[1], [0], [0], [1], [0, 0, 1, 1], [], []>} : vector<16x128xbf16>, vector<128x256xbf16>, vector<16x256xf32> -> vector<16x256xf32>
    %c1_128 = arith.constant 1 : index
    %c0_129 = arith.constant 0 : index
    %c0_130 = arith.constant 0 : index
    %354 = vector.load %arg11[%c1_128, %c0_129, %c0_130] : memref<2x1x256xf32, #tpu.memory_space<vmem>>, vector<1x1x256xf32>
    %355 = vector.shape_cast %354 : vector<1x1x256xf32> to vector<1x256xf32>
    %356 = vector.broadcast %355 : vector<1x256xf32> to vector<16x256xf32>
    %357 = arith.addf %353, %356 : vector<16x256xf32>
    %cst_131 = arith.constant 5.000000e-01 : f32
    %358 = vector.broadcast %cst_131 : f32 to vector<16x256xf32>
    %359 = arith.mulf %358, %357 : vector<16x256xf32>
    %cst_132 = arith.constant 4.471500e-02 : f32
    %360 = vector.broadcast %cst_132 : f32 to vector<16x256xf32>
    %361 = arith.mulf %360, %357 : vector<16x256xf32>
    %362 = arith.mulf %361, %357 : vector<16x256xf32>
    %363 = arith.mulf %362, %357 : vector<16x256xf32>
    %364 = arith.addf %357, %363 : vector<16x256xf32>
    %cst_133 = arith.constant 0.797884583 : f32
    %365 = vector.broadcast %cst_133 : f32 to vector<16x256xf32>
    %366 = arith.mulf %365, %364 : vector<16x256xf32>
    %367 = math.tanh %366 : vector<16x256xf32>
    %cst_134 = arith.constant 1.000000e+00 : f32
    %368 = vector.broadcast %cst_134 : f32 to vector<16x256xf32>
    %369 = arith.addf %368, %367 : vector<16x256xf32>
    %370 = arith.mulf %359, %369 : vector<16x256xf32>
    %c1_135 = arith.constant 1 : index
    %c0_136 = arith.constant 0 : index
    %c0_137 = arith.constant 0 : index
    %371 = vector.load %arg12[%c1_135, %c0_136, %c0_137] : memref<2x256x128xbf16, #tpu.memory_space<vmem>>, vector<1x256x128xbf16>
    %372 = vector.shape_cast %371 : vector<1x256x128xbf16> to vector<256x128xbf16>
    %373 = arith.truncf %370 : vector<16x256xf32> to vector<16x256xbf16>
    %cst_138 = arith.constant dense<0.000000e+00> : vector<16x128xf32>
    %374 = tpu.matmul %373, %372, %cst_138 {dimension_numbers = #tpu.dot_dimension_numbers<[1], [0], [0], [1], [0, 0, 1, 1], [], []>} : vector<16x256xbf16>, vector<256x128xbf16>, vector<16x128xf32> -> vector<16x128xf32>
    %c1_139 = arith.constant 1 : index
    %c0_140 = arith.constant 0 : index
    %c0_141 = arith.constant 0 : index
    %375 = vector.load %arg13[%c1_139, %c0_140, %c0_141] : memref<2x1x128xf32, #tpu.memory_space<vmem>>, vector<1x1x128xf32>
    %376 = vector.shape_cast %375 : vector<1x1x128xf32> to vector<1x128xf32>
    %377 = vector.broadcast %376 : vector<1x128xf32> to vector<16x128xf32>
    %378 = arith.addf %374, %377 : vector<16x128xf32>
    %379 = arith.addf %378, %349 : vector<16x128xf32>
    %c1_142 = arith.constant 1 : index
    %c0_143 = arith.constant 0 : index
    %c0_144 = arith.constant 0 : index
    %380 = vector.load %arg14[%c1_142, %c0_143, %c0_144] : memref<2x1x128xf32, #tpu.memory_space<vmem>>, vector<1x1x128xf32>
    %381 = vector.shape_cast %380 : vector<1x1x128xf32> to vector<1x128xf32>
    %c1_145 = arith.constant 1 : index
    %c0_146 = arith.constant 0 : index
    %c0_147 = arith.constant 0 : index
    %382 = vector.load %arg15[%c1_145, %c0_146, %c0_147] : memref<2x1x128xf32, #tpu.memory_space<vmem>>, vector<1x1x128xf32>
    %383 = vector.shape_cast %382 : vector<1x1x128xf32> to vector<1x128xf32>
    %cst_148 = arith.constant dense<0.000000e+00> : vector<16xf32>
    %384 = vector.multi_reduction <add>, %379, %cst_148 [1] : vector<16x128xf32> to vector<16xf32>
    %385 = vector.shape_cast %384 : vector<16xf32> to vector<16x1xf32>
    %cst_149 = arith.constant 1.280000e+02 : f32
    %386 = vector.broadcast %cst_149 : f32 to vector<16x1xf32>
    %387 = arith.divf %385, %386 : vector<16x1xf32>
    %388 = vector.broadcast %387 : vector<16x1xf32> to vector<16x128xf32>
    %389 = arith.subf %379, %388 : vector<16x128xf32>
    %390 = arith.mulf %389, %389 : vector<16x128xf32>
    %cst_150 = arith.constant dense<0.000000e+00> : vector<16xf32>
    %391 = vector.multi_reduction <add>, %390, %cst_150 [1] : vector<16x128xf32> to vector<16xf32>
    %392 = vector.shape_cast %391 : vector<16xf32> to vector<16x1xf32>
    %cst_151 = arith.constant 1.280000e+02 : f32
    %393 = vector.broadcast %cst_151 : f32 to vector<16x1xf32>
    %394 = arith.divf %392, %393 : vector<16x1xf32>
    %395 = vector.broadcast %387 : vector<16x1xf32> to vector<16x128xf32>
    %396 = arith.subf %379, %395 : vector<16x128xf32>
    %cst_152 = arith.constant 9.99999996E-13 : f32
    %397 = vector.broadcast %cst_152 : f32 to vector<16x1xf32>
    %398 = arith.addf %394, %397 : vector<16x1xf32>
    %399 = math.rsqrt %398 : vector<16x1xf32>
    %400 = vector.broadcast %399 : vector<16x1xf32> to vector<16x128xf32>
    %401 = arith.mulf %396, %400 : vector<16x128xf32>
    %402 = vector.broadcast %381 : vector<1x128xf32> to vector<16x128xf32>
    %403 = arith.mulf %401, %402 : vector<16x128xf32>
    %404 = vector.broadcast %383 : vector<1x128xf32> to vector<16x128xf32>
    %405 = arith.addf %403, %404 : vector<16x128xf32>
    %c0_153 = arith.constant 0 : index
    %c0_154 = arith.constant 0 : index
    %406 = vector.load %arg22[%c0_153, %c0_154] : memref<16x128xf32, #tpu.memory_space<vmem>>, vector<16x128xf32>
    tpu.vector_store %arg22[%c0_153, %c0_154], %405 {strides = array<i32>} : memref<16x128xf32, #tpu.memory_space<vmem>>, vector<16x128xf32>,
    %407 = vector.extract_strided_slice %405 {offsets = [0, 0], sizes = [1, 128], strides = [1, 1]} : vector<16x128xf32> to vector<1x128xf32>
    %408 = vector.extract_strided_slice %405 {offsets = [8, 0], sizes = [1, 128], strides = [1, 1]} : vector<16x128xf32> to vector<1x128xf32>
    %409 = tpu.concatenate %407, %408 in 0 : vector<1x128xf32>, vector<1x128xf32> -> vector<2x128xf32>
    %c0_155 = arith.constant 0 : index
    %c0_156 = arith.constant 0 : index
    %410 = vector.load %arg16[%c0_155, %c0_156] : memref<128x128xbf16, #tpu.memory_space<vmem>>, vector<128x128xbf16>
    %411 = arith.truncf %409 : vector<2x128xf32> to vector<2x128xbf16>
    %cst_157 = arith.constant dense<0.000000e+00> : vector<2x128xf32>
    %412 = tpu.matmul %411, %410, %cst_157 {dimension_numbers = #tpu.dot_dimension_numbers<[1], [0], [0], [1], [0, 0, 1, 1], [], []>} : vector<2x128xbf16>, vector<128x128xbf16>, vector<2x128xf32> -> vector<2x128xf32>
    %c0_158 = arith.constant 0 : index
    %c0_159 = arith.constant 0 : index
    %413 = vector.load %arg17[%c0_158, %c0_159] : memref<1x128xf32, #tpu.memory_space<vmem>>, vector<1x128xf32>
    %414 = vector.broadcast %413 : vector<1x128xf32> to vector<2x128xf32>
    %415 = arith.addf %412, %414 : vector<2x128xf32>
    %416 = math.tanh %415 : vector<2x128xf32>
    %c0_160 = arith.constant 0 : index
    %c0_161 = arith.constant 0 : index
    %417 = vector.load %arg18[%c0_160, %c0_161] : memref<128x64xbf16, #tpu.memory_space<vmem>>, vector<128x64xbf16>
    %418 = arith.truncf %416 : vector<2x128xf32> to vector<2x128xbf16>
    %cst_162 = arith.constant dense<0.000000e+00> : vector<2x64xf32>
    %419 = tpu.matmul %418, %417, %cst_162 {dimension_numbers = #tpu.dot_dimension_numbers<[1], [0], [0], [1], [0, 0, 1, 1], [], []>} : vector<2x128xbf16>, vector<128x64xbf16>, vector<2x64xf32> -> vector<2x64xf32>
    %c0_163 = arith.constant 0 : index
    %c0_164 = arith.constant 0 : index
    %420 = vector.load %arg19[%c0_163, %c0_164] : memref<1x64xf32, #tpu.memory_space<vmem>>, vector<1x64xf32>
    %421 = vector.broadcast %420 : vector<1x64xf32> to vector<2x64xf32>
    %422 = arith.addf %419, %421 : vector<2x64xf32>
    %cst_165 = arith.constant 0.000000e+00 : f32
    %423 = vector.broadcast %cst_165 : f32 to vector<2x64xf32>
    %424 = arith.maximumf %422, %423 : vector<2x64xf32>
    %c0_166 = arith.constant 0 : index
    %c0_167 = arith.constant 0 : index
    %425 = vector.load %arg20[%c0_166, %c0_167] : memref<64x128xbf16, #tpu.memory_space<vmem>>, vector<64x128xbf16>
    %426 = arith.truncf %424 : vector<2x64xf32> to vector<2x64xbf16>
    %cst_168 = arith.constant dense<0.000000e+00> : vector<2x128xf32>
    %427 = tpu.matmul %426, %425, %cst_168 {dimension_numbers = #tpu.dot_dimension_numbers<[1], [0], [0], [1], [0, 0, 1, 1], [], []>} : vector<2x64xbf16>, vector<64x128xbf16>, vector<2x128xf32> -> vector<2x128xf32>
    %c0_169 = arith.constant 0 : index
    %c0_170 = arith.constant 0 : index
    %428 = vector.load %arg21[%c0_169, %c0_170] : memref<1x128xf32, #tpu.memory_space<vmem>>, vector<1x128xf32>
    %429 = vector.broadcast %428 : vector<1x128xf32> to vector<2x128xf32>
    %430 = arith.addf %427, %429 : vector<2x128xf32>
    %c0_171 = arith.constant 0 : index
    %c0_172 = arith.constant 0 : index
    %431 = vector.load %arg23[%c0_171, %c0_172] : memref<2x128xf32, #tpu.memory_space<vmem>>, vector<2x128xf32>
    tpu.vector_store %arg23[%c0_171, %c0_172], %430 {strides = array<i32>} : memref<2x128xf32, #tpu.memory_space<vmem>>, vector<2x128xf32>,
    return
  }
}

</mosaic_0001>

<bundles_post_ra>
// kernel: bertc_forward.1
= control target key start
LH: loop header
LB: loop body
LE: loop exit
PB: predicated region body
PF: predicated region fallthrough
CT: control target
= control target key end

     0   :  { %s5143_s0 = inlined_call_operand.vmem [shape: f32[16,128], index: 0, kind: input, shape index: {}]   ;;  %s5144_s1 = inlined_call_operand.vmem [shape: s32[2,1,1], index: 1, kind: input, shape index: {}]   ;;  %s5145_s2 = inlined_call_operand.vmem [shape: f32[1,128], index: 2, kind: input, shape index: {}]   ;;  %s5146_s3 = inlined_call_operand.vmem [shape: f32[1,128], index: 3, kind: input, shape index: {}]   ;;  %s5147_s4 = inlined_call_operand.vmem [shape: bf16[2,128,384], index: 4, kind: input, shape index: {}]   ;;  %s5148_s5 = inlined_call_operand.vmem [shape: f32[2,1,384], index: 5, kind: input, shape index: {}]   ;;  %s5149_s6 = inlined_call_operand.vmem [shape: bf16[2,128,128], index: 6, kind: input, shape index: {}]   ;;  %s5150_s7 = inlined_call_operand.vmem [shape: f32[2,1,128], index: 7, kind: input, shape index: {}]   ;;  %s5151_s8 = inlined_call_operand.vmem [shape: f32[2,1,128], index: 8, kind: input, shape index: {}]   ;;  %s5152_s9 = inlined_call_operand.vmem [shape: f32[2,1,128], index: 9, kind: input, shape index: {}]   ;;  %s5153_s10 = inlined_call_operand.vmem [shape: bf16[2,128,256], index: 10, kind: input, shape index: {}]   ;;  %s5154_s11 = inlined_call_operand.vmem [shape: f32[2,1,256], index: 11, kind: input, shape index: {}]   ;;  %s5155_s12 = inlined_call_operand.vmem [shape: bf16[2,256,128], index: 12, kind: input, shape index: {}]   ;;  %s5156_s13 = inlined_call_operand.vmem [shape: f32[2,1,128], index: 13, kind: input, shape index: {}]   ;;  %s5157_s14 = inlined_call_operand.vmem [shape: f32[2,1,128], index: 14, kind: input, shape index: {}]   ;;  %s5158_s15 = inlined_call_operand.vmem [shape: f32[2,1,128], index: 15, kind: input, shape index: {}]   ;;  %s5159_s16 = inlined_call_operand.vmem [shape: bf16[128,128], index: 16, kind: input, shape index: {}]   ;;  %s5160_s17 = inlined_call_operand.vmem [shape: f32[1,128], index: 17, kind: input, shape index: {}]   ;;  %s5161_s18 = inlined_call_operand.vmem [shape: bf16[128,64], index: 18, kind: input, shape index: {}]   ;;  %s5162_s19 = inlined_call_operand.vmem [shape: f32[1,64], index: 19, kind: input, shape index: {}]   ;;  %s5163_s20 = inlined_call_operand.vmem [shape: bf16[64,128], index: 20, kind: input, shape index: {}]   ;;  %s5164_s21 = inlined_call_operand.vmem [shape: f32[1,128], index: 21, kind: input, shape index: {}]   ;;  %s5165_s22 = inlined_call_operand.hbm [shape: f32[16,128], index: 22, kind: output, shape index: {0}]   ;;  %s5166_s23 = inlined_call_operand.vmem [shape: f32[2,128], index: 23, kind: output, shape index: {1}]  }
   0x1   :  { %5179 = sst [smem:[#allocation5_spill]] %s5143_s0 }
   0x2   :  { %5180 = sst [smem:[#allocation6_spill]] %s5144_s1 }
   0x3   :  { %5181 = sst [smem:[#allocation7_spill]] %s5145_s2 }
   0x4   :  { %5182 = sst [smem:[#allocation8_spill]] %s5146_s3 }
   0x5   :  { %5183 = sst [smem:[#allocation9_spill]] %s5147_s4 }
   0x6   :  { %5184 = sst [smem:[#allocation10_spill]] %s5148_s5 }
   0x7   :  { %5185 = sst [smem:[#allocation11_spill]] %s5149_s6 }
   0x8   :  { %5186 = sst [smem:[#allocation12_spill]] %s5150_s7 }
   0x9   :  { %s5187_s24 = sld [smem:[#allocation5_spill]] }
   0xf   :  { %v91_v0 = vld [vmem:[%s5187_s24] sm:$0xff]  ;;  %v92_v1 = vld [vmem:[%s5187_s24 + $0x8] sm:$0xff] }
  0x10   :  { %95 = vadd.xlane.f32.xlu0 %v91_v0 }
  0x11   :  { %29 = vsyncpa [#allocation3], 0  ;;  %v3927_v2 = vmov 128.0   ;;  %s5188_s2 = sld [smem:[#allocation9_spill]]  ;;  %vm369_vm7 = vcmask 261120   ;;  %s5177_s3 = smov 96  }
  0x12   :  { %3797 = vrcp.f32 %v3927_v2  ;;  %s5189_s1 = sld [smem:[#allocation7_spill]]  ;;  %vm436_vm8 = vcmask 1043456   ;;  %s5175_s0 = smov 64   ;;  %vm408_vm10 = vcmask 64512   ;;  %vm852_vm12 = vcmask 523264  }
  0x13   :  { %s5190_s27 = sld [smem:[#allocation8_spill]]  ;;  %s5173_s4 = smov 32   ;;  %vm855_vm13 = vcmask 785408  }
  0x14   :  { %s5191_s29 = sld [smem:[#allocation10_spill]]  ;;  %s5196_s26 = smov 64  }
  0x15   :  { %s5192_s25 = sld [smem:[#allocation6_spill]]  ;;  %s5197_s6 = smov 32  }
  0x16   :  { %s5194_s5 = sld [smem:[#allocation12_spill]] }
  0x17   :  { %v2946_v17 = vld [vmem:[%s5188_s2 + $0xa8] sm:$0xf]  ;;  %v3611_v18 = vld [vmem:[%s5188_s2 + $0xb0] sm:$0xf0]  ;;  %v3610_v19 = vld [vmem:[%s5188_s2 + $0xac] sm:$0xf] }
  0x18   :  { %97 = vadd.xlane.f32.xlu0 %v92_v1  ;;  %v3798_v3 = vpop.eup %3797  ;;  %v2947_v20 = vor.u32 %v3611_v18, %v2946_v17  ;;  %v2948_v21 = vld [vmem:[%s5188_s2 + $0xb4] sm:$0xf0]  ;;  %v2954_v22 = vld [vmem:[%s5188_s2 + $0xb0] sm:$0xf]  ;;  %v3612_v23 = vld [vmem:[%s5188_s2 + $0xb8] sm:$0xf0] }
  0x19   :  { %v100_v4 = vmul.f32 128.0, %v3798_v3  ;;  %vm104_vm0 = vweird.f32 %v3798_v3  ;;  %v2951_v24 = vor.u32 %v3610_v19, %v2948_v21  ;;  %v2955_v25 = vor.u32 %v3612_v23, %v2954_v22  ;;  %v2934_v26 = vld [vmem:[%s5188_s2 + $0x90] sm:$0xf]  ;;  %v3608_v27 = vld [vmem:[%s5188_s2 + $0x98] sm:$0xf0] }
  0x1a   :  { %321 = vmatpush.bf16.msra.mxu0 %v2947_v20  ;;  %v3607_v28 = vld [vmem:[%s5188_s2 + $0x94] sm:$0xf]  ;;  %v2935_v29 = vor.u32 %v3608_v27, %v2934_v26  ;;  %v2936_v30 = vld [vmem:[%s5188_s2 + $0x9c] sm:$0xf0]  ;;  %v2942_v31 = vld [vmem:[%s5188_s2 + $0x98] sm:$0xf] }
  0x1b   :  { %v101_v5 = vsub.f32 1.0, %v100_v4  ;;  %335 = vmatpush.bf16.msra.mxu1 %v2951_v24  ;;  %349 = vmatpush.bf16.msra.mxu2 %v2955_v25  ;;  %v3609_v32 = vld [vmem:[%s5188_s2 + $0xa0] sm:$0xf0]  ;;  %v2939_v33 = vor.u32 %v3607_v28, %v2936_v30  ;;  %v2922_v35 = vld [vmem:[%s5188_s2 + $0x78] sm:$0xf] }
  0x1c   :  { %v2943_v34 = vor.u32 %v3609_v32, %v2942_v31  ;;  %v3605_v36 = vld [vmem:[%s5188_s2 + $0x80] sm:$0xf0]  ;;  %v3604_v37 = vld [vmem:[%s5188_s2 + $0x7c] sm:$0xf]  ;;  %v2924_v39 = vld [vmem:[%s5188_s2 + $0x84] sm:$0xf0] }
  0x1d   :  { %v102_v6 = vmul.f32 %v3798_v3, %v101_v5  ;;  %v2923_v38 = vor.u32 %v3605_v36, %v2922_v35  ;;  %v2930_v40 = vld [vmem:[%s5188_s2 + $0x80] sm:$0xf]  ;;  %v3606_v41 = vld [vmem:[%s5188_s2 + $0x88] sm:$0xf0]  ;;  %v2927_v42 = vor.u32 %v3604_v37, %v2924_v39  ;;  %v3601_v46 = vld [vmem:[%s5188_s2 + $0x64] sm:$0xf] }
  0x1e   :  { %322 = vmatpush.bf16.msra.mxu0 %v2935_v29  ;;  %v2931_v43 = vor.u32 %v3606_v41, %v2930_v40  ;;  %v2910_v44 = vld [vmem:[%s5188_s2 + $0x60] sm:$0xf]  ;;  %v3602_v45 = vld [vmem:[%s5188_s2 + $0x68] sm:$0xf0]  ;;  %v2912_v48 = vld [vmem:[%s5188_s2 + $0x6c] sm:$0xf0] }
  0x1f   :  { %v103_v7 = vadd.f32 %v3798_v3, %v102_v6  ;;  %336 = vmatpush.bf16.msra.mxu1 %v2939_v33  ;;  %350 = vmatpush.bf16.msra.mxu2 %v2943_v34  ;;  %v2911_v47 = vor.u32 %v3602_v45, %v2910_v44  ;;  %v2918_v49 = vld [vmem:[%s5188_s2 + $0x68] sm:$0xf]  ;;  %v3603_v50 = vld [vmem:[%s5188_s2 + $0x70] sm:$0xf0]  ;;  %v2915_v51 = vor.u32 %v3601_v46, %v2912_v48  ;;  %v3598_v55 = vld [vmem:[%s5188_s2 + $0x4c] sm:$0xf] }
  0x20   :  { %v2919_v52 = vor.u32 %v3603_v50, %v2918_v49  ;;  %v2898_v53 = vld [vmem:[%s5188_s2 + $0x48] sm:$0xf]  ;;  %v3599_v54 = vld [vmem:[%s5188_s2 + $0x50] sm:$0xf0]  ;;  %v2900_v57 = vld [vmem:[%s5188_s2 + $0x54] sm:$0xf0] }
  0x21   :  { %v4062_v8 = vsel %vm104_vm0, %v3798_v3, %v103_v7  ;;  %v2899_v56 = vor.u32 %v3599_v54, %v2898_v53  ;;  %v2906_v58 = vld [vmem:[%s5188_s2 + $0x50] sm:$0xf]  ;;  %v3600_v59 = vld [vmem:[%s5188_s2 + $0x58] sm:$0xf0]  ;;  %v2903_v60 = vor.u32 %v3598_v55, %v2900_v57  ;;  %v2888_v2 = vld [vmem:[%s5188_s2 + $0x3c] sm:$0xf0] }
  0x22   :  { %323 = vmatpush.bf16.msra.mxu0 %v2923_v38  ;;  %v2907_v61 = vor.u32 %v3600_v59, %v2906_v58  ;;  %v2886_v62 = vld [vmem:[%s5188_s2 + $0x30] sm:$0xf]  ;;  %v3596_v63 = vld [vmem:[%s5188_s2 + $0x38] sm:$0xf0]  ;;  %v2894_v3 = vld [vmem:[%s5188_s2 + $0x38] sm:$0xf] }
  0x23   :  { %337 = vmatpush.bf16.msra.mxu1 %v2927_v42  ;;  %351 = vmatpush.bf16.msra.mxu2 %v2931_v43  ;;  %v3597_v4 = vld [vmem:[%s5188_s2 + $0x40] sm:$0xf0]  ;;  %v2874_v7 = vld [vmem:[%s5188_s2 + $0x18] sm:$0xf]  ;;  %v2862_v19 = vld [vmem:[%s5188_s2] sm:$0xf] }
  0x24   :  { %v2895_v6 = vor.u32 %v3597_v4, %v2894_v3  ;;  %v3590_v20 = vld [vmem:[%s5188_s2 + $0x8] sm:$0xf0]  ;;  %v3589_v21 = vld [vmem:[%s5188_s2 + $0x4] sm:$0xf]  ;;  %v2864_v24 = vld [vmem:[%s5188_s2 + $0xc] sm:$0xf0] }
  0x25   :  { %v2863_v23 = vor.u32 %v3590_v20, %v2862_v19  ;;  %v2870_v25 = vld [vmem:[%s5188_s2 + $0x8] sm:$0xf]  ;;  %v3591_v26 = vld [vmem:[%s5188_s2 + $0x10] sm:$0xf0]  ;;  %v2867_v28 = vor.u32 %v3589_v21, %v2864_v24  ;;  %v3928_v58 = vmov 0  }
  0x26   :  { %324 = vmatpush.bf16.msra.mxu0 %v2911_v47  ;;  %v2871_v29 = vor.u32 %v3591_v26, %v2870_v25  ;;  %v3778_v47 = vld [vmem:[%s5189_s1] ss:$0 sm:$0xff]  ;;  %3746 = vset.pattern.permute.xlu1 %v3928_v58 }
  0x27   :  { %338 = vmatpush.bf16.msra.mxu1 %v2915_v51  ;;  %352 = vmatpush.bf16.msra.mxu2 %v2919_v52  ;;  %v3779_v52 = vld [vmem:[%s5190_s27] ss:$0 sm:$0xff]  ;;  %s5193_s27 = sld [smem:[#allocation11_spill]] }
  0x28   :  { %3747 = vset.pattern.permute.xlu0 %v3928_v58 }
  0x2a   :  { %325 = vmatpush.bf16.msra.mxu0 %v2899_v56 }
  0x2b   :  { %339 = vmatpush.bf16.msra.mxu1 %v2903_v60  ;;  %353 = vmatpush.bf16.msra.mxu2 %v2907_v61 }
  0x2f   :  { %354 = vmatpush.bf16.msra.mxu2 %v2895_v6 }
  0x83   :  { %v96_v9 = vpop.xlane.xlu0 %95 }
  0x84   :  { %v106_v10 = vmul.f32 %v4062_v8, %v96_v9  ;;  %v3593_v9 = vld [vmem:[%s5188_s2 + $0x20] sm:$0xf0] }
  0x86   :  { %v4065_v11 = vsub.f32 %v91_v0, %v106_v10  ;;  %v3595_v0 = vld [vmem:[%s5188_s2 + $0x34] sm:$0xf]  ;;  %v3592_v10 = vld [vmem:[%s5188_s2 + $0x1c] sm:$0xf] }
  0x87   :  { %v2891_v5 = vor.u32 %v3595_v0, %v2888_v2 }
  0x88   :  { %v110_v12 = vmul.f32 %v4065_v11, %v4065_v11 }
  0x89   :  { %340 = vmatpush.bf16.msra.mxu1 %v2891_v5 }
  0x8a   :  { %112 = vadd.xlane.f32.xlu1 %v110_v12  ;;  %v2875_v12 = vor.u32 %v3593_v9, %v2874_v7 }
  0x8b   :  { %v98_v13 = vpop.xlane.xlu0 %97 }
  0x8c   :  { %v107_v14 = vmul.f32 %v4062_v8, %v98_v13  ;;  %v2876_v13 = vld [vmem:[%s5188_s2 + $0x24] sm:$0xf0] }
  0x8d   :  { %v2879_v17 = vor.u32 %v3592_v10, %v2876_v13 }
  0x8e   :  { %v4070_v15 = vsub.f32 %v92_v1, %v107_v14  ;;  %v2887_v1 = vor.u32 %v3596_v63, %v2886_v62  ;;  %v2882_v14 = vld [vmem:[%s5188_s2 + $0x20] sm:$0xf] }
  0x8f   :  { %341 = vmatpush.bf16.msra.mxu1 %v2879_v17 }
  0x90   :  { %v111_v16 = vmul.f32 %v4070_v15, %v4070_v15  ;;  %326 = vmatpush.bf16.msra.mxu0 %v2887_v1 }
  0x92   :  { %114 = vadd.xlane.f32.xlu1 %v111_v16  ;;  %v3594_v16 = vld [vmem:[%s5188_s2 + $0x28] sm:$0xf0] }
  0x93   :  { %v2883_v18 = vor.u32 %v3594_v16, %v2882_v14  ;;  %342 = vmatpush.bf16.msra.mxu1 %v2867_v28 }
  0x94   :  { %327 = vmatpush.bf16.msra.mxu0 %v2875_v12 }
  0x95   :  { %355 = vmatpush.bf16.msra.mxu2 %v2883_v18 }
  0x98   :  { %328 = vmatpush.bf16.msra.mxu0 %v2863_v23 }
  0x99   :  { %356 = vmatpush.bf16.msra.mxu2 %v2871_v29  ;;  %v3780_v29 = vld [vmem:[%s5192_s25] ss:$0 sm:$0xff] }
  0xfd   :  { %v113_v22 = vpop.xlane.xlu1 %112 }
  0xfe   :  { %v116_v27 = vmul.f32 %v113_v22, %v4062_v8 }
 0x100   :  { %v118_v30 = vadd.f32 1e-12, %v116_v27 }
 0x102   :  { %3799 = vrsqrt.f32 %v118_v30  ;;  %vm126_vm2 = vweird.f32 %v118_v30 }
 0x105   :  { %v115_v31 = vpop.xlane.xlu1 %114 }
 0x106   :  { %v117_v32 = vmul.f32 %v115_v31, %v4062_v8 }
 0x108   :  { %v3800_v33 = vpop.eup %3799  ;;  %v119_v34 = vadd.f32 1e-12, %v117_v32 }
 0x109   :  { %v121_v35 = vmul.f32 %v3800_v33, %v118_v30  ;;  %vm127_vm1 = vweird.f32 %v3800_v33  ;;  %v3781_v30 = vld [vmem:[%s5192_s25 + $0x1] ss:$0 sm:$0xff] }
 0x10a   :  { %3801 = vrsqrt.f32 %v119_v34  ;;  %vm128_vm3 = vmor %vm126_vm2, %vm127_vm1  ;;  %vm136_vm5 = vweird.f32 %v119_v34 }
 0x10b   :  { %v122_v36 = vmul.f32 %v3800_v33, %v121_v35 }
 0x10d   :  { %v123_v37 = vmul.f32 0.5, %v122_v36 }
 0x10f   :  { %v124_v38 = vsub.f32 1.5, %v123_v37 }
 0x110   :  { %v3802_v39 = vpop.eup %3801 }
 0x111   :  { %v125_v40 = vmul.f32 %v3800_v33, %v124_v38  ;;  %v131_v41 = vmul.f32 %v3802_v39, %v119_v34  ;;  %vm137_vm4 = vweird.f32 %v3802_v39 }
 0x112   :  { %vm138_vm6 = vmor %vm136_vm5, %vm137_vm4 }
 0x113   :  { %v132_v42 = vmul.f32 %v3802_v39, %v131_v41  ;;  %v129_v43 = vsel %vm128_vm3, %v3800_v33, %v125_v40 }
 0x114   :  { %v140_v46 = vmul.f32 %v129_v43, %v4065_v11 }
 0x115   :  { %v133_v44 = vmul.f32 0.5, %v132_v42 }
 0x116   :  { %v145_v51 = vmul.f32 %v3778_v47, %v140_v46 }
 0x117   :  { %v134_v45 = vsub.f32 1.5, %v133_v44 }
 0x118   :  { %v4228_v54 = vadd.f32 %v3779_v52, %v145_v51 }
 0x119   :  { %v135_v48 = vmul.f32 %v3802_v39, %v134_v45 }
 0x11b   :  { %v139_v49 = vsel %vm138_vm6, %v3802_v39, %v135_v48 }
 0x11c   :  { %v141_v50 = vmul.f32 %v139_v49, %v4070_v15  ;;  %v185_v15 = vld [vmem:[%s5191_s29] sm:$0x7] }
 0x11d   :  { %v187_v56 = vperm.slane %v185_v15, 0  ;;  %v188_v57 = vperm.slane %v185_v15, 1  ;;  %v189_v1 = vperm.slane %v185_v15, 2 }
 0x11e   :  { %v146_v53 = vmul.f32 %v3778_v47, %v141_v50  ;;  %v75_v47 = vlaneseq }
 0x120   :  { %v4230_v55 = vadd.f32 %v3779_v52, %v146_v53  ;;  %v76_v50 = vand.u32 127, %v75_v47  ;;  %v3932_v52 = vmov -10000.0  }
 0x122   :  { %v184_v11 = vpack.c.bf16 %v4230_v55, %v4228_v54 }
 0x124   :  { %329 = vmatmul.bf16.vlgmr.msra.gmra.mxu0 %v184_v11  ;;  %343 = vmatmul.bf16.vlgmr.msra.gmra.mxu1 %v184_v11 }
 0x125   :  { %357 = vmatmul.bf16.vlgmr.msra.gmra.mxu2 %v184_v11 }
 0x1a1   :  { %v330_v59 = vpop.f32.mrf.mxu0  ;;  %v344_v60 = vpop.f32.mrf.mxu1 }
 0x1a2   :  { %v331_v61 = vadd.f32 %v330_v59, %v187_v56  ;;  %v345_v62 = vadd.f32 %v344_v60, %v188_v57 }
 0x1a4   :  { %v363_v63 = vpack.c.bf16 %v331_v61, %v331_v61  ;;  %v365_v0 = vpack.c.bf16 %v345_v62, %v345_v62 }
 0x1a6   :  { %v473_v2 = vunpack.c.l.b16 %v363_v63  ;;  %v478_v3 = vunpack.c.l.b16 %v365_v0  ;;  %v374_v4 = vsel %vm369_vm7, %v365_v0, 0 }
 0x1a7   :  { %383 = vmatpush.bf16.xpose.msra.mxu3 %v374_v4 }
 0x1a8   :  { %v474_v5 = vpack.c.b16 %v473_v2, %v473_v2  ;;  %v479_v6 = vpack.c.b16 %v478_v3, %v478_v3  ;;  %v358_v7 = vpop.f32.mrf.mxu2 }
 0x1a9   :  { %v359_v9 = vadd.f32 %v358_v7, %v189_v1  ;;  %v332_v10 = vpop.f32.mrf.mxu0  ;;  %v346_v12 = vpop.f32.mrf.mxu1 }
 0x1aa   :  { %v333_v13 = vadd.f32 %v332_v10, %v187_v56  ;;  %v347_v14 = vadd.f32 %v346_v12, %v188_v57  ;;  %480 = vrot.lane.b32.xlu2 %v479_v6, %s5177_s3  ;;  %475 = vrot.lane.b32.xlu0 %v474_v5, %s5177_s3 }
 0x1ab   :  { %v4240_v16 = vpack.c.bf16 %v359_v9, %v359_v9 }
 0x1ac   :  { %v364_v17 = vpack.c.bf16 %v333_v13, %v333_v13  ;;  %v366_v18 = vpack.c.bf16 %v347_v14, %v347_v14 }
 0x1ad   :  { %v438_v22 = vsel %vm436_vm8, %v4240_v16, 0 }
 0x1ae   :  { %v502_v19 = vunpack.c.l.b16 %v364_v17  ;;  %v507_v20 = vunpack.c.l.b16 %v366_v18  ;;  %2956 = vmatmul.msk.bf16.vlgmr.msra.gmra.mxu3 %vm369_vm7, %v363_v63  ;;  %v393_v21 = vsel %vm369_vm7, %v366_v18, 0 }
 0x1af   :  { %402 = vmatpush.bf16.xpose.msrb.mxu3 %v393_v21 }
 0x1b0   :  { %v508_v23 = vpack.c.b16 %v507_v20, %v507_v20  ;;  %v360_v24 = vpop.f32.mrf.mxu2  ;;  %v503_v25 = vpack.c.b16 %v502_v19, %v502_v19 }
 0x1b1   :  { %v361_v26 = vadd.f32 %v360_v24, %v189_v1 }
 0x1b2   :  { %509 = vrot.lane.b32.xlu2 %v508_v23, %s5177_s3  ;;  %504 = vrot.lane.b32.xlu1 %v503_v25, %s5177_s3 }
 0x1b3   :  { %v4248_v27 = vpack.c.bf16 %v361_v26, %v361_v26  ;;  %625 = vrot.lane.b32.xlu0 %v503_v25, %s5175_s0 }
 0x1b5   :  { %v457_v28 = vsel %vm436_vm8, %v4248_v27, 0 }
 0x1b6   :  { %466 = vmatpush.bf16.msrb.mxu0 %v457_v28 }
 0x1b7   :  { %447 = vmatpush.bf16.msra.mxu3 %v438_v22 }
 0x1ba   :  { %604 = vrot.lane.b32.xlu2 %v479_v6, %s5175_s0  ;;  %739 = vrot.lane.b32.xlu1 %v508_v23, %s5173_s4 }
 0x1bb   :  { %714 = vrot.lane.b32.xlu0 %v474_v5, %s5173_s4 }
 0x1be   :  { %2957 = vmatmul.msk.bf16.vlgmr.msrb.gmra.mxu3 %vm369_vm7, %v364_v17 }
 0x1c2   :  { %627 = vrot.lane.b32.xlu2 %v508_v23, %s5175_s0  ;;  %82 = vperm.xlu1 %3746, %v3780_v29  }
 0x1c3   :  { %85 = vperm.xlu0 %3747, %v3781_v30  }
 0x1ca   :  { %602 = vrot.lane.b32.xlu2 %v474_v5, %s5175_s0 }
 0x1d2   :  { %716 = vrot.lane.b32.xlu2 %v479_v6, %s5173_s4 }
 0x1da   :  { %737 = vrot.lane.b32.xlu2 %v503_v25, %s5173_s4 }
 0x204   :  { %v481_v31 = vpop.permute.xlu2 %480 }
 0x205   :  { %v486_v32 = vsel %vm369_vm7, %v481_v31, 0 }
 0x206   :  { %495 = vmatpush.bf16.xpose.msrb.mxu1 %v486_v32 }
 0x20c   :  { %v510_v33 = vpop.permute.xlu2 %509 }
 0x20d   :  { %v515_v34 = vsel %vm369_vm7, %v510_v33, 0  ;;  %v579_v33 = vunpack.c.l.b16 %v4248_v27 }
 0x20e   :  { %524 = vmatpush.bf16.xpose.msrb.mxu2 %v515_v34 }
 0x214   :  { %v605_v35 = vpop.permute.xlu2 %604 }
 0x215   :  { %v610_v36 = vsel %vm369_vm7, %v605_v35, 0 }
 0x216   :  { %619 = vmatpush.bf16.xpose.msra.mxu1 %v610_v36  ;;  %v4299_v36 = vpack.c.b16 %v579_v33, %v579_v33 }
 0x21c   :  { %v628_v37 = vpop.permute.xlu2 %627  ;;  %v476_v38 = vpop.permute.xlu0 %475 }
 0x21d   :  { %v633_v39 = vsel %vm369_vm7, %v628_v37, 0  ;;  %2960 = vmatmul.msk.bf16.vlgmr.msrb.gmra.mxu1 %vm369_vm7, %v476_v38  ;;  %v555_v38 = vunpack.c.l.b16 %v4240_v16 }
 0x21e   :  { %642 = vmatpush.bf16.xpose.msra.mxu2 %v633_v39 }
 0x224   :  { %v505_v40 = vpop.permute.xlu1 %504  ;;  %v603_v41 = vpop.permute.xlu2 %602 }
 0x225   :  { %2961 = vmatmul.msk.bf16.vlgmr.msrb.gmra.mxu2 %vm369_vm7, %v505_v40  ;;  %v626_v42 = vpop.permute.xlu0 %625  ;;  %v556_v40 = vpack.c.b16 %v555_v38, %v555_v38 }
 0x22c   :  { %v740_v43 = vpop.permute.xlu1 %739  ;;  %v717_v44 = vpop.permute.xlu2 %716 }
 0x22d   :  { %v745_v45 = vsel %vm369_vm7, %v740_v43, 0  ;;  %v722_v46 = vsel %vm369_vm7, %v717_v44, 0  ;;  %2964 = vmatmul.msk.bf16.vlgmr.msra.gmra.mxu1 %vm369_vm7, %v603_v41  ;;  %v715_v48 = vpop.permute.xlu0 %714 }
 0x22e   :  { %731 = vmatpush.bf16.xpose.msrb.mxu1 %v722_v46  ;;  %754 = vmatpush.bf16.xpose.msrb.mxu2 %v745_v45 }
 0x231   :  { %v385_v49 = vpop.f32.mrf.mxu3 }
 0x234   :  { %v83_v51 = vpop.permute.xlu1 %82  ;;  %v738_v61 = vpop.permute.xlu2 %737 }
 0x235   :  { %vm87_vm9 = vcmp.lt.s32.totalorder %v76_v50, %v83_v51  ;;  %2965 = vmatmul.msk.bf16.vlgmr.msra.gmra.mxu2 %vm369_vm7, %v626_v42  ;;  %v86_v57 = vpop.permute.xlu0 %85 }
 0x236   :  { %v4277_v53 = vsel %vm87_vm9, 0.0, %v3932_v52  ;;  %vm88_vm11 = vcmp.lt.s32.totalorder %v76_v50, %v86_v57 }
 0x237   :  { %v386_v11 = vadd.f32 %v385_v49, %v4277_v53  ;;  %v4282_v58 = vsel %vm88_vm11, 0.0, %v3932_v52 }
 0x239   :  { %v387_v15 = vpop.f32.mrf.mxu3  ;;  %v409_v56 = vsel %vm408_vm10, %v386_v11, -inf }
 0x23a   :  { %410 = vmax.xlane.f32.xlu2 %v409_v56 }
 0x23d   :  { %2968 = vmatmul.msk.bf16.vlgmr.msrb.gmra.mxu1 %vm369_vm7, %v715_v48 }
 0x241   :  { %v404_v59 = vpop.f32.mrf.mxu3 }
 0x242   :  { %v405_v60 = vadd.f32 %v404_v59, %v4282_v58 }
 0x244   :  { %v412_v62 = vsel %vm408_vm10, %v405_v60, -inf }
 0x245   :  { %2969 = vmatmul.msk.bf16.vlgmr.msrb.gmra.mxu2 %vm369_vm7, %v738_v61  ;;  %413 = vmax.xlane.f32.xlu1 %v412_v62 }
 0x249   :  { %v406_v63 = vpop.f32.mrf.mxu3 }
 0x29a   :  { %v497_v0 = vpop.f32.mrf.mxu1 }
 0x29b   :  { %v498_v1 = vadd.f32 %v497_v0, %v4277_v53 }
 0x29d   :  { %v530_v2 = vsel %vm408_vm10, %v498_v1, -inf }
 0x29e   :  { %531 = vmax.xlane.f32.xlu0 %v530_v2 }
 0x2a2   :  { %v499_v3 = vpop.f32.mrf.mxu1 }
 0x2a8   :  { %v526_v4 = vpop.f32.mrf.mxu2 }
 0x2a9   :  { %v527_v5 = vadd.f32 %v526_v4, %v4282_v58 }
 0x2aa   :  { %v621_v6 = vpop.f32.mrf.mxu1 }
 0x2ab   :  { %v622_v7 = vadd.f32 %v621_v6, %v4277_v53  ;;  %v533_v9 = vsel %vm408_vm10, %v527_v5, -inf }
 0x2ac   :  { %534 = vmax.xlane.f32.xlu2 %v533_v9 }
 0x2ad   :  { %v411_v10 = vpop.xlane.xlu2 %410  ;;  %v648_v12 = vsel %vm408_vm10, %v622_v7, -inf }
 0x2ae   :  { %v415_v13 = vsub.f32 %v386_v11, %v411_v10  ;;  %649 = vmax.xlane.f32.xlu1 %v648_v12 }
 0x2b0   :  { %v417_v14 = vmul.f32 1.442695, %v415_v13  ;;  %v528_v17 = vpop.f32.mrf.mxu2 }
 0x2b2   :  { %3803 = vpow2.f32 %v417_v14  ;;  %v623_v18 = vpop.f32.mrf.mxu1 }
 0x2b8   :  { %v3804_v19 = vpop.eup %3803  ;;  %v644_v20 = vpop.f32.mrf.mxu2 }
 0x2b9   :  { %v414_v21 = vpop.xlane.xlu1 %413  ;;  %v645_v22 = vadd.f32 %v644_v20, %v4282_v58  ;;  %v421_v24 = vsel %vm408_vm10, %v3804_v19, 0.0 }
 0x2ba   :  { %v416_v23 = vsub.f32 %v405_v60, %v414_v21  ;;  %v733_v25 = vpop.f32.mrf.mxu1  ;;  %422 = vadd.xlane.f32.xlu0 %v421_v24 }
 0x2bb   :  { %v651_v28 = vsel %vm408_vm10, %v645_v22, -inf  ;;  %v734_v34 = vadd.f32 %v733_v25, %v4277_v53 }
 0x2bc   :  { %v419_v26 = vmul.f32 1.442695, %v416_v23  ;;  %652 = vmax.xlane.f32.xlu2 %v651_v28 }
 0x2bd   :  { %v760_v37 = vsel %vm408_vm10, %v734_v34, -inf }
 0x2be   :  { %3805 = vpow2.f32 %v419_v26 }
 0x2c0   :  { %v646_v29 = vpop.f32.mrf.mxu2 }
 0x2c2   :  { %v735_v30 = vpop.f32.mrf.mxu1 }
 0x2c4   :  { %v3806_v31 = vpop.eup %3805 }
 0x2c5   :  { %v424_v32 = vsel %vm408_vm10, %v3806_v31, 0.0 }
 0x2c6   :  { %425 = vadd.xlane.f32.xlu1 %v424_v32 }
 0x2c8   :  { %v756_v35 = vpop.f32.mrf.mxu2 }
 0x2c9   :  { %v4308_v27 = vadd.f32 %v756_v35, %v4282_v58 }
 0x2cb   :  { %v763_v41 = vsel %vm408_vm10, %v4308_v27, -inf }
 0x2ce   :  { %761 = vmax.xlane.f32.xlu1 %v760_v37  ;;  %581 = vrot.lane.b32.xlu0 %v4299_v36, %s5177_s3 }
 0x2d0   :  { %v758_v39 = vpop.f32.mrf.mxu2 }
 0x2d4   :  { %672 = vrot.lane.b32.xlu2 %v556_v40, %s5175_s0 }
 0x2e7   :  { %557 = vrot.lane.b32.xlu1 %v556_v40, %s5177_s3 }
 0x2fd   :  { %764 = vmax.xlane.f32.xlu2 %v763_v41 }
 0x311   :  { %v532_v42 = vpop.xlane.xlu0 %531 }
 0x312   :  { %v536_v43 = vsub.f32 %v498_v1, %v532_v42 }
 0x314   :  { %v538_v44 = vmul.f32 1.442695, %v536_v43 }
 0x316   :  { %3807 = vpow2.f32 %v538_v44 }
 0x31c   :  { %v4312_v16 = vpop.eup %3807 }
 0x31d   :  { %v542_v45 = vsel %vm408_vm10, %v4312_v16, 0.0 }
 0x31e   :  { %543 = vadd.xlane.f32.xlu0 %v542_v45 }
 0x31f   :  { %v535_v46 = vpop.xlane.xlu2 %534 }
 0x320   :  { %v537_v47 = vsub.f32 %v527_v5, %v535_v46 }
 0x321   :  { %v650_v48 = vpop.xlane.xlu1 %649 }
 0x322   :  { %v540_v49 = vmul.f32 1.442695, %v537_v47  ;;  %v654_v50 = vsub.f32 %v622_v7, %v650_v48 }
 0x324   :  { %3809 = vpow2.f32 %v540_v49  ;;  %v656_v51 = vmul.f32 1.442695, %v654_v50 }
 0x326   :  { %3811 = vpow2.f32 %v656_v51 }
 0x32a   :  { %v4316_v52 = vpop.eup %3809 }
 0x32b   :  { %v545_v11 = vsel %vm408_vm10, %v4316_v52, 0.0 }
 0x32c   :  { %546 = vadd.xlane.f32.xlu2 %v545_v11  ;;  %v4320_v57 = vpop.eup %3811 }
 0x32d   :  { %v423_v15 = vpop.xlane.xlu0 %422  ;;  %v660_v61 = vsel %vm408_vm10, %v4320_v57, 0.0 }
 0x32e   :  { %3813 = vrcp.f32 %v423_v15 }
 0x32f   :  { %v653_v56 = vpop.xlane.xlu2 %652 }
 0x330   :  { %v655_v59 = vsub.f32 %v645_v22, %v653_v56 }
 0x332   :  { %v658_v60 = vmul.f32 1.442695, %v655_v59  ;;  %693 = vrot.lane.b32.xlu0 %v4299_v36, %s5175_s0 }
 0x334   :  { %v3814_v62 = vpop.eup %3813  ;;  %3815 = vpow2.f32 %v658_v60  ;;  %661 = vadd.xlane.f32.xlu2 %v660_v61 }
 0x335   :  { %v429_v63 = vmul.f32 %v3814_v62, %v3804_v19 }
 0x337   :  { %v431_v0 = vpack.c.bf16 %v429_v63, %v429_v63  ;;  %v673_v18 = vpop.permute.xlu2 %672 }
 0x338   :  { %v678_v21 = vsel %vm436_vm8, %v673_v18, 0  ;;  %v3619_v18 = vld [vmem:[%s5193_s27 + $0x30] sm:$0xff] }
 0x339   :  { %v426_v1 = vpop.xlane.xlu1 %425  ;;  %2958 = vmatmul.msk.bf16.vlgmr.msra.gmra.mxu3 %vm408_vm10, %v431_v0 }
 0x33a   :  { %3817 = vrcp.f32 %v426_v1  ;;  %v3816_v2 = vpop.eup %3815 }
 0x33b   :  { %v663_v3 = vsel %vm408_vm10, %v3816_v2, 0.0 }
 0x33c   :  { %664 = vadd.xlane.f32.xlu2 %v663_v3 }
 0x340   :  { %v3818_v4 = vpop.eup %3817  ;;  %v582_v7 = vpop.permute.xlu0 %581 }
 0x341   :  { %v430_v5 = vmul.f32 %v3818_v4, %v3806_v31  ;;  %v762_v6 = vpop.xlane.xlu1 %761  ;;  %v587_v10 = vsel %vm436_vm8, %v582_v7, 0 }
 0x342   :  { %v766_v9 = vsub.f32 %v734_v34, %v762_v6  ;;  %596 = vmatpush.bf16.msra.mxu0 %v587_v10 }
 0x343   :  { %v432_v12 = vpack.c.bf16 %v430_v5, %v430_v5 }
 0x344   :  { %v768_v13 = vmul.f32 1.442695, %v766_v9 }
 0x345   :  { %2959 = vmatmul.msk.bf16.vlgmr.msrb.gmra.mxu0 %vm408_vm10, %v432_v12 }
 0x346   :  { %3819 = vpow2.f32 %v768_v13 }
 0x34c   :  { %v3820_v14 = vpop.eup %3819 }
 0x34d   :  { %v772_v17 = vsel %vm408_vm10, %v3820_v14, 0.0 }
 0x34e   :  { %773 = vadd.xlane.f32.xlu1 %v772_v17  ;;  %v3620_v17 = vld [vmem:[%s5193_s27 + $0x38] sm:$0xff] }
 0x34f   :  { %927 = vmatpush.bf16.msra.mxu1 %v3620_v17  ;;  %v3040_v17 = vld [vmem:[%s5153_s10 + $0x48] sm:$0xf0] }
 0x353   :  { %928 = vmatpush.bf16.msra.mxu1 %v3619_v18 }
 0x354   :  { %784 = vrot.lane.b32.xlu2 %v556_v40, %s5173_s4 }
 0x359   :  { %v558_v19 = vpop.permute.xlu1 %557 }
 0x35a   :  { %v563_v20 = vsel %vm436_vm8, %v558_v19, 0  ;;  %v3618_v19 = vld [vmem:[%s5193_s27 + $0x28] sm:$0xff] }
 0x35b   :  { %572 = vmatpush.bf16.msrb.mxu3 %v563_v20  ;;  %929 = vmatpush.bf16.msra.mxu1 %v3618_v19  ;;  %v3617_v20 = vld [vmem:[%s5193_s27 + $0x20] sm:$0xff]  ;;  %v3030_v19 = vld [vmem:[%s5153_s10 + $0x30] sm:$0xf] }
 0x35c   :  { %805 = vrot.lane.b32.xlu2 %v4299_v36, %s5173_s4 }
 0x35f   :  { %687 = vmatpush.bf16.msra.mxu3 %v678_v21  ;;  %930 = vmatpush.bf16.msra.mxu1 %v3617_v20  ;;  %v3616_v21 = vld [vmem:[%s5193_s27 + $0x18] sm:$0xff] }
 0x360   :  { %v3628_v20 = vld [vmem:[%s5153_s10 + $0x34] sm:$0xf0] }
 0x363   :  { %931 = vmatpush.bf16.msra.mxu1 %v3616_v21  ;;  %v3627_v21 = vld [vmem:[%s5153_s10 + $0x34] sm:$0xf] }
 0x370   :  { %v765_v22 = vpop.xlane.xlu2 %764 }
 0x371   :  { %v767_v23 = vsub.f32 %v4308_v27, %v765_v22  ;;  %v3615_v22 = vld [vmem:[%s5193_s27 + $0x10] sm:$0xff] }
 0x372   :  { %932 = vmatpush.bf16.msra.mxu1 %v3615_v22  ;;  %v3031_v22 = vor.u32 %v3628_v20, %v3030_v19  ;;  %v3640_v19 = vld [vmem:[%s5155_s12 + $0x18] sm:$0xff] }
 0x373   :  { %v770_v24 = vmul.f32 1.442695, %v767_v23  ;;  %v3614_v23 = vld [vmem:[%s5193_s27 + $0x8] sm:$0xff]  ;;  %v3648_v20 = vld [vmem:[%s5155_s12 + $0x58] sm:$0xff] }
 0x375   :  { %3821 = vpow2.f32 %v770_v24  ;;  %v3613_v24 = vld [vmem:[%s5193_s27] sm:$0xff] }
 0x376   :  { %933 = vmatpush.bf16.msra.mxu1 %v3614_v23  ;;  %v3032_v23 = vld [vmem:[%s5153_s10 + $0x38] sm:$0xf0] }
 0x37a   :  { %934 = vmatpush.bf16.msra.mxu1 %v3613_v24  ;;  %v3035_v24 = vor.u32 %v3627_v21, %v3032_v23  ;;  %v3639_v21 = vld [vmem:[%s5155_s12 + $0x10] sm:$0xff]  ;;  %v3638_v23 = vld [vmem:[%s5155_s12 + $0x8] sm:$0xff] }
 0x37b   :  { %v3822_v25 = vpop.eup %3821 }
 0x37c   :  { %v775_v26 = vsel %vm408_vm10, %v3822_v25, 0.0 }
 0x37d   :  { %776 = vadd.xlane.f32.xlu0 %v775_v26 }
 0x391   :  { %v544_v28 = vpop.xlane.xlu0 %543 }
 0x392   :  { %3823 = vrcp.f32 %v544_v28 }
 0x398   :  { %v3824_v29 = vpop.eup %3823 }
 0x399   :  { %v550_v30 = vmul.f32 %v3824_v29, %v4312_v16 }
 0x39b   :  { %v552_v31 = vpack.c.bf16 %v550_v30, %v550_v30 }
 0x39d   :  { %2962 = vmatmul.msk.bf16.vlgmr.msrb.gmra.mxu3 %vm408_vm10, %v552_v31 }
 0x39f   :  { %v547_v32 = vpop.xlane.xlu2 %546 }
 0x3a0   :  { %3825 = vrcp.f32 %v547_v32 }
 0x3a4   :  { %v694_v33 = vpop.permute.xlu0 %693 }
 0x3a5   :  { %v699_v34 = vsel %vm436_vm8, %v694_v33, 0 }
 0x3a6   :  { %v3826_v35 = vpop.eup %3825  ;;  %708 = vmatpush.bf16.msrb.mxu0 %v699_v34 }
 0x3a7   :  { %v551_v36 = vmul.f32 %v3826_v35, %v4316_v52  ;;  %v662_v37 = vpop.xlane.xlu2 %661 }
 0x3a8   :  { %3827 = vrcp.f32 %v662_v37 }
 0x3a9   :  { %v553_v38 = vpack.c.bf16 %v551_v36, %v551_v36 }
 0x3ab   :  { %2963 = vmatmul.msk.bf16.vlgmr.msra.gmra.mxu0 %vm408_vm10, %v553_v38 }
 0x3ae   :  { %v3828_v39 = vpop.eup %3827 }
 0x3af   :  { %v668_v40 = vmul.f32 %v3828_v39, %v4320_v57  ;;  %v665_v27 = vpop.xlane.xlu2 %664 }
 0x3b0   :  { %3829 = vrcp.f32 %v665_v27 }
 0x3b1   :  { %v670_v41 = vpack.c.bf16 %v668_v40, %v668_v40 }
 0x3b3   :  { %2966 = vmatmul.msk.bf16.vlgmr.msra.gmra.mxu3 %vm408_vm10, %v670_v41  ;;  %v3782_v41 = vld [vmem:[%s5194_s5] ss:$0 sm:$0xff] }
 0x3b6   :  { %v3830_v42 = vpop.eup %3829 }
 0x3b7   :  { %v669_v43 = vmul.f32 %v3830_v42, %v3816_v2  ;;  %v785_v44 = vpop.permute.xlu2 %784 }
 0x3b8   :  { %v790_v16 = vsel %vm436_vm8, %v785_v44, 0 }
 0x3b9   :  { %v671_v45 = vpack.c.bf16 %v669_v43, %v669_v43  ;;  %799 = vmatpush.bf16.msrb.mxu3 %v790_v16 }
 0x3bb   :  { %2967 = vmatmul.msk.bf16.vlgmr.msrb.gmra.mxu0 %vm408_vm10, %v671_v45 }
 0x3bc   :  { %v4347_v46 = vpop.f32.mrf.mxu3 }
 0x3bf   :  { %v806_v47 = vpop.permute.xlu2 %805 }
 0x3c0   :  { %v811_v48 = vsel %vm436_vm8, %v806_v47, 0 }
 0x3c1   :  { %v774_v49 = vpop.xlane.xlu1 %773  ;;  %820 = vmatpush.bf16.msra.mxu0 %v811_v48 }
 0x3c2   :  { %3831 = vrcp.f32 %v774_v49  ;;  %v468_v50 = vpop.f32.mrf.mxu0 }
 0x3c4   :  { %v451_v51 = vpop.f32.mrf.mxu3 }
 0x3c8   :  { %v3832_v52 = vpop.eup %3831 }
 0x3c9   :  { %v780_v11 = vmul.f32 %v3832_v52, %v3820_v14 }
 0x3ca   :  { %v470_v15 = vpop.f32.mrf.mxu0 }
 0x3cb   :  { %v782_v56 = vpack.c.bf16 %v780_v11, %v780_v11  ;;  %v3636_v15 = vld [vmem:[%s5153_s10 + $0x74] sm:$0xf0] }
 0x3cd   :  { %2970 = vmatmul.msk.bf16.vlgmr.msrb.gmra.mxu3 %vm408_vm10, %v782_v56  ;;  %v3635_v56 = vld [vmem:[%s5153_s10 + $0x74] sm:$0xf] }
 0x3f0   :  { %v777_v57 = vpop.xlane.xlu0 %776 }
 0x3f1   :  { %3833 = vrcp.f32 %v777_v57 }
 0x3f7   :  { %v3834_v59 = vpop.eup %3833 }
 0x3f8   :  { %v781_v60 = vmul.f32 %v3834_v59, %v3822_v25  ;;  %v3064_v59 = vld [vmem:[%s5153_s10 + $0x78] sm:$0xf0] }
 0x3fa   :  { %v783_v61 = vpack.c.bf16 %v781_v60, %v781_v60  ;;  %v3067_v60 = vor.u32 %v3635_v56, %v3064_v59 }
 0x3fc   :  { %2971 = vmatmul.msk.bf16.vlgmr.msra.gmra.mxu0 %vm408_vm10, %v783_v61  ;;  %1112 = vmatpush.bf16.msra.mxu3 %v3067_v60  ;;  %v3054_v61 = vld [vmem:[%s5153_s10 + $0x60] sm:$0xf] }
 0x420   :  { %v574_v62 = vpop.f32.mrf.mxu3 }
 0x428   :  { %v576_v63 = vpop.f32.mrf.mxu3  ;;  %v598_v0 = vpop.f32.mrf.mxu0 }
 0x429   :  { %v3748_v1 = vpack.i.bf16 %v598_v0, %v574_v62  ;;  %v3634_v62 = vld [vmem:[%s5153_s10 + $0x64] sm:$0xf0]  ;;  %v3633_v63 = vld [vmem:[%s5153_s10 + $0x64] sm:$0xf] }
 0x42a   :  { %v3055_v0 = vor.u32 %v3634_v62, %v3054_v61 }
 0x42b   :  { %3749 = vrot.lane.b32.xlu2 %v3748_v1, %s5173_s4  ;;  %v3056_v1 = vld [vmem:[%s5153_s10 + $0x68] sm:$0xf0] }
 0x430   :  { %v600_v2 = vpop.f32.mrf.mxu0 }
 0x431   :  { %v3059_v2 = vor.u32 %v3633_v63, %v3056_v1  ;;  %v3783_v63 = vld [vmem:[%s5151_s8] ss:$0 sm:$0xff] }
 0x433   :  { %1113 = vmatpush.bf16.msra.mxu3 %v3059_v2 }
 0x436   :  { %v689_v3 = vpop.f32.mrf.mxu3 }
 0x438   :  { %v710_v4 = vpop.f32.mrf.mxu0 }
 0x439   :  { %v3753_v5 = vpack.i.bf16 %v710_v4, %v689_v3  ;;  %v3046_v3 = vld [vmem:[%s5153_s10 + $0x50] sm:$0xf]  ;;  %v3632_v4 = vld [vmem:[%s5153_s10 + $0x54] sm:$0xf0] }
 0x43b   :  { %3754 = vrot.lane.b32.xlu1 %v3753_v5, %s5175_s0  ;;  %v3631_v5 = vld [vmem:[%s5153_s10 + $0x54] sm:$0xf] }
 0x43e   :  { %v691_v6 = vpop.f32.mrf.mxu3 }
 0x43f   :  { %v3047_v6 = vor.u32 %v3632_v4, %v3046_v3  ;;  %v3784_v4 = vld [vmem:[%s5152_s9] ss:$0 sm:$0xff] }
 0x440   :  { %v712_v7 = vpop.f32.mrf.mxu0 }
 0x441   :  { %v3048_v7 = vld [vmem:[%s5153_s10 + $0x58] sm:$0xf0] }
 0x450   :  { %v801_v9 = vpop.f32.mrf.mxu3 }
 0x458   :  { %v803_v10 = vpop.f32.mrf.mxu3 }
 0x459   :  { %v3038_v10 = vld [vmem:[%s5153_s10 + $0x40] sm:$0xf] }
 0x479   :  { %v822_v12 = vpop.f32.mrf.mxu0 }
 0x47a   :  { %v3758_v13 = vpack.i.bf16 %v822_v12, %v801_v9  ;;  %v3051_v9 = vor.u32 %v3631_v5, %v3048_v7  ;;  %v3630_v12 = vld [vmem:[%s5153_s10 + $0x44] sm:$0xf0] }
 0x47c   :  { %3759 = vrot.lane.b32.xlu2 %v3758_v13, %s5177_s3  ;;  %1114 = vmatpush.bf16.msra.mxu3 %v3051_v9  ;;  %v3629_v13 = vld [vmem:[%s5153_s10 + $0x44] sm:$0xf]  ;;  %v3644_v9 = vld [vmem:[%s5155_s12 + $0x38] sm:$0xff] }
 0x47d   :  { %v3043_v18 = vor.u32 %v3629_v13, %v3040_v17  ;;  %1296 = vmatpush.bf16.msrb.mxu0 %v3644_v9  ;;  %v3642_v13 = vld [vmem:[%s5155_s12 + $0x28] sm:$0xff]  ;;  %v3641_v17 = vld [vmem:[%s5155_s12 + $0x20] sm:$0xff] }
 0x480   :  { %1115 = vmatpush.bf16.msra.mxu3 %v3043_v18  ;;  %v3649_v18 = vld [vmem:[%s5155_s12 + $0x60] sm:$0xff] }
 0x481   :  { %v824_v14 = vpop.f32.mrf.mxu0 }
 0x482   :  { %v3039_v14 = vor.u32 %v3630_v12, %v3038_v10  ;;  %v3643_v10 = vld [vmem:[%s5155_s12 + $0x30] sm:$0xff] }
 0x483   :  { %v3651_v12 = vld [vmem:[%s5155_s12 + $0x70] sm:$0xff]  ;;  %1297 = vmatpush.bf16.msrb.mxu0 %v3643_v10 }
 0x484   :  { %1116 = vmatpush.bf16.msra.mxu3 %v3035_v24  ;;  %v3646_v24 = vld [vmem:[%s5155_s12 + $0x48] sm:$0xff] }
 0x485   :  { %v3750_v25 = vpop.permute.xlu2 %3749 }
 0x486   :  { %v3752_v28 = vunpack.i.h.bf16 %v3750_v25  ;;  %v3751_v29 = vunpack.i.l.bf16 %v3750_v25  ;;  %v3022_v25 = vld [vmem:[%s5153_s10 + $0x20] sm:$0xf] }
 0x487   :  { %1298 = vmatpush.bf16.msrb.mxu0 %v3642_v13 }
 0x488   :  { %v851_v33 = vsel %vm369_vm7, %v468_v50, %v3752_v28  ;;  %v850_v34 = vsel %vm369_vm7, %v4347_v46, %v3751_v29  ;;  %v3625_v28 = vld [vmem:[%s5153_s10 + $0x24] sm:$0xf] }
 0x48b   :  { %1299 = vmatpush.bf16.msrb.mxu0 %v3641_v17  ;;  %v3785_v17 = vld [vmem:[%s5156_s13] ss:$0 sm:$0xff] }
 0x48f   :  { %1300 = vmatpush.bf16.msrb.mxu0 %v3640_v19 }
 0x493   :  { %1301 = vmatpush.bf16.msrb.mxu0 %v3639_v21 }
 0x497   :  { %1302 = vmatpush.bf16.msrb.mxu0 %v3638_v23 }
 0x4ad   :  { %v3755_v26 = vpop.permute.xlu1 %3754 }
 0x4ae   :  { %v3757_v30 = vunpack.i.h.bf16 %v3755_v26  ;;  %v3756_v31 = vunpack.i.l.bf16 %v3755_v26  ;;  %v3626_v26 = vld [vmem:[%s5153_s10 + $0x24] sm:$0xf0] }
 0x4af   :  { %v3023_v29 = vor.u32 %v3626_v26, %v3022_v25  ;;  %v1012_v25 = vld [vmem:[%s5154_s11] sm:$0x3] }
 0x4b0   :  { %v853_v37 = vsel %vm852_vm12, %v850_v34, %v3756_v31  ;;  %v854_v38 = vsel %vm852_vm12, %v851_v33, %v3757_v30  ;;  %v3024_v30 = vld [vmem:[%s5153_s10 + $0x28] sm:$0xf0]  ;;  %v3624_v33 = vld [vmem:[%s5153_s10 + $0x14] sm:$0xf0]  ;;  %v3623_v34 = vld [vmem:[%s5153_s10 + $0x14] sm:$0xf] }
 0x4b1   :  { %v3027_v31 = vor.u32 %v3625_v28, %v3024_v30  ;;  %v3637_v26 = vld [vmem:[%s5155_s12] sm:$0xff]  ;;  %v1015_v30 = vperm.slane %v1012_v25, 1 }
 0x4b2   :  { %v3645_v28 = vld [vmem:[%s5155_s12 + $0x40] sm:$0xff]  ;;  %1303 = vmatpush.bf16.msrb.mxu0 %v3637_v26 }
 0x4b3   :  { %1117 = vmatpush.bf16.msra.mxu3 %v3027_v31 }
 0x4d6   :  { %v3760_v32 = vpop.permute.xlu2 %3759 }
 0x4d7   :  { %v3762_v35 = vunpack.i.h.bf16 %v3760_v32  ;;  %v3761_v36 = vunpack.i.l.bf16 %v3760_v32  ;;  %v3014_v32 = vld [vmem:[%s5153_s10 + $0x10] sm:$0xf] }
 0x4d9   :  { %v856_v39 = vsel %vm855_vm13, %v853_v37, %v3761_v36  ;;  %v857_v40 = vsel %vm855_vm13, %v854_v38, %v3762_v35  ;;  %v3015_v35 = vor.u32 %v3624_v33, %v3014_v32  ;;  %v3016_v36 = vld [vmem:[%s5153_s10 + $0x18] sm:$0xf0]  ;;  %v3006_v37 = vld [vmem:[%s5153_s10] sm:$0xf]  ;;  %v3622_v38 = vld [vmem:[%s5153_s10 + $0x4] sm:$0xf0] }
 0x4da   :  { %v874_v27 = vpack.c.bf16 %v857_v40, %v856_v39  ;;  %v3019_v40 = vor.u32 %v3623_v34, %v3016_v36 }
 0x4dc   :  { %935 = vmatmul.bf16.vlgmr.msra.gmra.mxu1 %v874_v27  ;;  %v3621_v27 = vld [vmem:[%s5153_s10 + $0x4] sm:$0xf]  ;;  %1118 = vmatpush.bf16.msra.mxu3 %v3019_v40 }
 0x559   :  { %v936_v42 = vpop.f32.mrf.mxu1 }
 0x55a   :  { %v937_v43 = vadd.f32 %v3782_v41, %v936_v42 }
 0x55c   :  { %v941_v44 = vadd.f32 %v937_v43, %v4228_v54  ;;  %v3007_v43 = vor.u32 %v3622_v38, %v3006_v37 }
 0x55e   :  { %945 = vadd.xlane.f32.xlu0 %v941_v44 }
 0x561   :  { %v938_v16 = vpop.f32.mrf.mxu1 }
 0x562   :  { %v939_v45 = vadd.f32 %v3782_v41, %v938_v16  ;;  %v3008_v41 = vld [vmem:[%s5153_s10 + $0x8] sm:$0xf0] }
 0x564   :  { %v942_v46 = vadd.f32 %v939_v45, %v4230_v55  ;;  %v3062_v55 = vld [vmem:[%s5153_s10 + $0x70] sm:$0xf] }
 0x565   :  { %v3063_v57 = vor.u32 %v3636_v15, %v3062_v55 }
 0x566   :  { %947 = vadd.xlane.f32.xlu2 %v942_v46 }
 0x567   :  { %1098 = vmatpush.bf16.msra.mxu2 %v3063_v57 }
 0x56b   :  { %1099 = vmatpush.bf16.msra.mxu2 %v3055_v0 }
 0x56f   :  { %1100 = vmatpush.bf16.msra.mxu2 %v3047_v6 }
 0x573   :  { %1101 = vmatpush.bf16.msra.mxu2 %v3039_v14  ;;  %v3650_v14 = vld [vmem:[%s5155_s12 + $0x68] sm:$0xff] }
 0x577   :  { %1102 = vmatpush.bf16.msra.mxu2 %v3031_v22  ;;  %v3647_v22 = vld [vmem:[%s5155_s12 + $0x50] sm:$0xff] }
 0x57b   :  { %1103 = vmatpush.bf16.msra.mxu2 %v3023_v29  ;;  %v1014_v29 = vperm.slane %v1012_v25, 0 }
 0x57f   :  { %1104 = vmatpush.bf16.msra.mxu2 %v3015_v35 }
 0x583   :  { %1105 = vmatpush.bf16.msra.mxu2 %v3007_v43 }
 0x5d1   :  { %v946_v47 = vpop.xlane.xlu0 %945 }
 0x5d2   :  { %v949_v48 = vmul.f32 %v946_v47, %v4062_v8 }
 0x5d4   :  { %v4392_v49 = vsub.f32 %v941_v44, %v949_v48  ;;  %v3011_v44 = vor.u32 %v3621_v27, %v3008_v41 }
 0x5d6   :  { %v953_v50 = vmul.f32 %v4392_v49, %v4392_v49  ;;  %1119 = vmatpush.bf16.msra.mxu3 %v3011_v44 }
 0x5d8   :  { %955 = vadd.xlane.f32.xlu0 %v953_v50 }
 0x5d9   :  { %v948_v51 = vpop.xlane.xlu2 %947 }
 0x5da   :  { %v950_v52 = vmul.f32 %v948_v51, %v4062_v8 }
 0x5dc   :  { %v4397_v11 = vsub.f32 %v942_v46, %v950_v52 }
 0x5de   :  { %v954_v54 = vmul.f32 %v4397_v11, %v4397_v11 }
 0x5e0   :  { %957 = vadd.xlane.f32.xlu0 %v954_v54 }
 0x64b   :  { %v956_v39 = vpop.xlane.xlu0 %955 }
 0x64c   :  { %v959_v42 = vmul.f32 %v956_v39, %v4062_v8 }
 0x64e   :  { %v961_v16 = vadd.f32 1e-12, %v959_v42 }
 0x650   :  { %3835 = vrsqrt.f32 %v961_v16  ;;  %vm969_vm15 = vweird.f32 %v961_v16 }
 0x653   :  { %v958_v45 = vpop.xlane.xlu0 %957 }
 0x654   :  { %v960_v46 = vmul.f32 %v958_v45, %v4062_v8 }
 0x656   :  { %v3836_v47 = vpop.eup %3835  ;;  %v962_v48 = vadd.f32 1e-12, %v960_v46 }
 0x657   :  { %v964_v50 = vmul.f32 %v3836_v47, %v961_v16  ;;  %vm970_vm14 = vweird.f32 %v3836_v47 }
 0x658   :  { %3837 = vrsqrt.f32 %v962_v48  ;;  %vm971_vm0 = vmor %vm969_vm15, %vm970_vm14  ;;  %vm979_vm2 = vweird.f32 %v962_v48 }
 0x659   :  { %v965_v51 = vmul.f32 %v3836_v47, %v964_v50 }
 0x65b   :  { %v966_v52 = vmul.f32 0.5, %v965_v51 }
 0x65d   :  { %v967_v54 = vsub.f32 1.5, %v966_v52 }
 0x65e   :  { %v3838_v55 = vpop.eup %3837 }
 0x65f   :  { %v968_v15 = vmul.f32 %v3836_v47, %v967_v54  ;;  %v974_v56 = vmul.f32 %v3838_v55, %v962_v48  ;;  %vm980_vm1 = vweird.f32 %v3838_v55 }
 0x660   :  { %vm981_vm3 = vmor %vm979_vm2, %vm980_vm1 }
 0x661   :  { %v975_v57 = vmul.f32 %v3838_v55, %v974_v56  ;;  %v972_v59 = vsel %vm971_vm0, %v3836_v47, %v968_v15 }
 0x662   :  { %v983_v62 = vmul.f32 %v972_v59, %v4392_v49 }
 0x663   :  { %v976_v60 = vmul.f32 0.5, %v975_v57 }
 0x664   :  { %v988_v3 = vmul.f32 %v3783_v63, %v983_v62 }
 0x665   :  { %v977_v61 = vsub.f32 1.5, %v976_v60 }
 0x666   :  { %v4507_v6 = vadd.f32 %v3784_v4, %v988_v3 }
 0x667   :  { %v978_v0 = vmul.f32 %v3838_v55, %v977_v61 }
 0x669   :  { %v982_v1 = vsel %vm981_vm3, %v3838_v55, %v978_v0 }
 0x66a   :  { %v984_v2 = vmul.f32 %v982_v1, %v4397_v11  ;;  %v3652_v11 = vld [vmem:[%s5155_s12 + $0x78] sm:$0xff] }
 0x66b   :  { %1310 = vmatpush.bf16.msrb.mxu1 %v3652_v11 }
 0x66c   :  { %v989_v5 = vmul.f32 %v3783_v63, %v984_v2 }
 0x66e   :  { %v4509_v7 = vadd.f32 %v3784_v4, %v989_v5 }
 0x66f   :  { %1311 = vmatpush.bf16.msrb.mxu1 %v3651_v12 }
 0x670   :  { %v1011_v49 = vpack.c.bf16 %v4509_v7, %v4507_v6 }
 0x672   :  { %1106 = vmatmul.bf16.vlgmr.msra.gmra.mxu2 %v1011_v49  ;;  %1120 = vmatmul.bf16.vlgmr.msra.gmra.mxu3 %v1011_v49 }
 0x673   :  { %1312 = vmatpush.bf16.msrb.mxu1 %v3650_v14 }
 0x677   :  { %1313 = vmatpush.bf16.msrb.mxu1 %v3649_v18 }
 0x67b   :  { %1314 = vmatpush.bf16.msrb.mxu1 %v3648_v20 }
 0x67f   :  { %1315 = vmatpush.bf16.msrb.mxu1 %v3647_v22 }
 0x683   :  { %1316 = vmatpush.bf16.msrb.mxu1 %v3646_v24 }
 0x687   :  { %1317 = vmatpush.bf16.msrb.mxu1 %v3645_v28 }
 0x6f5   :  { %v1107_v31 = vpop.f32.mrf.mxu2  ;;  %v1121_v32 = vpop.f32.mrf.mxu3 }
 0x6f6   :  { %v1108_v33 = vadd.f32 %v1107_v31, %v1014_v29  ;;  %v1122_v34 = vadd.f32 %v1121_v32, %v1015_v30 }
 0x6f8   :  { %v1130_v35 = vmul.f32 0.044715, %v1108_v33  ;;  %v1131_v36 = vmul.f32 0.044715, %v1122_v34  ;;  %v1126_v1 = vmul.f32 0.5, %v1108_v33  ;;  %v1127_v4 = vmul.f32 0.5, %v1122_v34 }
 0x6fa   :  { %v1134_v37 = vmul.f32 %v1130_v35, %v1108_v33  ;;  %v1135_v38 = vmul.f32 %v1131_v36, %v1122_v34  ;;  %v3675_v36 = vld [vmem:[%s5188_s2 + $0x170] sm:$0xf0] }
 0x6fc   :  { %v1138_v39 = vmul.f32 %v1134_v37, %v1108_v33  ;;  %v1139_v40 = vmul.f32 %v1135_v38, %v1122_v34  ;;  %v3674_v37 = vld [vmem:[%s5188_s2 + $0x16c] sm:$0xf] }
 0x6fd   :  { %v1109_v27 = vpop.f32.mrf.mxu2  ;;  %v1123_v41 = vpop.f32.mrf.mxu3 }
 0x6fe   :  { %v1142_v42 = vadd.f32 %v1138_v39, %v1108_v33  ;;  %v1110_v43 = vadd.f32 %v1109_v27, %v1014_v29  ;;  %v1124_v44 = vadd.f32 %v1123_v41, %v1015_v30  ;;  %v1143_v16 = vadd.f32 %v1139_v40, %v1122_v34  ;;  %v3253_v39 = vld [vmem:[%s5188_s2 + $0x174] sm:$0xf0]  ;;  %v3259_v40 = vld [vmem:[%s5188_s2 + $0x170] sm:$0xf]  ;;  %v3676_v27 = vld [vmem:[%s5188_s2 + $0x178] sm:$0xf0] }
 0x6ff   :  { %v3256_v41 = vor.u32 %v3674_v37, %v3253_v39 }
 0x700   :  { %v1132_v45 = vmul.f32 0.044715, %v1110_v43  ;;  %v1133_v46 = vmul.f32 0.044715, %v1124_v44  ;;  %v1146_v47 = vmul.f32 0.7978846, %v1142_v42  ;;  %v3260_v42 = vor.u32 %v3676_v27, %v3259_v40 }
 0x701   :  { %v1147_v50 = vmul.f32 0.7978846, %v1143_v16  ;;  %v1128_v2 = vmul.f32 0.5, %v1110_v43  ;;  %v1129_v5 = vmul.f32 0.5, %v1124_v44  ;;  %1563 = vmatpush.bf16.msrb.mxu3 %v3256_v41  ;;  %v3671_v16 = vld [vmem:[%s5188_s2 + $0x154] sm:$0xf] }
 0x702   :  { %v1136_v48 = vmul.f32 %v1132_v45, %v1110_v43  ;;  %v1137_v51 = vmul.f32 %v1133_v46, %v1124_v44  ;;  %3839 = vtanh.f32 %v1146_v47  ;;  %1577 = vmatpush.bf16.msra.mxu0 %v3260_v42  ;;  %v3241_v46 = vld [vmem:[%s5188_s2 + $0x15c] sm:$0xf0]  ;;  %v3247_v47 = vld [vmem:[%s5188_s2 + $0x158] sm:$0xf]  ;;  %v3654_v27 = vld [vmem:[%s5188_s2 + $0xc8] sm:$0xf0] }
 0x703   :  { %3841 = vtanh.f32 %v1147_v50  ;;  %v3244_v50 = vor.u32 %v3671_v16, %v3241_v46  ;;  %v3167_v40 = vld [vmem:[%s5188_s2 + $0xc0] sm:$0xf]  ;;  %v3653_v41 = vld [vmem:[%s5188_s2 + $0xc4] sm:$0xf]  ;;  %v3175_v16 = vld [vmem:[%s5188_s2 + $0xc8] sm:$0xf] }
 0x704   :  { %v1140_v52 = vmul.f32 %v1136_v48, %v1110_v43  ;;  %v1141_v54 = vmul.f32 %v1137_v51, %v1124_v44  ;;  %v3673_v48 = vld [vmem:[%s5188_s2 + $0x160] sm:$0xf0] }
 0x705   :  { %v3248_v51 = vor.u32 %v3673_v48, %v3247_v47  ;;  %1564 = vmatpush.bf16.msrb.mxu3 %v3244_v50 }
 0x706   :  { %v1144_v55 = vadd.f32 %v1140_v52, %v1110_v43  ;;  %v1145_v15 = vadd.f32 %v1141_v54, %v1124_v44  ;;  %v3239_v43 = vld [vmem:[%s5188_s2 + $0x150] sm:$0xf]  ;;  %v3672_v44 = vld [vmem:[%s5188_s2 + $0x158] sm:$0xf0]  ;;  %v3227_v52 = vld [vmem:[%s5188_s2 + $0x138] sm:$0xf] }
 0x707   :  { %v3240_v45 = vor.u32 %v3672_v44, %v3239_v43  ;;  %1578 = vmatpush.bf16.msra.mxu0 %v3248_v51  ;;  %v3669_v54 = vld [vmem:[%s5188_s2 + $0x140] sm:$0xf0]  ;;  %v3168_v43 = vor.u32 %v3654_v27, %v3167_v40  ;;  %v3169_v44 = vld [vmem:[%s5188_s2 + $0xcc] sm:$0xf0] }
 0x708   :  { %v1148_v56 = vmul.f32 0.7978846, %v1144_v55  ;;  %v1149_v57 = vmul.f32 0.7978846, %v1145_v15  ;;  %v3840_v59 = vpop.eup %3839  ;;  %v3668_v55 = vld [vmem:[%s5188_s2 + $0x13c] sm:$0xf]  ;;  %v3228_v15 = vor.u32 %v3669_v54, %v3227_v52  ;;  %v3172_v46 = vor.u32 %v3653_v41, %v3169_v44 }
 0x709   :  { %v3842_v60 = vpop.eup %3841  ;;  %v1154_v61 = vadd.f32 1.0, %v3840_v59  ;;  %v3670_v59 = vld [vmem:[%s5188_s2 + $0x148] sm:$0xf0] }
 0x70a   :  { %3843 = vtanh.f32 %v1148_v56  ;;  %v1155_v63 = vadd.f32 1.0, %v3842_v60  ;;  %v3229_v56 = vld [vmem:[%s5188_s2 + $0x144] sm:$0xf0] }
 0x70b   :  { %3845 = vtanh.f32 %v1149_v57  ;;  %v1158_v9 = vmul.f32 %v1154_v61, %v1126_v1  ;;  %v3235_v57 = vld [vmem:[%s5188_s2 + $0x140] sm:$0xf]  ;;  %v3232_v60 = vor.u32 %v3668_v55, %v3229_v56 }
 0x70c   :  { %v1159_v10 = vmul.f32 %v1155_v63, %v1127_v4  ;;  %v3236_v61 = vor.u32 %v3670_v59, %v3235_v57  ;;  %v3666_v63 = vld [vmem:[%s5188_s2 + $0x128] sm:$0xf0]  ;;  %v3667_v4 = vld [vmem:[%s5188_s2 + $0x130] sm:$0xf0] }
 0x70d   :  { %1565 = vmatpush.bf16.msrb.mxu3 %v3232_v60 }
 0x70e   :  { %1579 = vmatpush.bf16.msra.mxu0 %v3236_v61 }
 0x710   :  { %v3844_v62 = vpop.eup %3843 }
 0x711   :  { %v3846_v0 = vpop.eup %3845  ;;  %v1156_v3 = vadd.f32 1.0, %v3844_v62  ;;  %v3215_v62 = vld [vmem:[%s5188_s2 + $0x120] sm:$0xf] }
 0x712   :  { %v1157_v49 = vadd.f32 1.0, %v3846_v0  ;;  %v3665_v0 = vld [vmem:[%s5188_s2 + $0x124] sm:$0xf]  ;;  %v3216_v1 = vor.u32 %v3666_v63, %v3215_v62 }
 0x713   :  { %v1160_v11 = vmul.f32 %v1156_v3, %v1128_v2  ;;  %v3217_v2 = vld [vmem:[%s5188_s2 + $0x12c] sm:$0xf0]  ;;  %v3223_v3 = vld [vmem:[%s5188_s2 + $0x128] sm:$0xf] }
 0x714   :  { %v1161_v12 = vmul.f32 %v1157_v49, %v1129_v5  ;;  %v3220_v5 = vor.u32 %v3665_v0, %v3217_v2  ;;  %v3224_v49 = vor.u32 %v3667_v4, %v3223_v3  ;;  %v3786_v3 = vld [vmem:[%s5157_s14] ss:$0 sm:$0xff] }
 0x715   :  { %v1194_v13 = vpack.c.bf16 %v1160_v11, %v1158_v9  ;;  %v3203_v9 = vld [vmem:[%s5188_s2 + $0x108] sm:$0xf]  ;;  %v3663_v11 = vld [vmem:[%s5188_s2 + $0x110] sm:$0xf0] }
 0x716   :  { %v1195_v14 = vpack.c.bf16 %v1161_v12, %v1159_v10  ;;  %1566 = vmatpush.bf16.msrb.mxu3 %v3220_v5  ;;  %1580 = vmatpush.bf16.msra.mxu0 %v3224_v49  ;;  %v3662_v10 = vld [vmem:[%s5188_s2 + $0x10c] sm:$0xf]  ;;  %v3204_v12 = vor.u32 %v3663_v11, %v3203_v9  ;;  %v3787_v11 = vld [vmem:[%s5158_s15] ss:$0 sm:$0xff] }
 0x717   :  { %1304 = vmatmul.bf16.vlgmr.msrb.gmra.mxu0 %v1194_v13  ;;  %v3205_v13 = vld [vmem:[%s5188_s2 + $0x114] sm:$0xf0] }
 0x718   :  { %1318 = vmatmul.bf16.vlgmr.msrb.gmra.mxu1 %v1195_v14  ;;  %v3211_v14 = vld [vmem:[%s5188_s2 + $0x110] sm:$0xf] }
 0x794   :  { %v1305_v18 = vpop.f32.mrf.mxu0 }
 0x795   :  { %v1306_v19 = vadd.f32 %v3785_v17, %v1305_v18  ;;  %v1319_v20 = vpop.f32.mrf.mxu1  ;;  %v3208_v18 = vor.u32 %v3662_v10, %v3205_v13 }
 0x797   :  { %v1320_v21 = vadd.f32 %v1319_v20, %v1306_v19  ;;  %1567 = vmatpush.bf16.msrb.mxu3 %v3208_v18  ;;  %v3191_v20 = vld [vmem:[%s5188_s2 + $0xf0] sm:$0xf] }
 0x799   :  { %v1324_v22 = vadd.f32 %v1320_v21, %v4507_v6  ;;  %v3660_v21 = vld [vmem:[%s5188_s2 + $0xf8] sm:$0xf0] }
 0x79b   :  { %1328 = vadd.xlane.f32.xlu1 %v1324_v22 }
 0x79c   :  { %v1307_v23 = vpop.f32.mrf.mxu0 }
 0x79d   :  { %v1308_v24 = vadd.f32 %v3785_v17, %v1307_v23  ;;  %v1321_v25 = vpop.f32.mrf.mxu1  ;;  %v3664_v17 = vld [vmem:[%s5188_s2 + $0x118] sm:$0xf0]  ;;  %v3192_v23 = vor.u32 %v3660_v21, %v3191_v20 }
 0x79e   :  { %v3212_v19 = vor.u32 %v3664_v17, %v3211_v14 }
 0x79f   :  { %v1322_v26 = vadd.f32 %v1321_v25, %v1308_v24  ;;  %v3193_v24 = vld [vmem:[%s5188_s2 + $0xfc] sm:$0xf0]  ;;  %v3199_v25 = vld [vmem:[%s5188_s2 + $0xf8] sm:$0xf] }
 0x7a0   :  { %1581 = vmatpush.bf16.msra.mxu0 %v3212_v19 }
 0x7a1   :  { %v1325_v28 = vadd.f32 %v1322_v26, %v4509_v7  ;;  %v3251_v7 = vld [vmem:[%s5188_s2 + $0x168] sm:$0xf]  ;;  %v3661_v26 = vld [vmem:[%s5188_s2 + $0x100] sm:$0xf0] }
 0x7a2   :  { %v3252_v38 = vor.u32 %v3675_v36, %v3251_v7  ;;  %v3187_v7 = vld [vmem:[%s5188_s2 + $0xe0] sm:$0xf]  ;;  %v3658_v36 = vld [vmem:[%s5188_s2 + $0xe8] sm:$0xf0] }
 0x7a3   :  { %1330 = vadd.xlane.f32.xlu0 %v1325_v28  ;;  %v3188_v39 = vor.u32 %v3658_v36, %v3187_v7 }
 0x7a4   :  { %1549 = vmatpush.bf16.msrb.mxu2 %v3252_v38 }
 0x7a8   :  { %1550 = vmatpush.bf16.msrb.mxu2 %v3240_v45  ;;  %v3655_v45 = vld [vmem:[%s5188_s2 + $0xd0] sm:$0xf0] }
 0x7a9   :  { %v3176_v47 = vor.u32 %v3655_v45, %v3175_v16 }
 0x7ac   :  { %1551 = vmatpush.bf16.msrb.mxu2 %v3228_v15 }
 0x7b0   :  { %1552 = vmatpush.bf16.msrb.mxu2 %v3216_v1 }
 0x7b4   :  { %1553 = vmatpush.bf16.msrb.mxu2 %v3204_v12 }
 0x7b8   :  { %1554 = vmatpush.bf16.msrb.mxu2 %v3192_v23 }
 0x80e   :  { %v1329_v29 = vpop.xlane.xlu1 %1328 }
 0x80f   :  { %v1332_v30 = vmul.f32 %v1329_v29, %v4062_v8  ;;  %v3200_v29 = vor.u32 %v3661_v26, %v3199_v25 }
 0x811   :  { %v4570_v31 = vsub.f32 %v1324_v22, %v1332_v30  ;;  %v3659_v22 = vld [vmem:[%s5188_s2 + $0xf4] sm:$0xf]  ;;  %1582 = vmatpush.bf16.msra.mxu0 %v3200_v29  ;;  %v3179_v30 = vld [vmem:[%s5188_s2 + $0xd8] sm:$0xf] }
 0x813   :  { %v1336_v32 = vmul.f32 %v4570_v31, %v4570_v31 }
 0x815   :  { %1338 = vadd.xlane.f32.xlu0 %v1336_v32  ;;  %v3657_v32 = vld [vmem:[%s5188_s2 + $0xe0] sm:$0xf0]  ;;  %1583 = vmatpush.bf16.msra.mxu0 %v3188_v39 }
 0x816   :  { %v1331_v33 = vpop.xlane.xlu0 %1330 }
 0x817   :  { %v1333_v6 = vmul.f32 %v1331_v33, %v4062_v8  ;;  %v3656_v33 = vld [vmem:[%s5188_s2 + $0xdc] sm:$0xf] }
 0x819   :  { %v4575_v34 = vsub.f32 %v1325_v28, %v1333_v6  ;;  %v3196_v28 = vor.u32 %v3659_v22, %v3193_v24  ;;  %v3180_v6 = vor.u32 %v3657_v32, %v3179_v30  ;;  %1584 = vmatpush.bf16.msra.mxu0 %v3176_v47 }
 0x81b   :  { %v1337_v35 = vmul.f32 %v4575_v34, %v4575_v34  ;;  %1568 = vmatpush.bf16.msrb.mxu3 %v3196_v28  ;;  %1555 = vmatpush.bf16.msrb.mxu2 %v3180_v6 }
 0x81d   :  { %1340 = vadd.xlane.f32.xlu0 %v1337_v35  ;;  %v3181_v35 = vld [vmem:[%s5188_s2 + $0xe4] sm:$0xf0] }
 0x81e   :  { %v3184_v38 = vor.u32 %v3656_v33, %v3181_v35 }
 0x81f   :  { %1556 = vmatpush.bf16.msrb.mxu2 %v3168_v43 }
 0x820   :  { %1569 = vmatpush.bf16.msrb.mxu3 %v3184_v38 }
 0x824   :  { %1570 = vmatpush.bf16.msrb.mxu3 %v3172_v46 }
 0x888   :  { %v1339_v37 = vpop.xlane.xlu0 %1338 }
 0x889   :  { %v1342_v42 = vmul.f32 %v1339_v37, %v4062_v8 }
 0x88b   :  { %v1344_v48 = vadd.f32 1e-12, %v1342_v42 }
 0x88d   :  { %3847 = vrsqrt.f32 %v1344_v48  ;;  %vm1352_vm5 = vweird.f32 %v1344_v48 }
 0x890   :  { %v1341_v50 = vpop.xlane.xlu0 %1340 }
 0x891   :  { %v1343_v51 = vmul.f32 %v1341_v50, %v4062_v8 }
 0x893   :  { %v3848_v52 = vpop.eup %3847  ;;  %v1345_v54 = vadd.f32 1e-12, %v1343_v51 }
 0x894   :  { %v1347_v55 = vmul.f32 %v3848_v52, %v1344_v48  ;;  %vm1353_vm4 = vweird.f32 %v3848_v52 }
 0x895   :  { %3849 = vrsqrt.f32 %v1345_v54  ;;  %vm1354_vm6 = vmor %vm1352_vm5, %vm1353_vm4  ;;  %vm1362_vm11 = vweird.f32 %v1345_v54 }
 0x896   :  { %v1348_v15 = vmul.f32 %v3848_v52, %v1347_v55 }
 0x898   :  { %v1349_v56 = vmul.f32 0.5, %v1348_v15 }
 0x89a   :  { %v1350_v57 = vsub.f32 1.5, %v1349_v56 }
 0x89b   :  { %v3850_v59 = vpop.eup %3849 }
 0x89c   :  { %v1351_v60 = vmul.f32 %v3848_v52, %v1350_v57  ;;  %v1357_v61 = vmul.f32 %v3850_v59, %v1345_v54  ;;  %vm1363_vm9 = vweird.f32 %v3850_v59 }
 0x89d   :  { %vm1364_vm14 = vmor %vm1362_vm11, %vm1363_vm9  ;;  %vm2616_vm9 = vcmask 1040384  }
 0x89e   :  { %v1358_v62 = vmul.f32 %v3850_v59, %v1357_v61  ;;  %v1355_v63 = vsel %vm1354_vm6, %v3848_v52, %v1351_v60 }
 0x89f   :  { %v1366_v2 = vmul.f32 %v1355_v63, %v4570_v31 }
 0x8a0   :  { %v1359_v0 = vmul.f32 0.5, %v1358_v62 }
 0x8a1   :  { %v1371_v9 = vmul.f32 %v3786_v3, %v1366_v2 }
 0x8a2   :  { %v1360_v1 = vsub.f32 1.5, %v1359_v0 }
 0x8a3   :  { %v4733_v12 = vadd.f32 %v3787_v11, %v1371_v9 }
 0x8a4   :  { %v1361_v4 = vmul.f32 %v3850_v59, %v1360_v1 }
 0x8a6   :  { %v1365_v5 = vsel %vm1364_vm14, %v3850_v59, %v1361_v4 }
 0x8a7   :  { %v1367_v49 = vmul.f32 %v1365_v5, %v4575_v34  ;;  %v3164_v34 = vld [vmem:[%s5191_s29 + $0x3] sm:$0x7]  ;;  %s5195_s29 = smov 96  }
 0x8a8   :  { %v1417_v14 = vperm.slane %v3164_v34, 2  ;;  %v1415_v19 = vperm.slane %v3164_v34, 0  ;;  %v1416_v20 = vperm.slane %v3164_v34, 1 }
 0x8a9   :  { %v1372_v10 = vmul.f32 %v3786_v3, %v1367_v49 }
 0x8ab   :  { %v4735_v13 = vadd.f32 %v3787_v11, %v1372_v10 }
 0x8ad   :  { %v1411_v31 = vpack.c.bf16 %v4735_v13, %v4733_v12 }
 0x8af   :  { %1557 = vmatmul.bf16.vlgmr.msrb.gmra.mxu2 %v1411_v31  ;;  %1571 = vmatmul.bf16.vlgmr.msrb.gmra.mxu3 %v1411_v31 }
 0x8b0   :  { %1585 = vmatmul.bf16.vlgmr.msra.gmra.mxu0 %v1411_v31 }
 0x92d   :  { %v1586_v17 = vpop.f32.mrf.mxu0 }
 0x92e   :  { %v1587_v18 = vadd.f32 %v1586_v17, %v1417_v14 }
 0x930   :  { %v4742_v21 = vpack.c.bf16 %v1587_v18, %v1587_v18 }
 0x932   :  { %v1663_v22 = vsel %vm436_vm8, %v4742_v21, 0  ;;  %v1558_v23 = vpop.f32.mrf.mxu2  ;;  %v1572_v24 = vpop.f32.mrf.mxu3 }
 0x933   :  { %v1559_v25 = vadd.f32 %v1558_v23, %v1415_v19  ;;  %v1573_v26 = vadd.f32 %v1572_v24, %v1416_v20  ;;  %1672 = vmatpush.bf16.msra.mxu3 %v1663_v22 }
 0x935   :  { %v1591_v28 = vpack.c.bf16 %v1559_v25, %v1559_v25  ;;  %v1593_v29 = vpack.c.bf16 %v1573_v26, %v1573_v26  ;;  %v1588_v30 = vpop.f32.mrf.mxu0 }
 0x936   :  { %v1589_v32 = vadd.f32 %v1588_v30, %v1417_v14  ;;  %v1780_v30 = vunpack.c.l.b16 %v4742_v21 }
 0x937   :  { %v1698_v33 = vunpack.c.l.b16 %v1591_v28  ;;  %v1601_v6 = vsel %vm369_vm7, %v1593_v29, 0  ;;  %v1703_v35 = vunpack.c.l.b16 %v1593_v29 }
 0x938   :  { %v4747_v7 = vpack.c.bf16 %v1589_v32, %v1589_v32  ;;  %1610 = vmatpush.bf16.xpose.msra.mxu1 %v1601_v6 }
 0x939   :  { %v1699_v36 = vpack.c.b16 %v1698_v33, %v1698_v33  ;;  %v1704_v37 = vpack.c.b16 %v1703_v35, %v1703_v35  ;;  %v4789_v35 = vpack.c.b16 %v1780_v30, %v1780_v30 }
 0x93a   :  { %v1682_v38 = vsel %vm436_vm8, %v4747_v7, 0  ;;  %v1560_v39 = vpop.f32.mrf.mxu2  ;;  %v1574_v40 = vpop.f32.mrf.mxu3 }
 0x93b   :  { %v1575_v27 = vadd.f32 %v1574_v40, %v1416_v20  ;;  %1691 = vmatpush.bf16.msrb.mxu0 %v1682_v38  ;;  %1705 = vrot.lane.b32.xlu2 %v1704_v37, %s5195_s29  ;;  %v1561_v41 = vadd.f32 %v1560_v39, %v1415_v19 }
 0x93c   :  { %1700 = vrot.lane.b32.xlu1 %v1699_v36, %s5195_s29 }
 0x93d   :  { %v1594_v42 = vpack.c.bf16 %v1575_v27, %v1575_v27  ;;  %v1592_v16 = vpack.c.bf16 %v1561_v41, %v1561_v41 }
 0x93f   :  { %v1620_v43 = vsel %vm369_vm7, %v1594_v42, 0  ;;  %v1732_v44 = vunpack.c.l.b16 %v1594_v42  ;;  %3261 = vmatmul.msk.bf16.vlgmr.msra.gmra.mxu1 %vm369_vm7, %v1591_v28  ;;  %v1727_v46 = vunpack.c.l.b16 %v1592_v16 }
 0x940   :  { %1629 = vmatpush.bf16.xpose.msra.mxu2 %v1620_v43 }
 0x941   :  { %v1733_v45 = vpack.c.b16 %v1732_v44, %v1732_v44  ;;  %v1728_v47 = vpack.c.b16 %v1727_v46, %v1727_v46 }
 0x943   :  { %1734 = vrot.lane.b32.xlu0 %v1733_v45, %s5195_s29  ;;  %1829 = vrot.lane.b32.xlu2 %v1704_v37, %s5196_s26 }
 0x944   :  { %1941 = vrot.lane.b32.xlu1 %v1704_v37, %s5197_s6 }
 0x947   :  { %3262 = vmatmul.msk.bf16.vlgmr.msra.gmra.mxu2 %vm369_vm7, %v1592_v16 }
 0x94b   :  { %1729 = vrot.lane.b32.xlu0 %v1728_v47, %s5195_s29  ;;  %1827 = vrot.lane.b32.xlu2 %v1699_v36, %s5196_s26 }
 0x94c   :  { %1962 = vrot.lane.b32.xlu1 %v1728_v47, %s5197_s6 }
 0x953   :  { %1852 = vrot.lane.b32.xlu0 %v1733_v45, %s5196_s26  ;;  %1964 = vrot.lane.b32.xlu2 %v1733_v45, %s5197_s6 }
 0x95b   :  { %1850 = vrot.lane.b32.xlu0 %v1728_v47, %s5196_s26 }
 0x963   :  { %1939 = vrot.lane.b32.xlu0 %v1699_v36, %s5197_s6 }
 0x995   :  { %v1706_v48 = vpop.permute.xlu2 %1705 }
 0x996   :  { %v1711_v50 = vsel %vm369_vm7, %v1706_v48, 0 }
 0x997   :  { %1720 = vmatpush.bf16.xpose.msrb.mxu1 %v1711_v50 }
 0x99d   :  { %v1830_v51 = vpop.permute.xlu2 %1829 }
 0x99e   :  { %v1835_v52 = vsel %vm369_vm7, %v1830_v51, 0 }
 0x99f   :  { %1844 = vmatpush.bf16.xpose.msra.mxu1 %v1835_v52 }
 0x9a5   :  { %v1828_v59 = vpop.permute.xlu2 %1827 }
 0x9ad   :  { %v1965_v0 = vpop.permute.xlu2 %1964 }
 0x9ae   :  { %v1701_v54 = vpop.permute.xlu1 %1700  ;;  %v1970_v4 = vsel %vm369_vm7, %v1965_v0, 0 }
 0x9af   :  { %3265 = vmatmul.msk.bf16.vlgmr.msrb.gmra.mxu1 %vm369_vm7, %v1701_v54 }
 0x9b5   :  { %v1735_v55 = vpop.permute.xlu0 %1734 }
 0x9b6   :  { %v1740_v15 = vsel %vm369_vm7, %v1735_v55, 0  ;;  %v1942_v56 = vpop.permute.xlu1 %1941 }
 0x9b7   :  { %v1947_v57 = vsel %vm369_vm7, %v1942_v56, 0  ;;  %1749 = vmatpush.bf16.xpose.msrb.mxu2 %v1740_v15 }
 0x9b8   :  { %1956 = vmatpush.bf16.xpose.msrb.mxu1 %v1947_v57 }
 0x9bc   :  { %v1612_v60 = vpop.f32.mrf.mxu1 }
 0x9bd   :  { %v1613_v61 = vadd.f32 %v1612_v60, %v4277_v53  ;;  %v1730_v62 = vpop.permute.xlu0 %1729 }
 0x9be   :  { %3266 = vmatmul.msk.bf16.vlgmr.msrb.gmra.mxu2 %vm369_vm7, %v1730_v62  ;;  %v1963_v34 = vpop.permute.xlu1 %1962 }
 0x9bf   :  { %3269 = vmatmul.msk.bf16.vlgmr.msra.gmra.mxu1 %vm369_vm7, %v1828_v59  ;;  %v1635_v63 = vsel %vm408_vm10, %v1613_v61, -inf }
 0x9c0   :  { %1636 = vmax.xlane.f32.xlu2 %v1635_v63 }
 0x9c4   :  { %v1614_v1 = vpop.f32.mrf.mxu1 }
 0x9c5   :  { %v1853_v2 = vpop.permute.xlu0 %1852 }
 0x9c6   :  { %v1858_v3 = vsel %vm369_vm7, %v1853_v2, 0 }
 0x9c7   :  { %1867 = vmatpush.bf16.xpose.msra.mxu2 %v1858_v3 }
 0x9ca   :  { %v1631_v5 = vpop.f32.mrf.mxu2 }
 0x9cb   :  { %v1632_v49 = vadd.f32 %v1631_v5, %v4282_v58 }
 0x9cd   :  { %v1851_v9 = vpop.permute.xlu0 %1850  ;;  %v1638_v11 = vsel %vm408_vm10, %v1632_v49, -inf }
 0x9ce   :  { %3270 = vmatmul.msk.bf16.vlgmr.msra.gmra.mxu2 %vm369_vm7, %v1851_v9  ;;  %1639 = vmax.xlane.f32.xlu0 %v1638_v11 }
 0x9cf   :  { %1979 = vmatpush.bf16.xpose.msrb.mxu2 %v1970_v4 }
 0x9d2   :  { %v1633_v10 = vpop.f32.mrf.mxu2 }
 0x9d5   :  { %v1940_v31 = vpop.permute.xlu0 %1939 }
 0x9d6   :  { %3273 = vmatmul.msk.bf16.vlgmr.msrb.gmra.mxu1 %vm369_vm7, %v1940_v31 }
 0x9de   :  { %3274 = vmatmul.msk.bf16.vlgmr.msrb.gmra.mxu2 %vm369_vm7, %v1963_v34 }
 0xa2c   :  { %v1722_v14 = vpop.f32.mrf.mxu1 }
 0xa2d   :  { %v1723_v17 = vadd.f32 %v1722_v14, %v4277_v53 }
 0xa2f   :  { %v1755_v18 = vsel %vm408_vm10, %v1723_v17, -inf }
 0xa30   :  { %1756 = vmax.xlane.f32.xlu1 %v1755_v18 }
 0xa33   :  { %v1637_v19 = vpop.xlane.xlu2 %1636 }
 0xa34   :  { %v1724_v20 = vpop.f32.mrf.mxu1  ;;  %v1641_v22 = vsub.f32 %v1613_v61, %v1637_v19 }
 0xa36   :  { %v1643_v23 = vmul.f32 1.442695, %v1641_v22 }
 0xa38   :  { %3851 = vpow2.f32 %v1643_v23 }
 0xa3c   :  { %v1846_v24 = vpop.f32.mrf.mxu1 }
 0xa3d   :  { %v1847_v32 = vadd.f32 %v1846_v24, %v4277_v53 }
 0xa3e   :  { %v3852_v25 = vpop.eup %3851 }
 0xa3f   :  { %v1647_v26 = vsel %vm408_vm10, %v3852_v25, 0.0  ;;  %v1873_v36 = vsel %vm408_vm10, %v1847_v32, -inf }
 0xa40   :  { %1648 = vadd.xlane.f32.xlu0 %v1647_v26 }
 0xa41   :  { %v1751_v28 = vpop.f32.mrf.mxu2  ;;  %v1640_v42 = vpop.xlane.xlu0 %1639 }
 0xa42   :  { %v1752_v29 = vadd.f32 %v1751_v28, %v4282_v58  ;;  %v1642_v43 = vsub.f32 %v1632_v49, %v1640_v42 }
 0xa44   :  { %v1848_v33 = vpop.f32.mrf.mxu1  ;;  %v1758_v6 = vsel %vm408_vm10, %v1752_v29, -inf  ;;  %v1645_v46 = vmul.f32 1.442695, %v1642_v43 }
 0xa45   :  { %1759 = vmax.xlane.f32.xlu2 %v1758_v6 }
 0xa46   :  { %3853 = vpow2.f32 %v1645_v46 }
 0xa48   :  { %1874 = vmax.xlane.f32.xlu0 %v1873_v36 }
 0xa49   :  { %1782 = vrot.lane.b32.xlu1 %v4789_v35, %s5195_s29  ;;  %v1753_v37 = vpop.f32.mrf.mxu2 }
 0xa4c   :  { %v3854_v48 = vpop.eup %3853 }
 0xa4d   :  { %v1650_v50 = vsel %vm408_vm10, %v3854_v48, 0.0 }
 0xa51   :  { %v1869_v38 = vpop.f32.mrf.mxu2 }
 0xa52   :  { %v1870_v39 = vadd.f32 %v1869_v38, %v4282_v58 }
 0xa53   :  { %v1958_v40 = vpop.f32.mrf.mxu1 }
 0xa54   :  { %v1876_v21 = vsel %vm408_vm10, %v1870_v39, -inf  ;;  %v4800_v51 = vadd.f32 %v1958_v40, %v4277_v53 }
 0xa55   :  { %1877 = vmax.xlane.f32.xlu2 %v1876_v21 }
 0xa56   :  { %v1985_v52 = vsel %vm408_vm10, %v4800_v51, -inf }
 0xa59   :  { %v1871_v27 = vpop.f32.mrf.mxu2 }
 0xa5b   :  { %v1960_v41 = vpop.f32.mrf.mxu1 }
 0xa61   :  { %v1981_v44 = vpop.f32.mrf.mxu2 }
 0xa62   :  { %v1982_v16 = vadd.f32 %v1981_v44, %v4282_v58  ;;  %v1804_v58 = vunpack.c.l.b16 %v4747_v7 }
 0xa64   :  { %v1988_v45 = vsel %vm408_vm10, %v1982_v16, -inf  ;;  %v1805_v54 = vpack.c.b16 %v1804_v58, %v1804_v58 }
 0xa65   :  { %1989 = vmax.xlane.f32.xlu2 %v1988_v45 }
 0xa69   :  { %v1983_v47 = vpop.f32.mrf.mxu2 }
 0xa73   :  { %1651 = vadd.xlane.f32.xlu1 %v1650_v50 }
 0xa7b   :  { %1986 = vmax.xlane.f32.xlu1 %v1985_v52 }
 0xa7d   :  { %1897 = vrot.lane.b32.xlu2 %v4789_v35, %s5196_s26 }
 0xa94   :  { %1918 = vrot.lane.b32.xlu1 %v1805_v54, %s5196_s26 }
 0xaa3   :  { %v1757_v55 = vpop.xlane.xlu1 %1756 }
 0xaa4   :  { %v1761_v15 = vsub.f32 %v1723_v17, %v1757_v55 }
 0xaa6   :  { %v1763_v56 = vmul.f32 1.442695, %v1761_v15 }
 0xaa8   :  { %3855 = vpow2.f32 %v1763_v56 }
 0xaae   :  { %v3856_v57 = vpop.eup %3855 }
 0xaaf   :  { %v1767_v53 = vsel %vm408_vm10, %v3856_v57, 0.0 }
 0xab0   :  { %1768 = vadd.xlane.f32.xlu0 %v1767_v53 }
 0xab3   :  { %v1649_v59 = vpop.xlane.xlu0 %1648 }
 0xab4   :  { %3857 = vrcp.f32 %v1649_v59 }
 0xab8   :  { %v1760_v60 = vpop.xlane.xlu2 %1759 }
 0xab9   :  { %v1762_v61 = vsub.f32 %v1752_v29, %v1760_v60 }
 0xaba   :  { %v3858_v62 = vpop.eup %3857 }
 0xabb   :  { %v1655_v63 = vmul.f32 %v3858_v62, %v3852_v25  ;;  %v1765_v0 = vmul.f32 1.442695, %v1762_v61  ;;  %v1783_v1 = vpop.permute.xlu1 %1782  ;;  %v1875_v7 = vpop.xlane.xlu0 %1874 }
 0xabc   :  { %v1788_v2 = vsel %vm436_vm8, %v1783_v1, 0  ;;  %v1879_v3 = vsub.f32 %v1847_v32, %v1875_v7 }
 0xabd   :  { %v1657_v4 = vpack.c.bf16 %v1655_v63, %v1655_v63  ;;  %3859 = vpow2.f32 %v1765_v0  ;;  %1797 = vmatpush.bf16.msrb.mxu3 %v1788_v2 }
 0xabe   :  { %v1881_v5 = vmul.f32 1.442695, %v1879_v3 }
 0xabf   :  { %3263 = vmatmul.msk.bf16.vlgmr.msra.gmra.mxu3 %vm408_vm10, %v1657_v4 }
 0xac0   :  { %3861 = vpow2.f32 %v1881_v5 }
 0xac3   :  { %v3860_v49 = vpop.eup %3859 }
 0xac4   :  { %1806 = vrot.lane.b32.xlu0 %v1805_v54, %s5195_s29  ;;  %v1770_v9 = vsel %vm408_vm10, %v3860_v49, 0.0 }
 0xac5   :  { %1771 = vadd.xlane.f32.xlu2 %v1770_v9 }
 0xac6   :  { %v3862_v10 = vpop.eup %3861 }
 0xac7   :  { %v1885_v14 = vsel %vm408_vm10, %v3862_v10, 0.0 }
 0xac8   :  { %v1878_v11 = vpop.xlane.xlu2 %1877 }
 0xac9   :  { %v1880_v31 = vsub.f32 %v1870_v39, %v1878_v11 }
 0xacb   :  { %v1883_v34 = vmul.f32 1.442695, %v1880_v31 }
 0xacd   :  { %3863 = vpow2.f32 %v1883_v34  ;;  %1886 = vadd.xlane.f32.xlu2 %v1885_v14 }
 0xad3   :  { %v3864_v17 = vpop.eup %3863 }
 0xad4   :  { %v1888_v18 = vsel %vm408_vm10, %v3864_v17, 0.0 }
 0xad5   :  { %1889 = vadd.xlane.f32.xlu2 %v1888_v18 }
 0xad8   :  { %v1990_v19 = vpop.xlane.xlu2 %1989 }
 0xad9   :  { %v1992_v20 = vsub.f32 %v1982_v16, %v1990_v19 }
 0xadb   :  { %v1995_v22 = vmul.f32 1.442695, %v1992_v20 }
 0xadd   :  { %3865 = vpow2.f32 %v1995_v22 }
 0xae0   :  { %v1898_v23 = vpop.permute.xlu2 %1897 }
 0xae1   :  { %v1903_v24 = vsel %vm436_vm8, %v1898_v23, 0 }
 0xae2   :  { %1912 = vmatpush.bf16.msra.mxu3 %v1903_v24 }
 0xae3   :  { %v3866_v25 = vpop.eup %3865 }
 0xae4   :  { %v2000_v26 = vsel %vm408_vm10, %v3866_v25, 0.0 }
 0xae5   :  { %2001 = vadd.xlane.f32.xlu1 %v2000_v26  ;;  %v3683_v26 = vld [vmem:[%s5193_s27 + $0x70] sm:$0xff] }
 0xae6   :  { %v1652_v28 = vpop.xlane.xlu1 %1651 }
 0xae7   :  { %3867 = vrcp.f32 %v1652_v28 }
 0xaed   :  { %v3868_v29 = vpop.eup %3867  ;;  %2009 = vrot.lane.b32.xlu2 %v4789_v35, %s5197_s6 }
 0xaee   :  { %v1656_v30 = vmul.f32 %v3868_v29, %v3854_v48  ;;  %v1987_v32 = vpop.xlane.xlu1 %1986  ;;  %v3682_v29 = vld [vmem:[%s5193_s27 + $0x68] sm:$0xff] }
 0xaef   :  { %v1991_v33 = vsub.f32 %v4800_v51, %v1987_v32  ;;  %v3680_v32 = vld [vmem:[%s5193_s27 + $0x58] sm:$0xff] }
 0xaf0   :  { %v1658_v6 = vpack.c.bf16 %v1656_v30, %v1656_v30  ;;  %v3681_v30 = vld [vmem:[%s5193_s27 + $0x60] sm:$0xff] }
 0xaf1   :  { %v1993_v36 = vmul.f32 1.442695, %v1991_v33  ;;  %v3679_v33 = vld [vmem:[%s5193_s27 + $0x50] sm:$0xff] }
 0xaf2   :  { %3264 = vmatmul.msk.bf16.vlgmr.msrb.gmra.mxu0 %vm408_vm10, %v1658_v6  ;;  %v3678_v6 = vld [vmem:[%s5193_s27 + $0x48] sm:$0xff] }
 0xaf3   :  { %3869 = vpow2.f32 %v1993_v36  ;;  %v3677_v36 = vld [vmem:[%s5193_s27 + $0x40] sm:$0xff] }
 0xaf5   :  { %2030 = vrot.lane.b32.xlu2 %v1805_v54, %s5197_s6 }
 0xaf9   :  { %v3870_v37 = vpop.eup %3869 }
 0xafa   :  { %v1997_v38 = vsel %vm408_vm10, %v3870_v37, 0.0 }
 0xafb   :  { %1998 = vadd.xlane.f32.xlu0 %v1997_v38 }
 0xb06   :  { %v1919_v27 = vpop.permute.xlu1 %1918 }
 0xb07   :  { %v1924_v43 = vsel %vm436_vm8, %v1919_v27, 0 }
 0xb23   :  { %v1769_v39 = vpop.xlane.xlu0 %1768 }
 0xb24   :  { %3871 = vrcp.f32 %v1769_v39 }
 0xb2a   :  { %v3872_v40 = vpop.eup %3871 }
 0xb2b   :  { %v1775_v21 = vmul.f32 %v3872_v40, %v3856_v57 }
 0xb2d   :  { %v1777_v35 = vpack.c.bf16 %v1775_v21, %v1775_v21 }
 0xb2f   :  { %3267 = vmatmul.msk.bf16.vlgmr.msrb.gmra.mxu3 %vm408_vm10, %v1777_v35 }
 0xb36   :  { %v1807_v41 = vpop.permute.xlu0 %1806 }
 0xb37   :  { %v1812_v42 = vsel %vm436_vm8, %v1807_v41, 0 }
 0xb38   :  { %1821 = vmatpush.bf16.msra.mxu0 %v1812_v42  ;;  %v1772_v44 = vpop.xlane.xlu2 %1771 }
 0xb39   :  { %3873 = vrcp.f32 %v1772_v44 }
 0xb3c   :  { %1933 = vmatpush.bf16.msrb.mxu0 %v1924_v43 }
 0xb3f   :  { %v3874_v16 = vpop.eup %3873 }
 0xb40   :  { %v1776_v45 = vmul.f32 %v3874_v16, %v3860_v49  ;;  %v1887_v46 = vpop.xlane.xlu2 %1886 }
 0xb41   :  { %3875 = vrcp.f32 %v1887_v46 }
 0xb42   :  { %v1778_v47 = vpack.c.bf16 %v1776_v45, %v1776_v45  ;;  %v4826_v48 = vpop.f32.mrf.mxu3 }
 0xb44   :  { %3268 = vmatmul.msk.bf16.vlgmr.msra.gmra.mxu0 %vm408_vm10, %v1778_v47 }
 0xb47   :  { %v3876_v50 = vpop.eup %3875 }
 0xb48   :  { %v1893_v51 = vmul.f32 %v3876_v50, %v3862_v10  ;;  %v1890_v52 = vpop.xlane.xlu2 %1889 }
 0xb49   :  { %3877 = vrcp.f32 %v1890_v52 }
 0xb4a   :  { %v1895_v58 = vpack.c.bf16 %v1893_v51, %v1893_v51  ;;  %v1676_v54 = vpop.f32.mrf.mxu3  ;;  %v3788_v51 = vld [vmem:[%s5194_s5 + $0x1] ss:$0 sm:$0xff] }
 0xb4c   :  { %3271 = vmatmul.msk.bf16.vlgmr.msra.gmra.mxu3 %vm408_vm10, %v1895_v58 }
 0xb4f   :  { %v3878_v55 = vpop.eup %3877 }
 0xb50   :  { %v1894_v15 = vmul.f32 %v3878_v55, %v3864_v17  ;;  %v2010_v56 = vpop.permute.xlu2 %2009 }
 0xb51   :  { %v2015_v57 = vsel %vm436_vm8, %v2010_v56, 0 }
 0xb52   :  { %v1896_v53 = vpack.c.bf16 %v1894_v15, %v1894_v15  ;;  %2024 = vmatpush.bf16.msrb.mxu3 %v2015_v57 }
 0xb54   :  { %3272 = vmatmul.msk.bf16.vlgmr.msrb.gmra.mxu0 %vm408_vm10, %v1896_v53 }
 0xb58   :  { %v2002_v59 = vpop.xlane.xlu1 %2001  ;;  %v2031_v60 = vpop.permute.xlu2 %2030 }
 0xb59   :  { %3879 = vrcp.f32 %v2002_v59  ;;  %v2036_v61 = vsel %vm436_vm8, %v2031_v60, 0 }
 0xb5a   :  { %2045 = vmatpush.bf16.msra.mxu0 %v2036_v61 }
 0xb5f   :  { %v3880_v62 = vpop.eup %3879 }
 0xb60   :  { %v2006_v63 = vmul.f32 %v3880_v62, %v3866_v25  ;;  %v3684_v25 = vld [vmem:[%s5193_s27 + $0x78] sm:$0xff] }
 0xb61   :  { %2152 = vmatpush.bf16.msra.mxu1 %v3684_v25 }
 0xb62   :  { %v2008_v0 = vpack.c.bf16 %v2006_v63, %v2006_v63  ;;  %v3700_v63 = vld [vmem:[%s5153_s10 + $0xf4] sm:$0xf0] }
 0xb64   :  { %3276 = vmatmul.msk.bf16.vlgmr.msra.gmra.mxu0 %vm408_vm10, %v2008_v0  ;;  %v3699_v0 = vld [vmem:[%s5153_s10 + $0xf4] sm:$0xf] }
 0xb65   :  { %2153 = vmatpush.bf16.msra.mxu1 %v3683_v26  ;;  %v3371_v26 = vld [vmem:[%s5153_s10 + $0xb0] sm:$0xf] }
 0xb69   :  { %2154 = vmatpush.bf16.msra.mxu1 %v3682_v29  ;;  %v3691_v29 = vld [vmem:[%s5153_s10 + $0xb4] sm:$0xf] }
 0xb6d   :  { %2155 = vmatpush.bf16.msra.mxu1 %v3681_v30 }
 0xb6e   :  { %v1999_v1 = vpop.xlane.xlu0 %1998 }
 0xb6f   :  { %3881 = vrcp.f32 %v1999_v1  ;;  %v1693_v7 = vpop.f32.mrf.mxu0 }
 0xb71   :  { %2156 = vmatpush.bf16.msra.mxu1 %v3680_v32  ;;  %v3373_v32 = vld [vmem:[%s5153_s10 + $0xb8] sm:$0xf0] }
 0xb75   :  { %v3882_v2 = vpop.eup %3881  ;;  %2157 = vmatpush.bf16.msra.mxu1 %v3679_v33  ;;  %v3376_v33 = vor.u32 %v3691_v29, %v3373_v32  ;;  %v3702_v29 = vld [vmem:[%s5155_s12 + $0x88] sm:$0xff]  ;;  %v3344_v32 = vld [vmem:[%s5154_s11 + $0x2] sm:$0x3] }
 0xb76   :  { %v2005_v3 = vmul.f32 %v3882_v2, %v3870_v37 }
 0xb77   :  { %v1695_v4 = vpop.f32.mrf.mxu0 }
 0xb78   :  { %v2007_v5 = vpack.c.bf16 %v2005_v3, %v2005_v3  ;;  %v3395_v3 = vld [vmem:[%s5153_s10 + $0xe0] sm:$0xf]  ;;  %v3698_v4 = vld [vmem:[%s5153_s10 + $0xe4] sm:$0xf0] }
 0xb79   :  { %2158 = vmatpush.bf16.msra.mxu1 %v3678_v6  ;;  %v3363_v6 = vld [vmem:[%s5153_s10 + $0xa0] sm:$0xf] }
 0xb7a   :  { %3275 = vmatmul.msk.bf16.vlgmr.msrb.gmra.mxu3 %vm408_vm10, %v2007_v5  ;;  %v3697_v5 = vld [vmem:[%s5153_s10 + $0xe4] sm:$0xf] }
 0xb7d   :  { %2159 = vmatpush.bf16.msra.mxu1 %v3677_v36  ;;  %v3690_v36 = vld [vmem:[%s5153_s10 + $0xa4] sm:$0xf0] }
 0xbb2   :  { %v1799_v49 = vpop.f32.mrf.mxu3 }
 0xbba   :  { %v1801_v9 = vpop.f32.mrf.mxu3 }
 0xbbb   :  { %v3397_v9 = vld [vmem:[%s5153_s10 + $0xe8] sm:$0xf0] }
 0xbc1   :  { %v1823_v11 = vpop.f32.mrf.mxu0 }
 0xbc2   :  { %v3763_v10 = vpack.i.bf16 %v1823_v11, %v1799_v49  ;;  %v3396_v49 = vor.u32 %v3698_v4, %v3395_v3  ;;  %v3400_v11 = vor.u32 %v3697_v5, %v3397_v9  ;;  %v3789_v3 = vld [vmem:[%s5151_s8 + $0x1] ss:$0 sm:$0xff] }
 0xbc4   :  { %3764 = vrot.lane.b32.xlu2 %v3763_v10, %s5197_s6  ;;  %v3387_v10 = vld [vmem:[%s5153_s10 + $0xd0] sm:$0xf] }
 0xbc9   :  { %v1825_v31 = vpop.f32.mrf.mxu0 }
 0xbca   :  { %v3696_v31 = vld [vmem:[%s5153_s10 + $0xd4] sm:$0xf0] }
 0xbcf   :  { %v1914_v34 = vpop.f32.mrf.mxu3 }
 0xbd1   :  { %v1935_v14 = vpop.f32.mrf.mxu0 }
 0xbd2   :  { %v3768_v17 = vpack.i.bf16 %v1935_v14, %v1914_v34  ;;  %v3695_v34 = vld [vmem:[%s5153_s10 + $0xd4] sm:$0xf]  ;;  %v3388_v14 = vor.u32 %v3696_v31, %v3387_v10 }
 0xbd4   :  { %3769 = vrot.lane.b32.xlu0 %v3768_v17, %s5196_s26  ;;  %v3389_v17 = vld [vmem:[%s5153_s10 + $0xd8] sm:$0xf0]  ;;  %s3935_s26 = smov 8  }
 0xbd7   :  { %v1916_v18 = vpop.f32.mrf.mxu3 }
 0xbd8   :  { %v3392_v18 = vor.u32 %v3695_v34, %v3389_v17  ;;  %v3707_v17 = vld [vmem:[%s5155_s12 + $0xb0] sm:$0xff] }
 0xbd9   :  { %v1937_v19 = vpop.f32.mrf.mxu0 }
 0xbda   :  { %v3379_v19 = vld [vmem:[%s5153_s10 + $0xc0] sm:$0xf] }
 0xbe1   :  { %v2047_v20 = vpop.f32.mrf.mxu0 }
 0xbe9   :  { %v2049_v22 = vpop.f32.mrf.mxu0 }
 0xbea   :  { %v3693_v22 = vld [vmem:[%s5153_s10 + $0xc4] sm:$0xf] }
 0xbfd   :  { %v2026_v23 = vpop.f32.mrf.mxu3 }
 0xbfe   :  { %v3773_v24 = vpack.i.bf16 %v2047_v20, %v2026_v23  ;;  %v3694_v20 = vld [vmem:[%s5153_s10 + $0xc4] sm:$0xf0] }
 0xbff   :  { %v3380_v23 = vor.u32 %v3694_v20, %v3379_v19  ;;  %v3706_v19 = vld [vmem:[%s5155_s12 + $0xa8] sm:$0xff] }
 0xc00   :  { %3774 = vrot.lane.b32.xlu2 %v3773_v24, %s5195_s29  ;;  %v3381_v24 = vld [vmem:[%s5153_s10 + $0xc8] sm:$0xf0]  ;;  %s2844_s29 = sshll.u32 %s5165_s22, 4  ;;  %s2845_s29 = int_to_ptr.hbm [resolvable:$true] %s2844_s29 }
 0xc01   :  { %v3384_v25 = vor.u32 %v3693_v22, %v3381_v24  ;;  %v3714_v20 = vld [vmem:[%s5155_s12 + $0xe8] sm:$0xff]  ;;  %v3705_v22 = vld [vmem:[%s5155_s12 + $0xa0] sm:$0xff]  ;;  %v3704_v24 = vld [vmem:[%s5155_s12 + $0x98] sm:$0xff] }
 0xc05   :  { %v2028_v28 = vpop.f32.mrf.mxu3 }
 0xc06   :  { %v3692_v28 = vld [vmem:[%s5153_s10 + $0xb4] sm:$0xf0] }
 0xc07   :  { %v3372_v30 = vor.u32 %v3692_v28, %v3371_v26  ;;  %v3703_v26 = vld [vmem:[%s5155_s12 + $0x90] sm:$0xff] }
 0xc08   :  { %v3711_v28 = vld [vmem:[%s5155_s12 + $0xd0] sm:$0xff] }
 0xc1e   :  { %v3765_v37 = vpop.permute.xlu2 %3764 }
 0xc1f   :  { %v3767_v39 = vunpack.i.h.bf16 %v3765_v37  ;;  %v3766_v40 = vunpack.i.l.bf16 %v3765_v37  ;;  %v3689_v37 = vld [vmem:[%s5153_s10 + $0xa4] sm:$0xf] }
 0xc21   :  { %v2076_v41 = vsel %vm369_vm7, %v1693_v7, %v3767_v39  ;;  %v2075_v42 = vsel %vm369_vm7, %v4826_v48, %v3766_v40  ;;  %v3405_v7 = vld [vmem:[%s5153_s10 + $0xf8] sm:$0xf0]  ;;  %v3365_v39 = vld [vmem:[%s5153_s10 + $0xa8] sm:$0xf0] }
 0xc22   :  { %v3408_v2 = vor.u32 %v3699_v0, %v3405_v7  ;;  %v3368_v40 = vor.u32 %v3689_v37, %v3365_v39  ;;  %v2244_v37 = vperm.slane %v3344_v32, 1 }
 0xc24   :  { %2341 = vmatpush.bf16.msra.mxu3 %v3408_v2 }
 0xc28   :  { %2342 = vmatpush.bf16.msra.mxu3 %v3400_v11  ;;  %v3790_v11 = vld [vmem:[%s5152_s9 + $0x1] ss:$0 sm:$0xff] }
 0xc2c   :  { %2343 = vmatpush.bf16.msra.mxu3 %v3392_v18  ;;  %v3715_v18 = vld [vmem:[%s5155_s12 + $0xf0] sm:$0xff] }
 0xc30   :  { %2344 = vmatpush.bf16.msra.mxu3 %v3384_v25  ;;  %v3712_v25 = vld [vmem:[%s5155_s12 + $0xd8] sm:$0xff] }
 0xc34   :  { %2345 = vmatpush.bf16.msra.mxu3 %v3376_v33  ;;  %v3701_v33 = vld [vmem:[%s5155_s12 + $0x80] sm:$0xff] }
 0xc38   :  { %2346 = vmatpush.bf16.msra.mxu3 %v3368_v40 }
 0xc46   :  { %v3770_v38 = vpop.permute.xlu0 %3769 }
 0xc47   :  { %v3772_v21 = vunpack.i.h.bf16 %v3770_v38  ;;  %v3771_v35 = vunpack.i.l.bf16 %v3770_v38  ;;  %v3364_v38 = vor.u32 %v3690_v36, %v3363_v6  ;;  %v3709_v6 = vld [vmem:[%s5155_s12 + $0xc0] sm:$0xff]  ;;  %v2243_v36 = vperm.slane %v3344_v32, 0 }
 0xc49   :  { %v2077_v16 = vsel %vm852_vm12, %v2075_v42, %v3771_v35  ;;  %v2078_v45 = vsel %vm852_vm12, %v2076_v41, %v3772_v21  ;;  %v3355_v21 = vld [vmem:[%s5153_s10 + $0x90] sm:$0xf]  ;;  %v3688_v35 = vld [vmem:[%s5153_s10 + $0x94] sm:$0xf0]  ;;  %v3357_v42 = vld [vmem:[%s5153_s10 + $0x98] sm:$0xf0] }
 0xc4a   :  { %v3356_v41 = vor.u32 %v3688_v35, %v3355_v21 }
 0xc5a   :  { %v3775_v27 = vpop.permute.xlu2 %3774 }
 0xc5b   :  { %v3777_v43 = vunpack.i.h.bf16 %v3775_v27  ;;  %v3776_v44 = vunpack.i.l.bf16 %v3775_v27  ;;  %v3687_v27 = vld [vmem:[%s5153_s10 + $0x94] sm:$0xf] }
 0xc5d   :  { %v2079_v46 = vsel %vm855_vm13, %v2077_v16, %v3776_v44  ;;  %v2080_v47 = vsel %vm855_vm13, %v2078_v45, %v3777_v43  ;;  %v3360_v43 = vor.u32 %v3687_v27, %v3357_v42  ;;  %v3347_v44 = vld [vmem:[%s5153_s10 + $0x80] sm:$0xf]  ;;  %v3686_v16 = vld [vmem:[%s5153_s10 + $0x84] sm:$0xf0]  ;;  %v3685_v45 = vld [vmem:[%s5153_s10 + $0x84] sm:$0xf] }
 0xc5e   :  { %v2098_v50 = vpack.c.bf16 %v2080_v47, %v2079_v46  ;;  %v3348_v47 = vor.u32 %v3686_v16, %v3347_v44 }
 0xc5f   :  { %2347 = vmatpush.bf16.msra.mxu3 %v3360_v43 }
 0xc60   :  { %2160 = vmatmul.bf16.vlgmr.msra.gmra.mxu1 %v2098_v50  ;;  %v3349_v50 = vld [vmem:[%s5153_s10 + $0x88] sm:$0xf0] }
 0xcdd   :  { %v2161_v52 = vpop.f32.mrf.mxu1 }
 0xcde   :  { %v2162_v58 = vadd.f32 %v3788_v51, %v2161_v52  ;;  %v3352_v52 = vor.u32 %v3685_v45, %v3349_v50 }
 0xce0   :  { %v2166_v48 = vadd.f32 %v2162_v58, %v4733_v12  ;;  %2348 = vmatpush.bf16.msra.mxu3 %v3352_v52 }
 0xce2   :  { %2172 = vadd.xlane.f32.xlu1 %v2166_v48 }
 0xce5   :  { %v2163_v54 = vpop.f32.mrf.mxu1 }
 0xce6   :  { %v2164_v55 = vadd.f32 %v3788_v51, %v2163_v54 }
 0xce8   :  { %v2167_v15 = vadd.f32 %v2164_v55, %v4735_v13  ;;  %v3403_v13 = vld [vmem:[%s5153_s10 + $0xf0] sm:$0xf] }
 0xce9   :  { %v3404_v1 = vor.u32 %v3700_v63, %v3403_v13 }
 0xcea   :  { %2174 = vadd.xlane.f32.xlu2 %v2167_v15 }
 0xceb   :  { %2327 = vmatpush.bf16.msra.mxu2 %v3404_v1 }
 0xcef   :  { %2328 = vmatpush.bf16.msra.mxu2 %v3396_v49 }
 0xcf3   :  { %2329 = vmatpush.bf16.msra.mxu2 %v3388_v14  ;;  %v3708_v14 = vld [vmem:[%s5155_s12 + $0xb8] sm:$0xff] }
 0xcf4   :  { %2527 = vmatpush.bf16.msrb.mxu0 %v3708_v14 }
 0xcf7   :  { %2330 = vmatpush.bf16.msra.mxu2 %v3380_v23  ;;  %v3713_v23 = vld [vmem:[%s5155_s12 + $0xe0] sm:$0xff] }
 0xcf8   :  { %2528 = vmatpush.bf16.msrb.mxu0 %v3707_v17 }
 0xcfb   :  { %2331 = vmatpush.bf16.msra.mxu2 %v3372_v30  ;;  %v3710_v30 = vld [vmem:[%s5155_s12 + $0xc8] sm:$0xff] }
 0xcfc   :  { %2529 = vmatpush.bf16.msrb.mxu0 %v3706_v19 }
 0xcff   :  { %2332 = vmatpush.bf16.msra.mxu2 %v3364_v38 }
 0xd00   :  { %2530 = vmatpush.bf16.msrb.mxu0 %v3705_v22  ;;  %v3791_v22 = vld [vmem:[%s5156_s13 + $0x1] ss:$0 sm:$0xff] }
 0xd03   :  { %2333 = vmatpush.bf16.msra.mxu2 %v3356_v41 }
 0xd04   :  { %2531 = vmatpush.bf16.msrb.mxu0 %v3704_v24 }
 0xd07   :  { %2334 = vmatpush.bf16.msra.mxu2 %v3348_v47 }
 0xd08   :  { %2532 = vmatpush.bf16.msrb.mxu0 %v3703_v26 }
 0xd0c   :  { %2533 = vmatpush.bf16.msrb.mxu0 %v3702_v29 }
 0xd10   :  { %2534 = vmatpush.bf16.msrb.mxu0 %v3701_v33 }
 0xd55   :  { %v2173_v56 = vpop.xlane.xlu1 %2172 }
 0xd56   :  { %v2176_v57 = vmul.f32 %v2173_v56, %v4062_v8 }
 0xd58   :  { %v4875_v53 = vsub.f32 %v2166_v48, %v2176_v57 }
 0xd5a   :  { %v2180_v59 = vmul.f32 %v4875_v53, %v4875_v53 }
 0xd5c   :  { %2182 = vadd.xlane.f32.xlu1 %v2180_v59 }
 0xd5d   :  { %v2175_v60 = vpop.xlane.xlu2 %2174 }
 0xd5e   :  { %v2177_v61 = vmul.f32 %v2175_v60, %v4062_v8 }
 0xd60   :  { %v4880_v62 = vsub.f32 %v2167_v15, %v2177_v61 }
 0xd62   :  { %v2181_v12 = vmul.f32 %v4880_v62, %v4880_v62 }
 0xd64   :  { %2184 = vadd.xlane.f32.xlu0 %v2181_v12 }
 0xdcf   :  { %v2183_v46 = vpop.xlane.xlu1 %2182 }
 0xdd0   :  { %v2186_v51 = vmul.f32 %v2183_v46, %v4062_v8 }
 0xdd2   :  { %v2188_v58 = vadd.f32 1e-12, %v2186_v51 }
 0xdd4   :  { %3883 = vrsqrt.f32 %v2188_v58  ;;  %vm2196_vm8 = vweird.f32 %v2188_v58 }
 0xdd7   :  { %v2185_v48 = vpop.xlane.xlu0 %2184 }
 0xdd8   :  { %v2187_v54 = vmul.f32 %v2185_v48, %v4062_v8 }
 0xdda   :  { %v3884_v55 = vpop.eup %3883  ;;  %v2189_v15 = vadd.f32 1e-12, %v2187_v54 }
 0xddb   :  { %v2191_v56 = vmul.f32 %v3884_v55, %v2188_v58  ;;  %vm2197_vm7 = vweird.f32 %v3884_v55 }
 0xddc   :  { %3885 = vrsqrt.f32 %v2189_v15  ;;  %vm2198_vm10 = vmor %vm2196_vm8, %vm2197_vm7  ;;  %vm2206_vm15 = vweird.f32 %v2189_v15 }
 0xddd   :  { %v2192_v57 = vmul.f32 %v3884_v55, %v2191_v56 }
 0xddf   :  { %v2193_v59 = vmul.f32 0.5, %v2192_v57 }
 0xde1   :  { %v2194_v60 = vsub.f32 1.5, %v2193_v59 }
 0xde2   :  { %v3886_v61 = vpop.eup %3885 }
 0xde3   :  { %v2195_v12 = vmul.f32 %v3884_v55, %v2194_v60  ;;  %v2201_v13 = vmul.f32 %v3886_v61, %v2189_v15  ;;  %vm2207_vm13 = vweird.f32 %v3886_v61 }
 0xde4   :  { %vm2208_vm0 = vmor %vm2206_vm15, %vm2207_vm13 }
 0xde5   :  { %v2202_v63 = vmul.f32 %v3886_v61, %v2201_v13  ;;  %v2199_v0 = vsel %vm2198_vm10, %v3884_v55, %v2195_v12 }
 0xde6   :  { %v2210_v2 = vmul.f32 %v2199_v0, %v4875_v53 }
 0xde7   :  { %v2203_v1 = vmul.f32 0.5, %v2202_v63 }
 0xde8   :  { %v2215_v9 = vmul.f32 %v3789_v3, %v2210_v2 }
 0xde9   :  { %v2204_v7 = vsub.f32 1.5, %v2203_v1 }
 0xdea   :  { %v4990_v31 = vadd.f32 %v3790_v11, %v2215_v9 }
 0xdeb   :  { %v2205_v4 = vmul.f32 %v3886_v61, %v2204_v7 }
 0xded   :  { %v2209_v5 = vsel %vm2208_vm0, %v3886_v61, %v2205_v4 }
 0xdee   :  { %v2211_v49 = vmul.f32 %v2209_v5, %v4880_v62  ;;  %v3716_v62 = vld [vmem:[%s5155_s12 + $0xf8] sm:$0xff] }
 0xdef   :  { %2541 = vmatpush.bf16.msrb.mxu1 %v3716_v62 }
 0xdf0   :  { %v2216_v10 = vmul.f32 %v3789_v3, %v2211_v49 }
 0xdf2   :  { %v4992_v34 = vadd.f32 %v3790_v11, %v2216_v10 }
 0xdf3   :  { %2542 = vmatpush.bf16.msrb.mxu1 %v3715_v18 }
 0xdf4   :  { %v2239_v53 = vpack.c.bf16 %v4992_v34, %v4990_v31 }
 0xdf6   :  { %2335 = vmatmul.bf16.vlgmr.msra.gmra.mxu2 %v2239_v53  ;;  %2349 = vmatmul.bf16.vlgmr.msra.gmra.mxu3 %v2239_v53 }
 0xdf7   :  { %2543 = vmatpush.bf16.msrb.mxu1 %v3714_v20 }
 0xdfb   :  { %2544 = vmatpush.bf16.msrb.mxu1 %v3713_v23 }
 0xdff   :  { %2545 = vmatpush.bf16.msrb.mxu1 %v3712_v25 }
 0xe03   :  { %2546 = vmatpush.bf16.msrb.mxu1 %v3711_v28 }
 0xe07   :  { %2547 = vmatpush.bf16.msrb.mxu1 %v3710_v30 }
 0xe0b   :  { %2548 = vmatpush.bf16.msrb.mxu1 %v3709_v6 }
 0xe79   :  { %v2336_v38 = vpop.f32.mrf.mxu2  ;;  %v2350_v39 = vpop.f32.mrf.mxu3 }
 0xe7a   :  { %v2337_v40 = vadd.f32 %v2336_v38, %v2243_v36  ;;  %v2351_v21 = vadd.f32 %v2350_v39, %v2244_v37 }
 0xe7c   :  { %v2359_v35 = vmul.f32 0.044715, %v2337_v40  ;;  %v2360_v27 = vmul.f32 0.044715, %v2351_v21  ;;  %v2355_v3 = vmul.f32 0.5, %v2337_v40  ;;  %v2356_v49 = vmul.f32 0.5, %v2351_v21 }
 0xe7e   :  { %v2363_v41 = vmul.f32 %v2359_v35, %v2337_v40  ;;  %v2364_v42 = vmul.f32 %v2360_v27, %v2351_v21  ;;  %v3722_v35 = vld [vmem:[%s5159_s16 + $0x28] sm:$0xff]  ;;  %v3721_v27 = vld [vmem:[%s5159_s16 + $0x20] sm:$0xff] }
 0xe80   :  { %v2367_v43 = vmul.f32 %v2363_v41, %v2337_v40  ;;  %v2368_v44 = vmul.f32 %v2364_v42, %v2351_v21  ;;  %v3720_v41 = vld [vmem:[%s5159_s16 + $0x18] sm:$0xff]  ;;  %v3719_v42 = vld [vmem:[%s5159_s16 + $0x10] sm:$0xff] }
 0xe81   :  { %v2338_v16 = vpop.f32.mrf.mxu2  ;;  %v2352_v45 = vpop.f32.mrf.mxu3 }
 0xe82   :  { %v2371_v46 = vadd.f32 %v2367_v43, %v2337_v40  ;;  %v2339_v47 = vadd.f32 %v2338_v16, %v2243_v36  ;;  %v2353_v50 = vadd.f32 %v2352_v45, %v2244_v37  ;;  %v2372_v51 = vadd.f32 %v2368_v44, %v2351_v21  ;;  %v3718_v44 = vld [vmem:[%s5159_s16 + $0x8] sm:$0xff]  ;;  %v3717_v45 = vld [vmem:[%s5159_s16] sm:$0xff] }
 0xe84   :  { %v2361_v52 = vmul.f32 0.044715, %v2339_v47  ;;  %v2362_v58 = vmul.f32 0.044715, %v2353_v50  ;;  %v2375_v48 = vmul.f32 0.7978846, %v2371_v46 }
 0xe85   :  { %v2376_v55 = vmul.f32 0.7978846, %v2372_v51  ;;  %v2357_v4 = vmul.f32 0.5, %v2339_v47  ;;  %v2358_v9 = vmul.f32 0.5, %v2353_v50 }
 0xe86   :  { %v2365_v54 = vmul.f32 %v2361_v52, %v2339_v47  ;;  %v2366_v15 = vmul.f32 %v2362_v58, %v2353_v50  ;;  %3887 = vtanh.f32 %v2375_v48  ;;  %v3731_v52 = vld [vmem:[%s5161_s18 + $0x30] sm:$0xff] }
 0xe87   :  { %3889 = vtanh.f32 %v2376_v55 }
 0xe88   :  { %v2369_v56 = vmul.f32 %v2365_v54, %v2339_v47  ;;  %v2370_v57 = vmul.f32 %v2366_v15, %v2353_v50  ;;  %v3730_v15 = vld [vmem:[%s5161_s18 + $0x28] sm:$0xff] }
 0xe8a   :  { %v2373_v59 = vadd.f32 %v2369_v56, %v2339_v47  ;;  %v2374_v60 = vadd.f32 %v2370_v57, %v2353_v50  ;;  %v3732_v50 = vld [vmem:[%s5161_s18 + $0x38] sm:$0xff] }
 0xe8b   :  { %2770 = vmatpush.bf16.msrb.mxu3 %v3732_v50 }
 0xe8c   :  { %v2377_v61 = vmul.f32 0.7978846, %v2373_v59  ;;  %v2378_v12 = vmul.f32 0.7978846, %v2374_v60  ;;  %v3888_v13 = vpop.eup %3887 }
 0xe8d   :  { %v3890_v63 = vpop.eup %3889  ;;  %v2383_v0 = vadd.f32 1.0, %v3888_v13 }
 0xe8e   :  { %3891 = vtanh.f32 %v2377_v61  ;;  %v2384_v7 = vadd.f32 1.0, %v3890_v63 }
 0xe8f   :  { %3893 = vtanh.f32 %v2378_v12  ;;  %v2387_v10 = vmul.f32 %v2383_v0, %v2355_v3  ;;  %2771 = vmatpush.bf16.msrb.mxu3 %v3731_v52  ;;  %v3792_v12 = vld [vmem:[%s5157_s14 + $0x1] ss:$0 sm:$0xff]  ;;  %v3728_v0 = vld [vmem:[%s5161_s18 + $0x18] sm:$0xff] }
 0xe90   :  { %v2388_v14 = vmul.f32 %v2384_v7, %v2356_v49 }
 0xe93   :  { %2772 = vmatpush.bf16.msrb.mxu3 %v3730_v15 }
 0xe94   :  { %v3892_v1 = vpop.eup %3891 }
 0xe95   :  { %v3894_v2 = vpop.eup %3893  ;;  %v2385_v5 = vadd.f32 1.0, %v3892_v1  ;;  %v3793_v1 = vld [vmem:[%s5158_s15 + $0x1] ss:$0 sm:$0xff] }
 0xe96   :  { %v2386_v11 = vadd.f32 1.0, %v3894_v2 }
 0xe97   :  { %v2389_v53 = vmul.f32 %v2385_v5, %v2357_v4 }
 0xe98   :  { %v2390_v62 = vmul.f32 %v2386_v11, %v2358_v9 }
 0xe99   :  { %v2424_v17 = vpack.c.bf16 %v2389_v53, %v2387_v10 }
 0xe9a   :  { %v2425_v18 = vpack.c.bf16 %v2390_v62, %v2388_v14 }
 0xe9b   :  { %2535 = vmatmul.bf16.vlgmr.msrb.gmra.mxu0 %v2424_v17 }
 0xe9c   :  { %2549 = vmatmul.bf16.vlgmr.msrb.gmra.mxu1 %v2425_v18  ;;  %v3727_v18 = vld [vmem:[%s5161_s18 + $0x10] sm:$0xff] }
 0xf18   :  { %v2536_v19 = vpop.f32.mrf.mxu0 }
 0xf19   :  { %v2550_v20 = vpop.f32.mrf.mxu1  ;;  %v2537_v28 = vadd.f32 %v3791_v22, %v2536_v19  ;;  %v3726_v19 = vld [vmem:[%s5161_s18 + $0x8] sm:$0xff] }
 0xf1b   :  { %v2551_v30 = vadd.f32 %v2550_v20, %v2537_v28  ;;  %v3725_v20 = vld [vmem:[%s5161_s18] sm:$0xff] }
 0xf1d   :  { %v2555_v32 = vadd.f32 %v2551_v30, %v4990_v31  ;;  %v3724_v31 = vld [vmem:[%s5159_s16 + $0x38] sm:$0xff] }
 0xf1e   :  { %2687 = vmatpush.bf16.msrb.mxu2 %v3724_v31 }
 0xf20   :  { %v2538_v23 = vpop.f32.mrf.mxu0 }
 0xf21   :  { %v2539_v24 = vadd.f32 %v3791_v22, %v2538_v23  ;;  %v2552_v25 = vpop.f32.mrf.mxu1  ;;  %v3736_v22 = vld [vmem:[%s5163_s20 + $0x18] sm:$0xff]  ;;  %v3735_v23 = vld [vmem:[%s5163_s20 + $0x10] sm:$0xff] }
 0xf22   :  { %2828 = vmatpush.bf16.msra.mxu0 %v3736_v22 }
 0xf23   :  { %v2553_v26 = vadd.f32 %v2552_v25, %v2539_v24  ;;  %v3734_v24 = vld [vmem:[%s5163_s20 + $0x8] sm:$0xff]  ;;  %v3794_v25 = vld [vmem:[%s5160_s17] ss:$0 sm:$0xff]  ;;  %s3933_s17 = smov [#allocation2]  }
 0xf24   :  { %s2842_s25 = sshll.u32 %s3933_s17, 4  ;;  %s2843_s25 = int_to_ptr.vmem [resolvable:$true] %s2842_s25 }
 0xf25   :  { %v2556_v29 = vadd.f32 %v2553_v26, %v4992_v34  ;;  %v3723_v34 = vld [vmem:[%s5159_s16 + $0x30] sm:$0xff] }
 0xf26   :  { %2688 = vmatpush.bf16.msrb.mxu2 %v3723_v34  ;;  %2829 = vmatpush.bf16.msra.mxu0 %v3735_v23 }
 0xf27   :  { %2563 = vadd.xlane.f32.xlu1 %v2556_v29 }
 0xf2a   :  { %2689 = vmatpush.bf16.msrb.mxu2 %v3722_v35  ;;  %2830 = vmatpush.bf16.msra.mxu0 %v3734_v24 }
 0xf2e   :  { %2690 = vmatpush.bf16.msrb.mxu2 %v3721_v27 }
 0xf2f   :  { %2561 = vadd.xlane.f32.xlu1 %v2555_v32 }
 0xf32   :  { %2691 = vmatpush.bf16.msrb.mxu2 %v3720_v41 }
 0xf36   :  { %2692 = vmatpush.bf16.msrb.mxu2 %v3719_v42 }
 0xf3a   :  { %2693 = vmatpush.bf16.msrb.mxu2 %v3718_v44 }
 0xf3e   :  { %2694 = vmatpush.bf16.msrb.mxu2 %v3717_v45 }
 0xf9a   :  { %v2564_v33 = vpop.xlane.xlu1 %2563 }
 0xf9b   :  { %v2566_v6 = vmul.f32 %v2564_v33, %v4062_v8  ;;  %v3733_v33 = vld [vmem:[%s5163_s20] sm:$0xff]  ;;  %s3934_s20 = smov 128  }
 0xf9c   :  { %2831 = vmatpush.bf16.msra.mxu0 %v3733_v33 }
 0xf9d   :  { %v2568_v36 = vsub.f32 %v2556_v29, %v2566_v6  ;;  %v3795_v6 = vld [vmem:[%s5162_s19] ss:$0 sm:$0xff] }
 0xf9f   :  { %v2570_v37 = vmul.f32 %v2568_v36, %v2568_v36 }
 0xfa1   :  { %2573 = vadd.xlane.f32.xlu1 %v2570_v37 }
 0xfa2   :  { %v2562_v38 = vpop.xlane.xlu1 %2561 }
 0xfa3   :  { %v2565_v39 = vmul.f32 %v2562_v38, %v4062_v8 }
 0xfa5   :  { %v5054_v40 = vsub.f32 %v2555_v32, %v2565_v39 }
 0xfa7   :  { %v2569_v21 = vmul.f32 %v5054_v40, %v5054_v40 }
 0xfa9   :  { %2571 = vadd.xlane.f32.xlu1 %v2569_v21  ;;  %v3796_v21 = vld [vmem:[%s5164_s21] ss:$0 sm:$0xff] }
0x1014   :  { %v2574_v43 = vpop.xlane.xlu1 %2573 }
0x1015   :  { %v2576_v16 = vmul.f32 %v2574_v43, %v4062_v8 }
0x1017   :  { %v2578_v46 = vadd.f32 1e-12, %v2576_v16 }
0x1019   :  { %3895 = vrsqrt.f32 %v2578_v46  ;;  %vm2595_vm2 = vweird.f32 %v2578_v46 }
0x101c   :  { %v2572_v47 = vpop.xlane.xlu1 %2571 }
0x101d   :  { %v2575_v51 = vmul.f32 %v2572_v47, %v4062_v8  ;;  %v3729_v8 = vld [vmem:[%s5161_s18 + $0x20] sm:$0xff] }
0x101e   :  { %2773 = vmatpush.bf16.msrb.mxu3 %v3729_v8 }
0x101f   :  { %v3896_v58 = vpop.eup %3895  ;;  %v2577_v48 = vadd.f32 1e-12, %v2575_v51 }
0x1020   :  { %v2590_v54 = vmul.f32 %v3896_v58, %v2578_v46  ;;  %vm2596_vm1 = vweird.f32 %v3896_v58 }
0x1021   :  { %3897 = vrsqrt.f32 %v2577_v48  ;;  %vm2597_vm3 = vmor %vm2595_vm2, %vm2596_vm1  ;;  %vm2585_vm5 = vweird.f32 %v2577_v48 }
0x1022   :  { %v2591_v55 = vmul.f32 %v3896_v58, %v2590_v54  ;;  %2774 = vmatpush.bf16.msrb.mxu3 %v3728_v0 }
0x1024   :  { %v2592_v56 = vmul.f32 0.5, %v2591_v55 }
0x1026   :  { %v2593_v57 = vsub.f32 1.5, %v2592_v56  ;;  %2775 = vmatpush.bf16.msrb.mxu3 %v3727_v18 }
0x1027   :  { %v3898_v59 = vpop.eup %3897 }
0x1028   :  { %v2594_v60 = vmul.f32 %v3896_v58, %v2593_v57  ;;  %v2580_v61 = vmul.f32 %v3898_v59, %v2577_v48  ;;  %vm2586_vm4 = vweird.f32 %v3898_v59 }
0x1029   :  { %vm2587_vm6 = vmor %vm2585_vm5, %vm2586_vm4 }
0x102a   :  { %v2598_v13 = vsel %vm2597_vm3, %v3896_v58, %v2594_v60  ;;  %v2581_v63 = vmul.f32 %v3898_v59, %v2580_v61  ;;  %2776 = vmatpush.bf16.msrb.mxu3 %v3726_v19 }
0x102b   :  { %v2600_v7 = vmul.f32 %v2598_v13, %v2568_v36 }
0x102c   :  { %v2582_v2 = vmul.f32 0.5, %v2581_v63 }
0x102d   :  { %v2605_v3 = vmul.f32 %v3792_v12, %v2600_v7 }
0x102e   :  { %v2583_v4 = vsub.f32 1.5, %v2582_v2  ;;  %2777 = vmatpush.bf16.msrb.mxu3 %v3725_v20 }
0x102f   :  { %v2610_v5 = vadd.f32 %v3793_v1, %v2605_v3 }
0x1030   :  { %v2584_v49 = vmul.f32 %v3898_v59, %v2583_v4 }
0x1031   :  { %2612 = vst [vmem:[#allocation2 + $0x8] sm:$0xff] %v2610_v5  ;;  %v2614_v14 = vrot.slane %v2610_v5, 7 }
0x1032   :  { %v2588_v9 = vsel %vm2587_vm6, %v3898_v59, %v2584_v49 }
0x1033   :  { %v2599_v11 = vmul.f32 %v2588_v9, %v5054_v40 }
0x1035   :  { %v2604_v10 = vmul.f32 %v3792_v12, %v2599_v11 }
0x1037   :  { %v2609_v53 = vadd.f32 %v3793_v1, %v2604_v10 }
0x1039   :  { %v2617_v62 = vsel %vm2616_vm9, %v2609_v53, %v2614_v14  ;;  %2611 = vst [vmem:[#allocation2] sm:$0xff] %v2609_v53 }
0x103a   :  { %v2634_v17 = vpack.c.bf16 %v2617_v62, %v2617_v62  ;;  %2850 = dma.vmem_to_hbm [thread:$0]  %s2843_s25, 256, %s2845_s29, [#allocation3], %s3934_s20, %s3934_s20, %s3935_s26  }
0x103c   :  { %2695 = vmatmul.bf16.vlgmr.msrb.gmra.mxu2 %v2634_v17 }
0x10bf   :  { %v2696_v26 = vpop.f32.mrf.mxu2 }
0x10c0   :  { %v2697_v28 = vadd.f32 %v3794_v25, %v2696_v26 }
0x10c2   :  { %3899 = vtanh.f32 %v2697_v28 }
0x10c7   :  { %v2698_v29 = vpop.f32.mrf.mxu2 }
0x10c8   :  { %v3900_v30 = vpop.eup %3899 }
0x10c9   :  { %v2717_v32 = vpack.c.bf16 %v3900_v30, %v3900_v30 }
0x10cb   :  { %2778 = vmatmul.bf16.vlgmr.msrb.gmra.mxu3 %v2717_v32 }
0x114e   :  { %v2779_v36 = vpop.f32.mrf.mxu3 }
0x114f   :  { %v2780_v37 = vadd.f32 %v3795_v6, %v2779_v36 }
0x1151   :  { %v2783_v38 = vmax.f32 %v2780_v37, 0.0 }
0x1153   :  { %v2792_v39 = vpack.c.bf16 %v2783_v38, %v2783_v38 }
0x1155   :  { %3588 = vmatmul.msk.bf16.vlgmr.msra.gmra.mxu0 %vm852_vm12, %v2792_v39 }
0x1156   :  { %v2781_v40 = vpop.f32.mrf.mxu3 }
0x11d2   :  { %v2833_v31 = vpop.f32.mrf.mxu0 }
0x11d3   :  { %v2834_v34 = vadd.f32 %v3796_v21, %v2833_v31 }
0x11d5   :  { %2837 = vst [vmem:[%s5166_s23] sm:$0x3] %v2834_v34 }
0x11da   :  { %v2835_v35 = vpop.f32.mrf.mxu0 }
0x11db   :  { %3925 = dma.done.wait [#allocation3], 256  }
0x11dc   :  { %3926 = vsyncadd [#allocation3], 4294967040 }
0x11dd   :  { %2859 = vsyncpa [#allocation3], 1 }

</bundles_post_ra>
